<compile_context>
chip_gen: v7x
topology: tpu7x:2x2x1
jax: 0.10.0
libtpu: 0.0.40
codegen_flags: <defaults>
</compile_context>

<pallas_src>
import numpy as np
import jax
import jax.numpy as jnp
from jax.experimental import pallas as pl
from jax.experimental.pallas import tpu as pltpu

CONDITION = 10
CHANNELS = 1
IMAGE_SIZE = 28
IMAGE_SHAPE = (CHANNELS, IMAGE_SIZE, IMAGE_SIZE)
Z_DIM = 100
IMG_FLAT = int(np.prod(IMAGE_SHAPE))      # 784

IN_FEAT = Z_DIM + CONDITION               # 110
IN_PAD = 128                              # lane-aligned input width
OUT_PAD = 896                             # 7 * 128, lane-aligned output width
BN_EPS = 1e-5
LRELU_SLOPE = 0.2

LAYER_DIMS = ((IN_PAD, 128), (128, 256), (256, 512), (512, 1024), (1024, OUT_PAD))


def _leaky(x):
    return jnp.where(x > 0, x, LRELU_SLOPE * x)


def _batchnorm_train(x, gamma, beta):
    # PyTorch BatchNorm1d in training mode: biased full-batch statistics.
    mean = jnp.mean(x, axis=0, keepdims=True)
    var = jnp.mean((x - mean) * (x - mean), axis=0, keepdims=True)
    return (x - mean) * jax.lax.rsqrt(var + BN_EPS) * gamma + beta


def _bf16_dot(h, w_ref, b_ref):
    # bf16 operands into the MXU, f32 accumulation, f32 bias add.
    return (
        jnp.dot(h.astype(jnp.bfloat16), w_ref[...],
                preferred_element_type=jnp.float32)
        + b_ref[...]
    )


def generator_kernel(
    x_ref,
    w1_ref, b1_ref,
    w2_ref, b2_ref, g2_ref, be2_ref,
    w3_ref, b3_ref, g3_ref, be3_ref,
    w4_ref, b4_ref, g4_ref, be4_ref,
    w5_ref, b5_ref,
    out_ref,
):
    x = x_ref[...]                                           # (B, 128) f32

    # block(110->128, 128, normalized=False): Linear -> LeakyReLU
    h = _leaky(_bf16_dot(x, w1_ref, b1_ref))

    # block(128, 256): Linear -> BatchNorm1d -> LeakyReLU
    h = _leaky(_batchnorm_train(_bf16_dot(h, w2_ref, b2_ref),
                                g2_ref[...], be2_ref[...]))

    # block(256, 512)
    h = _leaky(_batchnorm_train(_bf16_dot(h, w3_ref, b3_ref),
                                g3_ref[...], be3_ref[...]))

    # block(512, 1024)
    h = _leaky(_batchnorm_train(_bf16_dot(h, w4_ref, b4_ref),
                                g4_ref[...], be4_ref[...]))

    # Linear(1024, 784 -> padded 896) -> Tanh  (lane-dense store)
    out_ref[...] = jnp.tanh(_bf16_dot(h, w5_ref, b5_ref))


def init_params(key):
    """Master f32 parameters with the PyTorch module's native shapes."""
    ks = jax.random.split(key, 16)

    def linear(kw, kb, fan_in, fan_out):
        bound = 1.0 / np.sqrt(fan_in)
        w = jax.random.uniform(kw, (fan_in, fan_out), jnp.float32, -bound, bound)
        b = jax.random.uniform(kb, (1, fan_out), jnp.float32, -bound, bound)
        return w, b

    p = {}
    p["emb"] = jax.random.normal(ks[0], (CONDITION, CONDITION), jnp.float32)
    p["w1"], p["b1"] = linear(ks[1], ks[2], IN_FEAT, 128)
    p["w2"], p["b2"] = linear(ks[3], ks[4], 128, 256)
    p["w3"], p["b3"] = linear(ks[5], ks[6], 256, 512)
    p["w4"], p["b4"] = linear(ks[7], ks[8], 512, 1024)
    p["w5"], p["b5"] = linear(ks[9], ks[10], 1024, IMG_FLAT)
    for name, n in (("2", 256), ("3", 512), ("4", 1024)):
        p["g" + name] = jnp.ones((1, n), jnp.float32)
        p["be" + name] = jnp.zeros((1, n), jnp.float32)
    return p


def pack_params(p):
    """Kernel-ready parameters: lane-padded, weights stored in bfloat16."""
    def pad_to(w, rows, cols):
        z = jnp.zeros((rows, cols), jnp.float32)
        return z.at[: w.shape[0], : w.shape[1]].set(w)

    packed = dict(p)  # biases / BN params stay f32, emb stays f32
    packed["w1"] = pad_to(p["w1"], IN_PAD, 128).astype(jnp.bfloat16)    # zero rows for the pad
    packed["w2"] = p["w2"].astype(jnp.bfloat16)
    packed["w3"] = p["w3"].astype(jnp.bfloat16)
    packed["w4"] = p["w4"].astype(jnp.bfloat16)
    packed["w5"] = pad_to(p["w5"], 1024, OUT_PAD).astype(jnp.bfloat16)  # zero cols for the pad
    packed["b5"] = pad_to(p["b5"], 1, OUT_PAD)
    return packed


def generator_forward(noise, labels, packed):
    B = noise.shape[0]

    # Glue: embedding gather + concat + lane-pad to 128 (outside the kernel).
    emb = packed["emb"][labels]                              # (B, CONDITION)
    x = jnp.concatenate([emb, noise], axis=-1)               # (B, 110)
    x = jnp.pad(x, ((0, 0), (0, IN_PAD - IN_FEAT)))          # (B, 128), zero-padded

    kernel_args = (
        x,
        packed["w1"], packed["b1"],
        packed["w2"], packed["b2"], packed["g2"], packed["be2"],
        packed["w3"], packed["b3"], packed["g3"], packed["be3"],
        packed["w4"], packed["b4"], packed["g4"], packed["be4"],
        packed["w5"], packed["b5"],
    )

    flops = 2 * B * sum(k * n for k, n in LAYER_DIMS)
    bytes_accessed = sum(int(a.size) * a.dtype.itemsize for a in kernel_args)
    bytes_accessed += B * OUT_PAD * 4
    cost = pl.CostEstimate(
        flops=flops,
        transcendentals=B * OUT_PAD + (256 + 512 + 1024),     # tanh + BN rsqrt
        bytes_accessed=bytes_accessed,
    )

    # No grid: full batch + all weights in one VMEM block (~3.5 MB) so the
    # train-mode BatchNorm sees full-batch statistics, matching PyTorch.
    out_flat = pl.pallas_call(
        generator_kernel,
        out_shape=jax.ShapeDtypeStruct((B, OUT_PAD), jnp.float32),
        compiler_params=pltpu.CompilerParams(vmem_limit_bytes=16 << 20),
        cost_estimate=cost,
    )(*kernel_args)

    return out_flat[:, :IMG_FLAT].reshape(B, *IMAGE_SHAPE)   # NCHW, matches PyTorch


def reference_forward(noise, labels, params):
    """Pure-JAX f32 reference replicating the PyTorch forward (train-mode BN)."""
    emb = params["emb"][labels]
    x = jnp.concatenate([emb, noise], axis=-1)
    h = _leaky(x @ params["w1"] + params["b1"])
    for i in ("2", "3", "4"):
        h = h @ params["w" + i] + params["b" + i]
        h = _leaky(_batchnorm_train(h, params["g" + i], params["be" + i]))
    h = jnp.tanh(h @ params["w5"] + params["b5"])
    return h.reshape(noise.shape[0], *IMAGE_SHAPE)


if __name__ == "__main__":
    key = jax.random.PRNGKey(0)
    kp, kn, kl = jax.random.split(key, 3)

    B = 8  # BatchNorm in training mode needs batch > 1; 8 = one sublane tile
    master = init_params(kp)
    packed = pack_params(master)
    noise = jax.random.normal(kn, (B, Z_DIM), jnp.float32)
    labels = jax.random.randint(kl, (B,), 0, CONDITION, jnp.int32)

    out = jax.block_until_ready(generator_forward(noise, labels, packed))
    assert out.shape == (B, CHANNELS, IMAGE_SIZE, IMAGE_SIZE), out.shape

    # Validate against the exact f32 PyTorch-semantics reference; tolerance is
    # loosened because the kernel stores weights / feeds the MXU in bfloat16.
    ref = jax.block_until_ready(reference_forward(noise, labels, master))
    np.testing.assert_allclose(np.asarray(out), np.asarray(ref), atol=7.5e-2, rtol=7.5e-2)

    print("KERNEL_OK")
</pallas_src>

<mosaic_0001>
module attributes {stable_mosaic.version = 11 : i64} {
  func.func @generator_kernel(%arg0: memref<8x128xf32, #tpu.memory_space<vmem>>, %arg1: memref<128x128xbf16, #tpu.memory_space<vmem>>, %arg2: memref<1x128xf32, #tpu.memory_space<vmem>>, %arg3: memref<128x256xbf16, #tpu.memory_space<vmem>>, %arg4: memref<1x256xf32, #tpu.memory_space<vmem>>, %arg5: memref<1x256xf32, #tpu.memory_space<vmem>>, %arg6: memref<1x256xf32, #tpu.memory_space<vmem>>, %arg7: memref<256x512xbf16, #tpu.memory_space<vmem>>, %arg8: memref<1x512xf32, #tpu.memory_space<vmem>>, %arg9: memref<1x512xf32, #tpu.memory_space<vmem>>, %arg10: memref<1x512xf32, #tpu.memory_space<vmem>>, %arg11: memref<512x1024xbf16, #tpu.memory_space<vmem>>, %arg12: memref<1x1024xf32, #tpu.memory_space<vmem>>, %arg13: memref<1x1024xf32, #tpu.memory_space<vmem>>, %arg14: memref<1x1024xf32, #tpu.memory_space<vmem>>, %arg15: memref<1024x896xbf16, #tpu.memory_space<vmem>>, %arg16: memref<1x896xf32, #tpu.memory_space<vmem>>, %arg17: memref<8x896xf32, #tpu.memory_space<vmem>>) attributes {dimension_semantics = [], scalar_prefetch = 0 : i64, scratch_operands = 0 : i64, tpu.core_type = #tpu.core_type<tc>} {
    %c0 = arith.constant 0 : index
    %c0_0 = arith.constant 0 : index
    %0 = vector.load %arg0[%c0, %c0_0] : memref<8x128xf32, #tpu.memory_space<vmem>>, vector<8x128xf32>
    %1 = arith.truncf %0 : vector<8x128xf32> to vector<8x128xbf16>
    %c0_1 = arith.constant 0 : index
    %c0_2 = arith.constant 0 : index
    %2 = vector.load %arg1[%c0_1, %c0_2] : memref<128x128xbf16, #tpu.memory_space<vmem>>, vector<128x128xbf16>
    %cst = arith.constant dense<0.000000e+00> : vector<8x128xf32>
    %3 = tpu.matmul %1, %2, %cst {dimension_numbers = #tpu.dot_dimension_numbers<[1], [0], [0], [1], [0, 0, 1, 1], [], []>} : vector<8x128xbf16>, vector<128x128xbf16>, vector<8x128xf32> -> vector<8x128xf32>
    %c0_3 = arith.constant 0 : index
    %c0_4 = arith.constant 0 : index
    %4 = vector.load %arg2[%c0_3, %c0_4] : memref<1x128xf32, #tpu.memory_space<vmem>>, vector<1x128xf32>
    %5 = vector.broadcast %4 : vector<1x128xf32> to vector<8x128xf32>
    %6 = arith.addf %3, %5 : vector<8x128xf32>
    %cst_5 = arith.constant 0.000000e+00 : f32
    %7 = vector.broadcast %cst_5 : f32 to vector<8x128xf32>
    %8 = arith.cmpf ogt, %6, %7 : vector<8x128xf32>
    %cst_6 = arith.constant 2.000000e-01 : f32
    %9 = vector.broadcast %cst_6 : f32 to vector<8x128xf32>
    %10 = arith.mulf %9, %6 : vector<8x128xf32>
    %11 = arith.select %8, %6, %10 : vector<8x128xi1>, vector<8x128xf32>
    %12 = arith.truncf %11 : vector<8x128xf32> to vector<8x128xbf16>
    %c0_7 = arith.constant 0 : index
    %c0_8 = arith.constant 0 : index
    %13 = vector.load %arg3[%c0_7, %c0_8] : memref<128x256xbf16, #tpu.memory_space<vmem>>, vector<128x256xbf16>
    %cst_9 = arith.constant dense<0.000000e+00> : vector<8x256xf32>
    %14 = tpu.matmul %12, %13, %cst_9 {dimension_numbers = #tpu.dot_dimension_numbers<[1], [0], [0], [1], [0, 0, 1, 1], [], []>} : vector<8x128xbf16>, vector<128x256xbf16>, vector<8x256xf32> -> vector<8x256xf32>
    %c0_10 = arith.constant 0 : index
    %c0_11 = arith.constant 0 : index
    %15 = vector.load %arg4[%c0_10, %c0_11] : memref<1x256xf32, #tpu.memory_space<vmem>>, vector<1x256xf32>
    %16 = vector.broadcast %15 : vector<1x256xf32> to vector<8x256xf32>
    %17 = arith.addf %14, %16 : vector<8x256xf32>
    %c0_12 = arith.constant 0 : index
    %c0_13 = arith.constant 0 : index
    %18 = vector.load %arg5[%c0_12, %c0_13] : memref<1x256xf32, #tpu.memory_space<vmem>>, vector<1x256xf32>
    %c0_14 = arith.constant 0 : index
    %c0_15 = arith.constant 0 : index
    %19 = vector.load %arg6[%c0_14, %c0_15] : memref<1x256xf32, #tpu.memory_space<vmem>>, vector<1x256xf32>
    %cst_16 = arith.constant dense<0.000000e+00> : vector<256xf32>
    %20 = vector.multi_reduction <add>, %17, %cst_16 [0] : vector<8x256xf32> to vector<256xf32>
    %21 = vector.shape_cast %20 : vector<256xf32> to vector<1x256xf32>
    %cst_17 = arith.constant 8.000000e+00 : f32
    %22 = vector.broadcast %cst_17 : f32 to vector<1x256xf32>
    %23 = arith.divf %21, %22 : vector<1x256xf32>
    %24 = vector.broadcast %23 : vector<1x256xf32> to vector<8x256xf32>
    %25 = arith.subf %17, %24 : vector<8x256xf32>
    %26 = vector.broadcast %23 : vector<1x256xf32> to vector<8x256xf32>
    %27 = arith.subf %17, %26 : vector<8x256xf32>
    %28 = arith.mulf %25, %27 : vector<8x256xf32>
    %cst_18 = arith.constant dense<0.000000e+00> : vector<256xf32>
    %29 = vector.multi_reduction <add>, %28, %cst_18 [0] : vector<8x256xf32> to vector<256xf32>
    %30 = vector.shape_cast %29 : vector<256xf32> to vector<1x256xf32>
    %cst_19 = arith.constant 8.000000e+00 : f32
    %31 = vector.broadcast %cst_19 : f32 to vector<1x256xf32>
    %32 = arith.divf %30, %31 : vector<1x256xf32>
    %33 = vector.broadcast %23 : vector<1x256xf32> to vector<8x256xf32>
    %34 = arith.subf %17, %33 : vector<8x256xf32>
    %cst_20 = arith.constant 9.99999974E-6 : f32
    %35 = vector.broadcast %cst_20 : f32 to vector<1x256xf32>
    %36 = arith.addf %32, %35 : vector<1x256xf32>
    %37 = math.rsqrt %36 : vector<1x256xf32>
    %38 = vector.broadcast %37 : vector<1x256xf32> to vector<8x256xf32>
    %39 = arith.mulf %34, %38 : vector<8x256xf32>
    %40 = vector.broadcast %18 : vector<1x256xf32> to vector<8x256xf32>
    %41 = arith.mulf %39, %40 : vector<8x256xf32>
    %42 = vector.broadcast %19 : vector<1x256xf32> to vector<8x256xf32>
    %43 = arith.addf %41, %42 : vector<8x256xf32>
    %cst_21 = arith.constant 0.000000e+00 : f32
    %44 = vector.broadcast %cst_21 : f32 to vector<8x256xf32>
    %45 = arith.cmpf ogt, %43, %44 : vector<8x256xf32>
    %cst_22 = arith.constant 2.000000e-01 : f32
    %46 = vector.broadcast %cst_22 : f32 to vector<8x256xf32>
    %47 = arith.mulf %46, %43 : vector<8x256xf32>
    %48 = arith.select %45, %43, %47 : vector<8x256xi1>, vector<8x256xf32>
    %49 = arith.truncf %48 : vector<8x256xf32> to vector<8x256xbf16>
    %c0_23 = arith.constant 0 : index
    %c0_24 = arith.constant 0 : index
    %50 = vector.load %arg7[%c0_23, %c0_24] : memref<256x512xbf16, #tpu.memory_space<vmem>>, vector<256x512xbf16>
    %cst_25 = arith.constant dense<0.000000e+00> : vector<8x512xf32>
    %51 = tpu.matmul %49, %50, %cst_25 {dimension_numbers = #tpu.dot_dimension_numbers<[1], [0], [0], [1], [0, 0, 1, 1], [], []>} : vector<8x256xbf16>, vector<256x512xbf16>, vector<8x512xf32> -> vector<8x512xf32>
    %c0_26 = arith.constant 0 : index
    %c0_27 = arith.constant 0 : index
    %52 = vector.load %arg8[%c0_26, %c0_27] : memref<1x512xf32, #tpu.memory_space<vmem>>, vector<1x512xf32>
    %53 = vector.broadcast %52 : vector<1x512xf32> to vector<8x512xf32>
    %54 = arith.addf %51, %53 : vector<8x512xf32>
    %c0_28 = arith.constant 0 : index
    %c0_29 = arith.constant 0 : index
    %55 = vector.load %arg9[%c0_28, %c0_29] : memref<1x512xf32, #tpu.memory_space<vmem>>, vector<1x512xf32>
    %c0_30 = arith.constant 0 : index
    %c0_31 = arith.constant 0 : index
    %56 = vector.load %arg10[%c0_30, %c0_31] : memref<1x512xf32, #tpu.memory_space<vmem>>, vector<1x512xf32>
    %cst_32 = arith.constant dense<0.000000e+00> : vector<512xf32>
    %57 = vector.multi_reduction <add>, %54, %cst_32 [0] : vector<8x512xf32> to vector<512xf32>
    %58 = vector.shape_cast %57 : vector<512xf32> to vector<1x512xf32>
    %cst_33 = arith.constant 8.000000e+00 : f32
    %59 = vector.broadcast %cst_33 : f32 to vector<1x512xf32>
    %60 = arith.divf %58, %59 : vector<1x512xf32>
    %61 = vector.broadcast %60 : vector<1x512xf32> to vector<8x512xf32>
    %62 = arith.subf %54, %61 : vector<8x512xf32>
    %63 = vector.broadcast %60 : vector<1x512xf32> to vector<8x512xf32>
    %64 = arith.subf %54, %63 : vector<8x512xf32>
    %65 = arith.mulf %62, %64 : vector<8x512xf32>
    %cst_34 = arith.constant dense<0.000000e+00> : vector<512xf32>
    %66 = vector.multi_reduction <add>, %65, %cst_34 [0] : vector<8x512xf32> to vector<512xf32>
    %67 = vector.shape_cast %66 : vector<512xf32> to vector<1x512xf32>
    %cst_35 = arith.constant 8.000000e+00 : f32
    %68 = vector.broadcast %cst_35 : f32 to vector<1x512xf32>
    %69 = arith.divf %67, %68 : vector<1x512xf32>
    %70 = vector.broadcast %60 : vector<1x512xf32> to vector<8x512xf32>
    %71 = arith.subf %54, %70 : vector<8x512xf32>
    %cst_36 = arith.constant 9.99999974E-6 : f32
    %72 = vector.broadcast %cst_36 : f32 to vector<1x512xf32>
    %73 = arith.addf %69, %72 : vector<1x512xf32>
    %74 = math.rsqrt %73 : vector<1x512xf32>
    %75 = vector.broadcast %74 : vector<1x512xf32> to vector<8x512xf32>
    %76 = arith.mulf %71, %75 : vector<8x512xf32>
    %77 = vector.broadcast %55 : vector<1x512xf32> to vector<8x512xf32>
    %78 = arith.mulf %76, %77 : vector<8x512xf32>
    %79 = vector.broadcast %56 : vector<1x512xf32> to vector<8x512xf32>
    %80 = arith.addf %78, %79 : vector<8x512xf32>
    %cst_37 = arith.constant 0.000000e+00 : f32
    %81 = vector.broadcast %cst_37 : f32 to vector<8x512xf32>
    %82 = arith.cmpf ogt, %80, %81 : vector<8x512xf32>
    %cst_38 = arith.constant 2.000000e-01 : f32
    %83 = vector.broadcast %cst_38 : f32 to vector<8x512xf32>
    %84 = arith.mulf %83, %80 : vector<8x512xf32>
    %85 = arith.select %82, %80, %84 : vector<8x512xi1>, vector<8x512xf32>
    %86 = arith.truncf %85 : vector<8x512xf32> to vector<8x512xbf16>
    %c0_39 = arith.constant 0 : index
    %c0_40 = arith.constant 0 : index
    %87 = vector.load %arg11[%c0_39, %c0_40] : memref<512x1024xbf16, #tpu.memory_space<vmem>>, vector<512x1024xbf16>
    %cst_41 = arith.constant dense<0.000000e+00> : vector<8x1024xf32>
    %88 = tpu.matmul %86, %87, %cst_41 {dimension_numbers = #tpu.dot_dimension_numbers<[1], [0], [0], [1], [0, 0, 1, 1], [], []>} : vector<8x512xbf16>, vector<512x1024xbf16>, vector<8x1024xf32> -> vector<8x1024xf32>
    %c0_42 = arith.constant 0 : index
    %c0_43 = arith.constant 0 : index
    %89 = vector.load %arg12[%c0_42, %c0_43] : memref<1x1024xf32, #tpu.memory_space<vmem>>, vector<1x1024xf32>
    %90 = vector.broadcast %89 : vector<1x1024xf32> to vector<8x1024xf32>
    %91 = arith.addf %88, %90 : vector<8x1024xf32>
    %c0_44 = arith.constant 0 : index
    %c0_45 = arith.constant 0 : index
    %92 = vector.load %arg13[%c0_44, %c0_45] : memref<1x1024xf32, #tpu.memory_space<vmem>>, vector<1x1024xf32>
    %c0_46 = arith.constant 0 : index
    %c0_47 = arith.constant 0 : index
    %93 = vector.load %arg14[%c0_46, %c0_47] : memref<1x1024xf32, #tpu.memory_space<vmem>>, vector<1x1024xf32>
    %cst_48 = arith.constant dense<0.000000e+00> : vector<1024xf32>
    %94 = vector.multi_reduction <add>, %91, %cst_48 [0] : vector<8x1024xf32> to vector<1024xf32>
    %95 = vector.shape_cast %94 : vector<1024xf32> to vector<1x1024xf32>
    %cst_49 = arith.constant 8.000000e+00 : f32
    %96 = vector.broadcast %cst_49 : f32 to vector<1x1024xf32>
    %97 = arith.divf %95, %96 : vector<1x1024xf32>
    %98 = vector.broadcast %97 : vector<1x1024xf32> to vector<8x1024xf32>
    %99 = arith.subf %91, %98 : vector<8x1024xf32>
    %100 = vector.broadcast %97 : vector<1x1024xf32> to vector<8x1024xf32>
    %101 = arith.subf %91, %100 : vector<8x1024xf32>
    %102 = arith.mulf %99, %101 : vector<8x1024xf32>
    %cst_50 = arith.constant dense<0.000000e+00> : vector<1024xf32>
    %103 = vector.multi_reduction <add>, %102, %cst_50 [0] : vector<8x1024xf32> to vector<1024xf32>
    %104 = vector.shape_cast %103 : vector<1024xf32> to vector<1x1024xf32>
    %cst_51 = arith.constant 8.000000e+00 : f32
    %105 = vector.broadcast %cst_51 : f32 to vector<1x1024xf32>
    %106 = arith.divf %104, %105 : vector<1x1024xf32>
    %107 = vector.broadcast %97 : vector<1x1024xf32> to vector<8x1024xf32>
    %108 = arith.subf %91, %107 : vector<8x1024xf32>
    %cst_52 = arith.constant 9.99999974E-6 : f32
    %109 = vector.broadcast %cst_52 : f32 to vector<1x1024xf32>
    %110 = arith.addf %106, %109 : vector<1x1024xf32>
    %111 = math.rsqrt %110 : vector<1x1024xf32>
    %112 = vector.broadcast %111 : vector<1x1024xf32> to vector<8x1024xf32>
    %113 = arith.mulf %108, %112 : vector<8x1024xf32>
    %114 = vector.broadcast %92 : vector<1x1024xf32> to vector<8x1024xf32>
    %115 = arith.mulf %113, %114 : vector<8x1024xf32>
    %116 = vector.broadcast %93 : vector<1x1024xf32> to vector<8x1024xf32>
    %117 = arith.addf %115, %116 : vector<8x1024xf32>
    %cst_53 = arith.constant 0.000000e+00 : f32
    %118 = vector.broadcast %cst_53 : f32 to vector<8x1024xf32>
    %119 = arith.cmpf ogt, %117, %118 : vector<8x1024xf32>
    %cst_54 = arith.constant 2.000000e-01 : f32
    %120 = vector.broadcast %cst_54 : f32 to vector<8x1024xf32>
    %121 = arith.mulf %120, %117 : vector<8x1024xf32>
    %122 = arith.select %119, %117, %121 : vector<8x1024xi1>, vector<8x1024xf32>
    %123 = arith.truncf %122 : vector<8x1024xf32> to vector<8x1024xbf16>
    %c0_55 = arith.constant 0 : index
    %c0_56 = arith.constant 0 : index
    %124 = vector.load %arg15[%c0_55, %c0_56] : memref<1024x896xbf16, #tpu.memory_space<vmem>>, vector<1024x896xbf16>
    %cst_57 = arith.constant dense<0.000000e+00> : vector<8x896xf32>
    %125 = tpu.matmul %123, %124, %cst_57 {dimension_numbers = #tpu.dot_dimension_numbers<[1], [0], [0], [1], [0, 0, 1, 1], [], []>} : vector<8x1024xbf16>, vector<1024x896xbf16>, vector<8x896xf32> -> vector<8x896xf32>
    %c0_58 = arith.constant 0 : index
    %c0_59 = arith.constant 0 : index
    %126 = vector.load %arg16[%c0_58, %c0_59] : memref<1x896xf32, #tpu.memory_space<vmem>>, vector<1x896xf32>
    %127 = vector.broadcast %126 : vector<1x896xf32> to vector<8x896xf32>
    %128 = arith.addf %125, %127 : vector<8x896xf32>
    %129 = math.tanh %128 : vector<8x896xf32>
    %c0_60 = arith.constant 0 : index
    %c0_61 = arith.constant 0 : index
    %130 = vector.load %arg17[%c0_60, %c0_61] : memref<8x896xf32, #tpu.memory_space<vmem>>, vector<8x896xf32>
    tpu.vector_store %arg17[%c0_60, %c0_61], %129 {strides = array<i32>} : memref<8x896xf32, #tpu.memory_space<vmem>>, vector<8x896xf32>,
    return
  }
}

</mosaic_0001>

<bundles_post_ra>
// kernel: tpu_custom_call.1
= control target key start
LH: loop header
LB: loop body
LE: loop exit
PB: predicated region body
PF: predicated region fallthrough
CT: control target
= control target key end

     0   :  { %s9853_s0 = inlined_call_operand.hbm [shape: f32[8,128], index: 0, kind: input, shape index: {}]   ;;  %s9854_s1 = inlined_call_operand.hbm [shape: bf16[128,128], index: 1, kind: input, shape index: {}]   ;;  %s9855_s2 = inlined_call_operand.hbm [shape: f32[1,128], index: 2, kind: input, shape index: {}]   ;;  %s9856_s3 = inlined_call_operand.hbm [shape: bf16[128,256], index: 3, kind: input, shape index: {}]   ;;  %s9857_s4 = inlined_call_operand.hbm [shape: f32[1,256], index: 4, kind: input, shape index: {}]   ;;  %s9858_s5 = inlined_call_operand.hbm [shape: f32[1,256], index: 5, kind: input, shape index: {}]   ;;  %s9859_s6 = inlined_call_operand.hbm [shape: f32[1,256], index: 6, kind: input, shape index: {}]   ;;  %s9860_s7 = inlined_call_operand.hbm [shape: bf16[256,512], index: 7, kind: input, shape index: {}]   ;;  %s9861_s8 = inlined_call_operand.hbm [shape: f32[1,512], index: 8, kind: input, shape index: {}]   ;;  %s9862_s9 = inlined_call_operand.hbm [shape: f32[1,512], index: 9, kind: input, shape index: {}]   ;;  %s9863_s10 = inlined_call_operand.hbm [shape: f32[1,512], index: 10, kind: input, shape index: {}]   ;;  %s9864_s11 = inlined_call_operand.hbm [shape: bf16[512,1024], index: 11, kind: input, shape index: {}]   ;;  %s9865_s12 = inlined_call_operand.hbm [shape: f32[1,1024], index: 12, kind: input, shape index: {}]   ;;  %s9866_s13 = inlined_call_operand.hbm [shape: f32[1,1024], index: 13, kind: input, shape index: {}]   ;;  %s9867_s14 = inlined_call_operand.hbm [shape: f32[1,1024], index: 14, kind: input, shape index: {}]   ;;  %s9868_s15 = inlined_call_operand.hbm [shape: bf16[1024,896], index: 15, kind: input, shape index: {}]   ;;  %s9869_s16 = inlined_call_operand.hbm [shape: f32[1,896], index: 16, kind: input, shape index: {}]   ;;  %s9870_s17 = inlined_call_operand.hbm [shape: f32[8,896], index: 17, kind: output, shape index: {}]  }
   0x1   :  { %9874 = sst [smem:[#allocation40_spill]] %s9853_s0 }
   0x2   :  { %9875 = sst [smem:[#allocation41_spill]] %s9854_s1 }
   0x3   :  { %9876 = sst [smem:[#allocation42_spill]] %s9870_s17 }
   0x4   :  { %22 = vsyncpa [#allocation3], 0 }
   0x5   :  { %23 = vsyncpa [#allocation6], 0 }
   0x6   :  { %24 = vsyncpa [#allocation9], 0 }
   0x7   :  { %25 = vsyncpa [#allocation12], 0 }
   0x8   :  { %26 = vsyncpa [#allocation15], 0 }
   0x9   :  { %27 = vsyncpa [#allocation18], 0 }
   0xa   :  { %28 = vsyncpa [#allocation21], 0 }
   0xb   :  { %29 = vsyncpa [#allocation24], 0 }
   0xc   :  { %30 = vsyncpa [#allocation27], 0 }
   0xd   :  { %31 = vsyncpa [#allocation4], 0  ;;  %s9204_s24 = smov [#allocation5]   ;;  %s9877_s28 = sld [smem:[#allocation41_spill]] }
   0xe   :  { %s47_s25 = sshll.u32 %s9204_s24, 4  ;;  %s48_s25 = int_to_ptr.vmem [resolvable:$true] %s47_s25 }
  0x13   :  { %s8788_s29 = scalar_lea.hbm %s9877_s28, 1024 }
  0x14   :  { %p8789_p0 = scmp.ne.s32.totalorder %s9877_s28, %s8788_s29  ;;  %p8792_p1 = scmp.lt.u32.totalorder %s8788_s29, %s9877_s28 }
  0x16   :  { %p8794_p2 = pnand %p8792_p1, %p8789_p0 }
  0x18   :  { %8797 = shalt.err (!%p8794_p2)
}
  0x19   :  { %s8798_s1 = scalar_lea.vmem %s48_s25, 1024  ;;  %p8803_p4 = scmp.lt.s32.totalorder %s48_s25, %s48_s25 }
  0x1a   :  { %p8799_p3 = scmp.ne.s32.totalorder %s48_s25, %s8798_s1  ;;  %p8804_p5 = scmp.lt.s32.totalorder %s8798_s1, %s8798_s1 }
  0x1c   :  { %p8805_p6 = por %p8804_p5, %p8803_p4 }
  0x1e   :  { %p8806_p7 = pnand %p8805_p6, %p8799_p3 }
  0x20   :  { %8809 = shalt.err (!%p8806_p7)
}
  0x21   :  { %s9205_s20 = smov 64   ;;  %s9206_s21 = smov 4  }
  0x22   :  { %53 = dma.hbm_to_vmem [thread:$0]  %s9877_s28, 1024, %s48_s25, [#allocation6], %s9205_s20, %s9205_s20, %s9206_s21  }
  0x23   :  { %s9207_s24 = smov [#allocation8]   ;;  %s8810_s0 = scalar_lea.hbm %s9856_s3, 2048 }
  0x24   :  { %s69_s26 = sshll.u32 %s9207_s24, 4  ;;  %p8811_p8 = scmp.ne.s32.totalorder %s9856_s3, %s8810_s0  ;;  %s70_s26 = int_to_ptr.vmem [resolvable:$true] %s69_s26 }
  0x25   :  { %p8814_p9 = scmp.lt.u32.totalorder %s8810_s0, %s9856_s3 }
  0x27   :  { %p8816_p10 = pnand %p8814_p9, %p8811_p8 }
  0x29   :  { %8819 = shalt.err (!%p8816_p10)
}
  0x2a   :  { %s8820_s17 = scalar_lea.vmem %s70_s26, 2048  ;;  %p8825_p12 = scmp.lt.s32.totalorder %s70_s26, %s70_s26 }
  0x2b   :  { %p8821_p11 = scmp.ne.s32.totalorder %s70_s26, %s8820_s17  ;;  %p8826_p13 = scmp.lt.s32.totalorder %s8820_s17, %s8820_s17 }
  0x2d   :  { %p8827_p0 = por %p8826_p13, %p8825_p12 }
  0x2f   :  { %p8828_p1 = pnand %p8827_p0, %p8821_p11 }
  0x31   :  { %8831 = shalt.err (!%p8828_p1)
}
  0x32   :  { %s9208_s25 = smov 128   ;;  %s9209_s28 = smov 8  }
  0x33   :  { %75 = dma.hbm_to_vmem [thread:$0]  %s9856_s3, 2048, %s70_s26, [#allocation9], %s9208_s25, %s9208_s25, %s9209_s28  }
  0x34   :  { %s9210_s22 = smov [#allocation11]   ;;  %s9211_s24 = smov [#allocation14]  }
  0x35   :  { %s92_s23 = sshll.u32 %s9210_s22, 4  ;;  %s111_s27 = sshll.u32 %s9211_s24, 4  ;;  %s93_s23 = int_to_ptr.vmem [resolvable:$true] %s92_s23  ;;  %s9349_s27 = int_to_ptr.vmem [resolvable:$true] %s111_s27 }
  0x36   :  { %s8832_s17 = scalar_lea.hbm %s9858_s5, 32 }
  0x37   :  { %p8833_p2 = scmp.ne.s32.totalorder %s9858_s5, %s8832_s17  ;;  %p8836_p3 = scmp.lt.u32.totalorder %s8832_s17, %s9858_s5 }
  0x39   :  { %p8838_p4 = pnand %p8836_p3, %p8833_p2 }
  0x3b   :  { %8841 = shalt.err (!%p8838_p4)
}
  0x3c   :  { %s8842_s3 = scalar_lea.vmem %s93_s23, 32  ;;  %p8847_p6 = scmp.lt.s32.totalorder %s93_s23, %s93_s23 }
  0x3d   :  { %p8843_p5 = scmp.ne.s32.totalorder %s93_s23, %s8842_s3  ;;  %p8848_p7 = scmp.lt.s32.totalorder %s8842_s3, %s8842_s3 }
  0x3f   :  { %p8849_p8 = por %p8848_p7, %p8847_p6 }
  0x41   :  { %p8850_p9 = pnand %p8849_p8, %p8843_p5 }
  0x43   :  { %8853 = shalt.err (!%p8850_p9)
}
  0x44   :  { %95 = dma.hbm_to_vmem [thread:$0]  %s9858_s5, 32, %s93_s23, [#allocation12]  }
  0x45   :  { %s8854_s21 = scalar_lea.hbm %s9860_s7, 8192 }
  0x46   :  { %p8855_p10 = scmp.ne.s32.totalorder %s9860_s7, %s8854_s21  ;;  %p8858_p11 = scmp.lt.u32.totalorder %s8854_s21, %s9860_s7 }
  0x48   :  { %p8860_p12 = pnand %p8858_p11, %p8855_p10 }
  0x4a   :  { %8863 = shalt.err (!%p8860_p12)
}
  0x4b   :  { %s8864_s17 = scalar_lea.vmem %s9349_s27, 8192  ;;  %p8869_p0 = scmp.lt.s32.totalorder %s9349_s27, %s9349_s27 }
  0x4c   :  { %p8865_p13 = scmp.ne.s32.totalorder %s9349_s27, %s8864_s17  ;;  %p8870_p1 = scmp.lt.s32.totalorder %s8864_s17, %s8864_s17 }
  0x4e   :  { %p8871_p2 = por %p8870_p1, %p8869_p0 }
  0x50   :  { %p8872_p3 = pnand %p8871_p2, %p8865_p13 }
  0x52   :  { %8875 = shalt.err (!%p8872_p3)
}
  0x53   :  { %s9212_s5 = smov 256   ;;  %s9213_s23 = smov 16  }
  0x54   :  { %117 = dma.hbm_to_vmem [thread:$0]  %s9860_s7, 8192, %s9349_s27, [#allocation15], %s9212_s5, %s9212_s5, %s9213_s23  }
  0x55   :  { %s9214_s19 = smov [#allocation17]   ;;  %s9215_s3 = smov [#allocation20]  }
  0x56   :  { %s134_s1 = sshll.u32 %s9214_s19, 4  ;;  %s153_s26 = sshll.u32 %s9215_s3, 4  ;;  %s135_s1 = int_to_ptr.vmem [resolvable:$true] %s134_s1  ;;  %s9380_s26 = int_to_ptr.vmem [resolvable:$true] %s153_s26 }
  0x57   :  { %s8876_s20 = scalar_lea.hbm %s9862_s9, 64 }
  0x58   :  { %p8877_p4 = scmp.ne.s32.totalorder %s9862_s9, %s8876_s20  ;;  %p8880_p5 = scmp.lt.u32.totalorder %s8876_s20, %s9862_s9 }
  0x5a   :  { %p8882_p6 = pnand %p8880_p5, %p8877_p4 }
  0x5c   :  { %8885 = shalt.err (!%p8882_p6)
}
  0x5d   :  { %s8886_s7 = scalar_lea.vmem %s135_s1, 64  ;;  %p8891_p8 = scmp.lt.s32.totalorder %s135_s1, %s135_s1 }
  0x5e   :  { %p8887_p7 = scmp.ne.s32.totalorder %s135_s1, %s8886_s7  ;;  %p8892_p9 = scmp.lt.s32.totalorder %s8886_s7, %s8886_s7 }
  0x60   :  { %p8893_p10 = por %p8892_p9, %p8891_p8 }
  0x62   :  { %p8894_p11 = pnand %p8893_p10, %p8887_p7 }
  0x64   :  { %8897 = shalt.err (!%p8894_p11)
}
  0x65   :  { %137 = dma.hbm_to_vmem [thread:$0]  %s9862_s9, 64, %s135_s1, [#allocation18]  }
  0x66   :  { %s8898_s23 = scalar_lea.hbm %s9864_s11, 32768 }
  0x67   :  { %p8899_p12 = scmp.ne.s32.totalorder %s9864_s11, %s8898_s23  ;;  %p8902_p13 = scmp.lt.u32.totalorder %s8898_s23, %s9864_s11 }
  0x69   :  { %p8904_p0 = pnand %p8902_p13, %p8899_p12 }
  0x6b   :  { %8907 = shalt.err (!%p8904_p0)
}
  0x6c   :  { %s8908_s25 = scalar_lea.vmem %s9380_s26, 32768  ;;  %p8913_p2 = scmp.lt.s32.totalorder %s9380_s26, %s9380_s26 }
  0x6d   :  { %p8909_p1 = scmp.ne.s32.totalorder %s9380_s26, %s8908_s25  ;;  %p8914_p3 = scmp.lt.s32.totalorder %s8908_s25, %s8908_s25 }
  0x6f   :  { %p8915_p4 = por %p8914_p3, %p8913_p2 }
  0x71   :  { %p8916_p5 = pnand %p8915_p4, %p8909_p1 }
  0x73   :  { %8919 = shalt.err (!%p8916_p5)
}
  0x74   :  { %s9216_s9 = smov 512   ;;  %s9217_s1 = smov 32  }
  0x75   :  { %159 = dma.hbm_to_vmem [thread:$0]  %s9864_s11, 32768, %s9380_s26, [#allocation21], %s9216_s9, %s9216_s9, %s9217_s1  }
  0x76   :  { %s9218_s21 = smov [#allocation23]   ;;  %s9219_s24 = smov [#allocation26]  }
  0x77   :  { %s176_s22 = sshll.u32 %s9218_s21, 4  ;;  %s195_s29 = sshll.u32 %s9219_s24, 4  ;;  %s177_s22 = int_to_ptr.vmem [resolvable:$true] %s176_s22  ;;  %s9411_s29 = int_to_ptr.vmem [resolvable:$true] %s195_s29 }
  0x78   :  { %s8920_s0 = scalar_lea.hbm %s9866_s13, 128 }
  0x79   :  { %p8921_p6 = scmp.ne.s32.totalorder %s9866_s13, %s8920_s0  ;;  %p8924_p7 = scmp.lt.u32.totalorder %s8920_s0, %s9866_s13 }
  0x7b   :  { %p8926_p8 = pnand %p8924_p7, %p8921_p6 }
  0x7d   :  { %8929 = shalt.err (!%p8926_p8)
}
  0x7e   :  { %s8930_s11 = scalar_lea.vmem %s177_s22, 128  ;;  %p8935_p10 = scmp.lt.s32.totalorder %s177_s22, %s177_s22 }
  0x7f   :  { %p8931_p9 = scmp.ne.s32.totalorder %s177_s22, %s8930_s11  ;;  %p8936_p11 = scmp.lt.s32.totalorder %s8930_s11, %s8930_s11 }
  0x81   :  { %p8937_p12 = por %p8936_p11, %p8935_p10 }
  0x83   :  { %p8938_p13 = pnand %p8937_p12, %p8931_p9 }
  0x85   :  { %8941 = shalt.err (!%p8938_p13)
}
  0x86   :  { %179 = dma.hbm_to_vmem [thread:$0]  %s9866_s13, 128, %s177_s22, [#allocation24]  }
  0x87   :  { %s8942_s25 = scalar_lea.hbm %s9868_s15, 57344 }
  0x88   :  { %p8943_p0 = scmp.ne.s32.totalorder %s9868_s15, %s8942_s25  ;;  %p8946_p1 = scmp.lt.u32.totalorder %s8942_s25, %s9868_s15 }
  0x8a   :  { %p8948_p2 = pnand %p8946_p1, %p8943_p0 }
  0x8c   :  { %8951 = shalt.err (!%p8948_p2)
}
  0x8d   :  { %s8952_s21 = scalar_lea.vmem %s9411_s29, 57344  ;;  %p8957_p4 = scmp.lt.s32.totalorder %s9411_s29, %s9411_s29 }
  0x8e   :  { %p8953_p3 = scmp.ne.s32.totalorder %s9411_s29, %s8952_s21  ;;  %p8958_p5 = scmp.lt.s32.totalorder %s8952_s21, %s8952_s21 }
  0x90   :  { %p8959_p6 = por %p8958_p5, %p8957_p4 }
  0x92   :  { %p8960_p7 = pnand %p8959_p6, %p8953_p3 }
  0x94   :  { %8963 = shalt.err (!%p8960_p7)
}
  0x95   :  { %s9220_s13 = smov 448   ;;  %s9221_s22 = smov 28  }
  0x96   :  { %201 = dma.hbm_to_vmem [thread:$0]  %s9868_s15, 57344, %s9411_s29, [#allocation27], %s9220_s13, %s9220_s13, %s9221_s22  }
  0x97   :  { %s9222_s27 = smov [#allocation2]   ;;  %s9223_s17 = smov [#allocation7]  }
  0x98   :  { %s38_s0 = sshll.u32 %s9222_s27, 4  ;;  %s60_s5 = sshll.u32 %s9223_s17, 4  ;;  %s39_s0 = int_to_ptr.vmem [resolvable:$true] %s38_s0  ;;  %s61_s5 = int_to_ptr.vmem [resolvable:$true] %s60_s5 }
  0x99   :  { %s9878_s11 = sld [smem:[#allocation40_spill]] }
  0x9f   :  { %s8964_s26 = scalar_lea.hbm %s9878_s11, 128 }
  0xa0   :  { %p8965_p8 = scmp.ne.s32.totalorder %s9878_s11, %s8964_s26  ;;  %p8968_p9 = scmp.lt.u32.totalorder %s8964_s26, %s9878_s11 }
  0xa2   :  { %p8970_p10 = pnand %p8968_p9, %p8965_p8 }
  0xa4   :  { %8973 = shalt.err (!%p8970_p10)
}
  0xa5   :  { %s8974_s15 = scalar_lea.vmem %s39_s0, 128  ;;  %p8979_p12 = scmp.lt.s32.totalorder %s39_s0, %s39_s0 }
  0xa6   :  { %p8975_p11 = scmp.ne.s32.totalorder %s39_s0, %s8974_s15  ;;  %p8980_p13 = scmp.lt.s32.totalorder %s8974_s15, %s8974_s15 }
  0xa8   :  { %p8981_p0 = por %p8980_p13, %p8979_p12 }
  0xaa   :  { %p8982_p1 = pnand %p8981_p0, %p8975_p11 }
  0xac   :  { %8985 = shalt.err (!%p8982_p1)
}
  0xad   :  { %41 = dma.hbm_to_vmem [thread:$0]  %s9878_s11, 128, %s39_s0, [#allocation3]  }
  0xae   :  { %s8986_s20 = scalar_lea.hbm %s9855_s2, 16 }
  0xaf   :  { %p8987_p2 = scmp.ne.s32.totalorder %s9855_s2, %s8986_s20  ;;  %p8990_p3 = scmp.lt.u32.totalorder %s8986_s20, %s9855_s2 }
  0xb1   :  { %p8992_p4 = pnand %p8990_p3, %p8987_p2 }
  0xb3   :  { %8995 = shalt.err (!%p8992_p4)
}
  0xb4   :  { %s8996_s7 = scalar_lea.vmem %s61_s5, 16  ;;  %s9000_s27 = scalar_lea.vmem %s61_s5, 32 }
  0xb5   :  { %p8997_p5 = scmp.ne.s32.totalorder %s61_s5, %s8996_s7  ;;  %p9001_p6 = scmp.lt.s32.totalorder %s61_s5, %s61_s5 }
  0xb6   :  { %p9002_p7 = scmp.lt.s32.totalorder %s9000_s27, %s8996_s7 }
  0xb8   :  { %p9003_p8 = por %p9002_p7, %p9001_p6 }
  0xba   :  { %p9004_p9 = pnand %p9003_p8, %p8997_p5 }
  0xbc   :  { %9007 = shalt.err (!%p9004_p9)
}
  0xbd   :  { %63 = dma.hbm_to_vmem [thread:$0]  %s9855_s2, 16, %s61_s5, [#allocation6]  }
  0xbe   :  { %s9224_s23 = smov [#allocation10]   ;;  %s9225_s11 = smov [#allocation13]  }
  0xbf   :  { %s82_s30 = sshll.u32 %s9224_s23, 4  ;;  %s102_s26 = sshll.u32 %s9225_s11, 4  ;;  %s83_s30 = int_to_ptr.vmem [resolvable:$true] %s82_s30  ;;  %s103_s26 = int_to_ptr.vmem [resolvable:$true] %s102_s26 }
  0xc0   :  { %s9008_s3 = scalar_lea.hbm %s9857_s4, 32 }
  0xc1   :  { %p9009_p10 = scmp.ne.s32.totalorder %s9857_s4, %s9008_s3  ;;  %p9012_p11 = scmp.lt.u32.totalorder %s9008_s3, %s9857_s4 }
  0xc3   :  { %p9014_p12 = pnand %p9012_p11, %p9009_p10 }
  0xc5   :  { %9017 = shalt.err (!%p9014_p12)
}
  0xc6   :  { %s9018_s2 = scalar_lea.vmem %s83_s30, 32  ;;  %p9023_p0 = scmp.lt.s32.totalorder %s83_s30, %s83_s30 }
  0xc7   :  { %p9019_p13 = scmp.ne.s32.totalorder %s83_s30, %s9018_s2  ;;  %p9024_p1 = scmp.lt.s32.totalorder %s9018_s2, %s9018_s2 }
  0xc9   :  { %p9025_p2 = por %p9024_p1, %p9023_p0 }
  0xcb   :  { %p9026_p3 = pnand %p9025_p2, %p9019_p13 }
  0xcd   :  { %9029 = shalt.err (!%p9026_p3)
}
  0xce   :  { %85 = dma.hbm_to_vmem [thread:$0]  %s9857_s4, 32, %s83_s30, [#allocation9]  }
  0xcf   :  { %s9030_s21 = scalar_lea.hbm %s9859_s6, 32 }
  0xd0   :  { %p9031_p4 = scmp.ne.s32.totalorder %s9859_s6, %s9030_s21  ;;  %p9034_p5 = scmp.lt.u32.totalorder %s9030_s21, %s9859_s6 }
  0xd2   :  { %p9036_p6 = pnand %p9034_p5, %p9031_p4 }
  0xd4   :  { %9039 = shalt.err (!%p9036_p6)
}
  0xd5   :  { %s9040_s27 = scalar_lea.vmem %s103_s26, 32  ;;  %p9045_p8 = scmp.lt.s32.totalorder %s103_s26, %s103_s26 }
  0xd6   :  { %p9041_p7 = scmp.ne.s32.totalorder %s103_s26, %s9040_s27  ;;  %p9046_p9 = scmp.lt.s32.totalorder %s9040_s27, %s9040_s27 }
  0xd8   :  { %p9047_p10 = por %p9046_p9, %p9045_p8 }
  0xda   :  { %p9048_p11 = pnand %p9047_p10, %p9041_p7 }
  0xdc   :  { %9051 = shalt.err (!%p9048_p11)
}
  0xdd   :  { %105 = dma.hbm_to_vmem [thread:$0]  %s9859_s6, 32, %s103_s26, [#allocation12]  }
  0xde   :  { %s9226_s17 = smov [#allocation16]   ;;  %s9227_s30 = smov [#allocation19]  }
  0xdf   :  { %s124_s23 = sshll.u32 %s9226_s17, 4  ;;  %s144_s11 = sshll.u32 %s9227_s30, 4  ;;  %s125_s23 = int_to_ptr.vmem [resolvable:$true] %s124_s23  ;;  %s145_s11 = int_to_ptr.vmem [resolvable:$true] %s144_s11 }
  0xe0   :  { %s9052_s3 = scalar_lea.hbm %s9861_s8, 64 }
  0xe1   :  { %p9053_p12 = scmp.ne.s32.totalorder %s9861_s8, %s9052_s3  ;;  %p9056_p13 = scmp.lt.u32.totalorder %s9052_s3, %s9861_s8 }
  0xe3   :  { %p9058_p0 = pnand %p9056_p13, %p9053_p12 }
  0xe5   :  { %9061 = shalt.err (!%p9058_p0)
}
  0xe6   :  { %s9062_s6 = scalar_lea.vmem %s125_s23, 64  ;;  %p9067_p2 = scmp.lt.s32.totalorder %s125_s23, %s125_s23 }
  0xe7   :  { %p9063_p1 = scmp.ne.s32.totalorder %s125_s23, %s9062_s6  ;;  %p9068_p3 = scmp.lt.s32.totalorder %s9062_s6, %s9062_s6 }
  0xe9   :  { %p9069_p4 = por %p9068_p3, %p9067_p2 }
  0xeb   :  { %p9070_p5 = pnand %p9069_p4, %p9063_p1 }
  0xed   :  { %9073 = shalt.err (!%p9070_p5)
}
  0xee   :  { %127 = dma.hbm_to_vmem [thread:$0]  %s9861_s8, 64, %s125_s23, [#allocation15]  }
  0xef   :  { %s9074_s28 = scalar_lea.hbm %s9863_s10, 64 }
  0xf0   :  { %p9075_p6 = scmp.ne.s32.totalorder %s9863_s10, %s9074_s28  ;;  %p9078_p7 = scmp.lt.u32.totalorder %s9074_s28, %s9863_s10 }
  0xf2   :  { %p9080_p8 = pnand %p9078_p7, %p9075_p6 }
  0xf4   :  { %9083 = shalt.err (!%p9080_p8)
}
  0xf5   :  { %s9084_s24 = scalar_lea.vmem %s145_s11, 64  ;;  %p9089_p10 = scmp.lt.s32.totalorder %s145_s11, %s145_s11 }
  0xf6   :  { %p9085_p9 = scmp.ne.s32.totalorder %s145_s11, %s9084_s24  ;;  %p9090_p11 = scmp.lt.s32.totalorder %s9084_s24, %s9084_s24 }
  0xf8   :  { %p9091_p12 = por %p9090_p11, %p9089_p10 }
  0xfa   :  { %p9092_p13 = pnand %p9091_p12, %p9085_p9 }
  0xfc   :  { %9095 = shalt.err (!%p9092_p13)
}
  0xfd   :  { %147 = dma.hbm_to_vmem [thread:$0]  %s9863_s10, 64, %s145_s11, [#allocation18]  }
  0xfe   :  { %s9228_s27 = smov [#allocation22]   ;;  %s9229_s0 = smov [#allocation25]  }
  0xff   :  { %s166_s4 = sshll.u32 %s9228_s27, 4  ;;  %s186_s17 = sshll.u32 %s9229_s0, 4  ;;  %s167_s4 = int_to_ptr.vmem [resolvable:$true] %s166_s4  ;;  %s187_s17 = int_to_ptr.vmem [resolvable:$true] %s186_s17 }
 0x100   :  { %s9096_s18 = scalar_lea.hbm %s9865_s12, 128 }
 0x101   :  { %p9097_p0 = scmp.ne.s32.totalorder %s9865_s12, %s9096_s18  ;;  %p9100_p1 = scmp.lt.u32.totalorder %s9096_s18, %s9865_s12 }
 0x103   :  { %p9102_p2 = pnand %p9100_p1, %p9097_p0 }
 0x105   :  { %9105 = shalt.err (!%p9102_p2)
}
 0x106   :  { %s9106_s10 = scalar_lea.vmem %s167_s4, 128  ;;  %p9111_p4 = scmp.lt.s32.totalorder %s167_s4, %s167_s4 }
 0x107   :  { %p9107_p3 = scmp.ne.s32.totalorder %s167_s4, %s9106_s10  ;;  %p9112_p5 = scmp.lt.s32.totalorder %s9106_s10, %s9106_s10 }
 0x109   :  { %p9113_p6 = por %p9112_p5, %p9111_p4 }
 0x10b   :  { %p9114_p7 = pnand %p9113_p6, %p9107_p3 }
 0x10d   :  { %9117 = shalt.err (!%p9114_p7)
}
 0x10e   :  { %169 = dma.hbm_to_vmem [thread:$0]  %s9865_s12, 128, %s167_s4, [#allocation21]  }
 0x10f   :  { %s9118_s26 = scalar_lea.hbm %s9867_s14, 128 }
 0x110   :  { %p9119_p8 = scmp.ne.s32.totalorder %s9867_s14, %s9118_s26  ;;  %p9122_p9 = scmp.lt.u32.totalorder %s9118_s26, %s9867_s14 }
 0x112   :  { %p9124_p10 = pnand %p9122_p9, %p9119_p8 }
 0x114   :  { %9127 = shalt.err (!%p9124_p10)
}
 0x115   :  { %s9128_s20 = scalar_lea.vmem %s187_s17, 128  ;;  %p9133_p12 = scmp.lt.s32.totalorder %s187_s17, %s187_s17 }
 0x116   :  { %p9129_p11 = scmp.ne.s32.totalorder %s187_s17, %s9128_s20  ;;  %p9134_p13 = scmp.lt.s32.totalorder %s9128_s20, %s9128_s20 }
 0x118   :  { %p9135_p0 = por %p9134_p13, %p9133_p12 }
 0x11a   :  { %p9136_p1 = pnand %p9135_p0, %p9129_p11 }
 0x11c   :  { %9139 = shalt.err (!%p9136_p1)
}
 0x11d   :  { %189 = dma.hbm_to_vmem [thread:$0]  %s9867_s14, 128, %s187_s17, [#allocation24]  }
 0x11e   :  { %s9230_s13 = smov [#allocation28]   ;;  %s9140_s7 = scalar_lea.hbm %s9869_s16, 112 }
 0x11f   :  { %s208_s22 = sshll.u32 %s9230_s13, 4  ;;  %p9141_p2 = scmp.ne.s32.totalorder %s9869_s16, %s9140_s7  ;;  %s209_s22 = int_to_ptr.vmem [resolvable:$true] %s208_s22 }
 0x120   :  { %p9144_p3 = scmp.lt.u32.totalorder %s9140_s7, %s9869_s16 }
 0x122   :  { %p9146_p4 = pnand %p9144_p3, %p9141_p2 }
 0x124   :  { %9149 = shalt.err (!%p9146_p4)
}
 0x125   :  { %s9150_s30 = scalar_lea.vmem %s209_s22, 112  ;;  %s9154_s14 = scalar_lea.vmem %s209_s22, 128 }
 0x126   :  { %p9151_p5 = scmp.ne.s32.totalorder %s209_s22, %s9150_s30  ;;  %p9155_p6 = scmp.lt.s32.totalorder %s209_s22, %s209_s22 }
 0x127   :  { %p9156_p7 = scmp.lt.s32.totalorder %s9154_s14, %s9150_s30 }
 0x129   :  { %p9157_p8 = por %p9156_p7, %p9155_p6 }
 0x12b   :  { %p9158_p9 = pnand %p9157_p8, %p9151_p5 }
 0x12d   :  { %9161 = shalt.err (!%p9158_p9)
}
 0x12e   :  { %211 = dma.hbm_to_vmem [thread:$0]  %s9869_s16, 112, %s209_s22, [#allocation27]  }
 0x12f   :  { %9184 = dma.done.wait [#allocation3], 128  }
 0x130   :  { %9185 = vsyncadd [#allocation3], 4294967168 }
 0x131   :  { %9186 = dma.done.wait [#allocation6], 1040  }
 0x132   :  { %9187 = vsyncadd [#allocation6], 4294966256 }
 0x133   :  { %9188 = dma.done.wait [#allocation9], 2080  }
 0x134   :  { %9189 = vsyncadd [#allocation9], 4294965216 }
 0x135   :  { %9190 = dma.done.wait [#allocation12], 64  }
 0x136   :  { %9191 = vsyncadd [#allocation12], 4294967232 }
 0x137   :  { %9192 = dma.done.wait [#allocation15], 8256  }
 0x138   :  { %9193 = vsyncadd [#allocation15], 4294959040 }
 0x139   :  { %9194 = dma.done.wait [#allocation18], 128  }
 0x13a   :  { %9195 = vsyncadd [#allocation18], 4294967168 }
 0x13b   :  { %9196 = dma.done.wait [#allocation21], 32896  }
 0x13c   :  { %9197 = vsyncadd [#allocation21], 4294934400 }
 0x13d   :  { %9198 = dma.done.wait [#allocation24], 256  }
 0x13e   :  { %9199 = vsyncadd [#allocation24], 4294967040 }
 0x13f   :  { %9200 = dma.done.wait [#allocation27], 57456  }
 0x140   :  { %9201 = vsyncadd [#allocation27], 4294909840  ;;  %v9231_v0 = vmov 0.0   ;;  %vm9232_vm0 = vmmov 0   ;;  %v7976_v1 = vld [vmem:[#allocation5] sm:$0xff]   ;;  %v7977_v2 = vld [vmem:[#allocation5 + $0x8] sm:$0xff]  }
 0x141   :  { %7859 = vmatprep.subr.bf16.mxu0 %v9231_v0  ;;  %7875 = vmatprep.mubr.msk.bf16.mxu0 %vm9232_vm0, %v9231_v0  ;;  %v7978_v3 = vld [vmem:[#allocation5 + $0x10] sm:$0xff]   ;;  %v7986_v5 = vld [vmem:[#allocation8] ss:$8 sps:$4 sm:$0xff]   ;;  %v7979_v6 = vld [vmem:[#allocation5 + $0x18] sm:$0xff]   ;;  %v9233_v27 = vmov 0   ;;  %s9234_s16 = smov [#allocation29]  }
 0x142   :  { %7860 = vmatpush3.bf16.msra.mxu0 %v7976_v1  ;;  %v7984_v4 = vld [vmem:[#allocation8 + $0x4] ss:$8 sps:$4 sm:$0xff]   ;;  %v7987_v7 = vld [vmem:[#allocation8 + $0x14] ss:$8 sps:$4 sm:$0xff]   ;;  %v7989_v8 = vld [vmem:[#allocation8 + $0x10] ss:$8 sps:$4 sm:$0xff]   ;;  %521 = vmatprep.mubr.bf16.mxu1 %v9233_v27 }
 0x143   :  { %7861 = vmatprep.subr.bf16.mxu0 %v9231_v0  ;;  %489 = vmatprep.subr.bf16.mxu1 %v7984_v4  ;;  %v7990_v9 = vld [vmem:[#allocation8 + $0x24] ss:$8 sps:$4 sm:$0xff]   ;;  %v7992_v12 = vld [vmem:[#allocation8 + $0x20] ss:$8 sps:$4 sm:$0xff]   ;;  %v7993_v13 = vld [vmem:[#allocation8 + $0x34] ss:$8 sps:$4 sm:$0xff]  }
 0x144   :  { %490 = vmatpush1.bf16.msra.mxu1 %v7986_v5  ;;  %v7980_v10 = vld [vmem:[#allocation5 + $0x20] sm:$0xff]   ;;  %v7981_v11 = vld [vmem:[#allocation5 + $0x28] sm:$0xff]   ;;  %v7995_v14 = vld [vmem:[#allocation8 + $0x30] ss:$8 sps:$4 sm:$0xff]   ;;  %s6952_s19 = sshll.u32 %s9234_s16, 4  ;;  %s6953_s19 = int_to_ptr.vmem [resolvable:$true] %s6952_s19 }
 0x145   :  { %491 = vmatprep.subr.bf16.mxu1 %v7987_v7  ;;  %v7996_v15 = vld [vmem:[#allocation8 + $0x44] ss:$8 sps:$4 sm:$0xff]   ;;  %v7998_v17 = vld [vmem:[#allocation8 + $0x40] ss:$8 sps:$4 sm:$0xff]   ;;  %v7999_v18 = vld [vmem:[#allocation8 + $0x54] ss:$8 sps:$4 sm:$0xff]   ;;  %p9167_p11 = scmp.lt.s32.totalorder %s6953_s19, %s6953_s19 }
 0x146   :  { %7862 = vmatpush3.bf16.msra.mxu0 %v7977_v2  ;;  %v7982_v16 = vld [vmem:[#allocation5 + $0x30] sm:$0xff]   ;;  %v7983_v19 = vld [vmem:[#allocation5 + $0x38] sm:$0xff]   ;;  %v8004_v24 = vld [vmem:[#allocation8 + $0x60] ss:$8 sps:$4 sm:$0xff]   ;;  %s9162_s3 = scalar_lea.vmem %s6953_s19, 896 }
 0x147   :  { %7863 = vmatprep.subr.bf16.mxu0 %v9231_v0  ;;  %v264_v20 = vld [vmem:[#allocation2] sm:$0xff]  ;;  %v8002_v23 = vld [vmem:[#allocation8 + $0x64] ss:$8 sps:$4 sm:$0xff]   ;;  %v6969_v29 = vld [vmem:[#allocation7] ss:$0 sm:$0xff]  ;;  %p9163_p10 = scmp.ne.s32.totalorder %s6953_s19, %s9162_s3  ;;  %p9168_p12 = scmp.lt.s32.totalorder %s9162_s3, %s9162_s3 }
 0x148   :  { %492 = vmatpush1.bf16.msra.mxu1 %v7989_v8  ;;  %v8001_v21 = vld [vmem:[#allocation8 + $0x50] ss:$8 sps:$4 sm:$0xff]   ;;  %v265_v22 = vpack.c.bf16 %v264_v20, %v264_v20  ;;  %v8005_v25 = vld [vmem:[#allocation8 + $0x74] ss:$8 sps:$4 sm:$0xff]  }
 0x149   :  { %493 = vmatprep.subr.bf16.mxu1 %v7990_v9  ;;  %v8007_v26 = vld [vmem:[#allocation8 + $0x70] ss:$8 sps:$4 sm:$0xff]   ;;  %v397_v9 = vld [vmem:[#allocation10] sm:$0x3]  ;;  %p9169_p13 = por %p9168_p12, %p9167_p11 }
 0x14a   :  { %7864 = vmatpush3.bf16.msra.mxu0 %v7978_v3  ;;  %v8010_v28 = vld [vmem:[#allocation14 + $0x4] ss:$16 sps:$4 sm:$0xff]   ;;  %v8008_v37 = vld [vmem:[#allocation14] ss:$16 sps:$4 sm:$0xff]   ;;  %v8058_v5 = vld [vmem:[#allocation14 + $0xc] ss:$16 sps:$4 sm:$0xff]  }
 0x14b   :  { %7865 = vmatprep.subr.bf16.mxu0 %v9231_v0  ;;  %v8013_v39 = vld [vmem:[#allocation14 + $0x24] ss:$16 sps:$4 sm:$0xff]   ;;  %v8011_v40 = vld [vmem:[#allocation14 + $0x20] ss:$16 sps:$4 sm:$0xff]   ;;  %p9170_p0 = pnand %p9169_p13, %p9163_p10 }
 0x14c   :  { %494 = vmatpush1.bf16.msra.mxu1 %v7992_v12  ;;  %v8016_v41 = vld [vmem:[#allocation14 + $0x44] ss:$16 sps:$4 sm:$0xff]   ;;  %v8014_v42 = vld [vmem:[#allocation14 + $0x40] ss:$16 sps:$4 sm:$0xff]  }
 0x14d   :  { %495 = vmatprep.subr.bf16.mxu1 %v7993_v13  ;;  %v8019_v43 = vld [vmem:[#allocation14 + $0x64] ss:$16 sps:$4 sm:$0xff]   ;;  %v8017_v44 = vld [vmem:[#allocation14 + $0x60] ss:$16 sps:$4 sm:$0xff]  }
 0x14e   :  { %7866 = vmatpush3.bf16.msra.mxu0 %v7979_v6  ;;  %v8022_v45 = vld [vmem:[#allocation14 + $0x84] ss:$16 sps:$4 sm:$0xff]   ;;  %v8020_v46 = vld [vmem:[#allocation14 + $0x80] ss:$16 sps:$4 sm:$0xff]   ;;  %v399_v6 = vlaneseq }
 0x14f   :  { %7867 = vmatprep.subr.bf16.mxu0 %v9231_v0  ;;  %v8025_v47 = vld [vmem:[#allocation14 + $0xa4] ss:$16 sps:$4 sm:$0xff]   ;;  %v8023_v48 = vld [vmem:[#allocation14 + $0xa0] ss:$16 sps:$4 sm:$0xff]  }
 0x150   :  { %496 = vmatpush1.bf16.msra.mxu1 %v7995_v14  ;;  %v8028_v49 = vld [vmem:[#allocation14 + $0xc4] ss:$16 sps:$4 sm:$0xff]   ;;  %v8026_v50 = vld [vmem:[#allocation14 + $0xc0] ss:$16 sps:$4 sm:$0xff]   ;;  %v9550_v7 = vshrl.u32 %v399_v6, 7 }
 0x151   :  { %497 = vmatprep.subr.bf16.mxu1 %v7996_v15  ;;  %v8031_v51 = vld [vmem:[#allocation14 + $0xe4] ss:$16 sps:$4 sm:$0xff]   ;;  %v8029_v52 = vld [vmem:[#allocation14 + $0xe0] ss:$16 sps:$4 sm:$0xff]  }
 0x152   :  { %7868 = vmatpush3.bf16.msra.mxu0 %v7980_v10  ;;  %v8034_v53 = vld [vmem:[#allocation14 + $0x104] ss:$16 sps:$4 sm:$0xff]   ;;  %v8032_v54 = vld [vmem:[#allocation14 + $0x100] ss:$16 sps:$4 sm:$0xff]   ;;  %v9553_v8 = vsub.s32 0, %v9550_v7  ;;  %v9556_v10 = vsub.s32 1, %v9550_v7 }
 0x153   :  { %7869 = vmatprep.subr.bf16.mxu0 %v9231_v0  ;;  %v8037_v55 = vld [vmem:[#allocation14 + $0x124] ss:$16 sps:$4 sm:$0xff]   ;;  %v8035_v56 = vld [vmem:[#allocation14 + $0x120] ss:$16 sps:$4 sm:$0xff]  }
 0x154   :  { %498 = vmatpush1.bf16.msra.mxu1 %v7998_v17  ;;  %v8040_v57 = vld [vmem:[#allocation14 + $0x144] ss:$16 sps:$4 sm:$0xff]   ;;  %v8038_v58 = vld [vmem:[#allocation14 + $0x140] ss:$16 sps:$4 sm:$0xff]   ;;  %v406_v14 = vrot.slane %v397_v9, %v9556_v10 }
 0x155   :  { %499 = vmatprep.subr.bf16.mxu1 %v7999_v18  ;;  %v8043_v59 = vld [vmem:[#allocation14 + $0x164] ss:$16 sps:$4 sm:$0xff]   ;;  %v8041_v60 = vld [vmem:[#allocation14 + $0x160] ss:$16 sps:$4 sm:$0xff]  }
 0x156   :  { %7870 = vmatpush3.bf16.msra.mxu0 %v7981_v11  ;;  %v8046_v61 = vld [vmem:[#allocation14 + $0x184] ss:$16 sps:$4 sm:$0xff]   ;;  %v8044_v62 = vld [vmem:[#allocation14 + $0x180] ss:$16 sps:$4 sm:$0xff]   ;;  %v402_v11 = vrot.slane %v397_v9, %v9553_v8 }
 0x157   :  { %7871 = vmatprep.subr.bf16.mxu0 %v9231_v0  ;;  %v8049_v63 = vld [vmem:[#allocation14 + $0x1a4] ss:$16 sps:$4 sm:$0xff]   ;;  %v8050_v2 = vld [vmem:[#allocation14 + $0x1c0] ss:$16 sps:$4 sm:$0xff]  }
 0x158   :  { %500 = vmatpush1.bf16.msra.mxu1 %v8001_v21  ;;  %v8052_v1 = vld [vmem:[#allocation14 + $0x1c4] ss:$16 sps:$4 sm:$0xff]   ;;  %v8053_v4 = vld [vmem:[#allocation14 + $0x1e0] ss:$16 sps:$4 sm:$0xff]  }
 0x159   :  { %501 = vmatprep.subr.bf16.mxu1 %v8002_v23  ;;  %v8055_v3 = vld [vmem:[#allocation14 + $0x1e4] ss:$16 sps:$4 sm:$0xff]   ;;  %v1237_v12 = vld [vmem:[#allocation20] sm:$0xff] }
 0x15a   :  { %7872 = vmatpush3.bf16.msra.mxu0 %v7982_v16  ;;  %v1241_v13 = vld [vmem:[#allocation20 + $0x20] sm:$0xff] }
 0x15b   :  { %7873 = vmatprep.subr.bf16.mxu0 %v9231_v0  ;;  %v8047_v0 = vld [vmem:[#allocation14 + $0x1a0] ss:$16 sps:$4 sm:$0xff]   ;;  %v7058_v15 = vcombine.low %v1237_v12, %v1241_v13  ;;  %v7059_v16 = vcombine.high %v1237_v12, %v1241_v13 }
 0x15c   :  { %502 = vmatpush1.bf16.msra.mxu1 %v8004_v24 }
 0x15d   :  { %503 = vmatprep.subr.bf16.mxu1 %v8005_v25 }
 0x15e   :  { %7874 = vmatpush3.bf16.msra.mxu0 %v7983_v19 }
 0x15f   :  { %2815 = vmatprep.subr.bf16.mxu0 %v7059_v16 }
 0x160   :  { %504 = vmatpush1.bf16.msra.mxu1 %v8007_v26 }
 0x161   :  { %7876 = vmatmul.mubr.bf16.vlgmr.msra.gmra.mrb[0].mxu0 %v265_v22  ;;  %1011 = vmatprep.subr.bf16.mxu1 %v8010_v28 }
 0x162   :  { %2816 = vmatpush1.bf16.msra.mxu0 %v7058_v15  ;;  %v8056_v15 = vld [vmem:[#allocation14 + $0x8] ss:$16 sps:$4 sm:$0xff]  }
 0x234   :  { %v371_v30 = vpop.f32.mrb[0].mxu0 }
 0x235   :  { %v372_v31 = vadd.f32 %v6969_v29, %v371_v30  ;;  %v7877_v32 = vpop.f32.mrb[1].mxu0 }
 0x236   :  { %v374_v33 = vpop.f32.mrb[2].mxu0 }
 0x237   :  { %vm377_vm1 = vcmp.gt.f32.partialorder %v372_v31, 0.0  ;;  %v378_v34 = vmul.f32 0.2, %v372_v31  ;;  %v7878_v35 = vpop.f32.mrb[3].mxu0 }
 0x239   :  { %v379_v36 = vsel %vm377_vm1, %v372_v31, %v378_v34 }
 0x23a   :  { %v380_v38 = vpack.c.bf16 %v379_v36, %v379_v36 }
 0x23c   :  { %522 = vmatmul.mubr.bf16.vlgmr.msra.gmra.mrb[0].mxu1 %v380_v38 }
 0x23d   :  { %1012 = vmatpush1.bf16.msra.mxu1 %v8008_v37 }
 0x23e   :  { %1013 = vmatprep.subr.bf16.mxu1 %v8013_v39 }
 0x241   :  { %1014 = vmatpush1.bf16.msra.mxu1 %v8011_v40 }
 0x242   :  { %1015 = vmatprep.subr.bf16.mxu1 %v8016_v41 }
 0x245   :  { %1016 = vmatpush1.bf16.msra.mxu1 %v8014_v42 }
 0x246   :  { %1017 = vmatprep.subr.bf16.mxu1 %v8019_v43 }
 0x249   :  { %1018 = vmatpush1.bf16.msra.mxu1 %v8017_v44 }
 0x24a   :  { %1019 = vmatprep.subr.bf16.mxu1 %v8022_v45 }
 0x24d   :  { %1020 = vmatpush1.bf16.msra.mxu1 %v8020_v46 }
 0x24e   :  { %1021 = vmatprep.subr.bf16.mxu1 %v8025_v47 }
 0x251   :  { %1022 = vmatpush1.bf16.msra.mxu1 %v8023_v48 }
 0x252   :  { %1023 = vmatprep.subr.bf16.mxu1 %v8028_v49 }
 0x255   :  { %1024 = vmatpush1.bf16.msra.mxu1 %v8026_v50 }
 0x256   :  { %1025 = vmatprep.subr.bf16.mxu1 %v8031_v51 }
 0x259   :  { %1026 = vmatpush1.bf16.msra.mxu1 %v8029_v52 }
 0x25a   :  { %1027 = vmatprep.subr.bf16.mxu1 %v8034_v53 }
 0x25d   :  { %1028 = vmatpush1.bf16.msra.mxu1 %v8032_v54 }
 0x25e   :  { %1029 = vmatprep.subr.bf16.mxu1 %v8037_v55 }
 0x261   :  { %1030 = vmatpush1.bf16.msra.mxu1 %v8035_v56 }
 0x262   :  { %1031 = vmatprep.subr.bf16.mxu1 %v8040_v57  ;;  %v530_v57 = vld [vmem:[#allocation11] sm:$0x3] }
 0x265   :  { %1032 = vmatpush1.bf16.msra.mxu1 %v8038_v58  ;;  %v531_v58 = vld [vmem:[#allocation13] sm:$0x3] }
 0x266   :  { %1033 = vmatprep.subr.bf16.mxu1 %v8043_v59  ;;  %v575_v59 = vrot.slane %v530_v57, %v9553_v8 }
 0x269   :  { %1034 = vmatpush1.bf16.msra.mxu1 %v8041_v60 }
 0x26a   :  { %1035 = vmatprep.subr.bf16.mxu1 %v8046_v61  ;;  %v579_v61 = vrot.slane %v530_v57, %v9556_v10 }
 0x26d   :  { %1036 = vmatpush1.bf16.msra.mxu1 %v8044_v62 }
 0x26e   :  { %1037 = vmatprep.subr.bf16.mxu1 %v8049_v63 }
 0x271   :  { %1038 = vmatpush1.bf16.msra.mxu1 %v8047_v0  ;;  %v588_v0 = vrot.slane %v531_v58, %v9553_v8 }
 0x272   :  { %1039 = vmatprep.subr.bf16.mxu1 %v8052_v1 }
 0x275   :  { %1040 = vmatpush1.bf16.msra.mxu1 %v8050_v2  ;;  %v592_v2 = vrot.slane %v531_v58, %v9556_v10 }
 0x276   :  { %1041 = vmatprep.subr.bf16.mxu1 %v8055_v3 }
 0x279   :  { %1042 = vmatpush1.bf16.msra.mxu1 %v8053_v4 }
 0x27a   :  { %1052 = vmatprep.subr.bf16.mxu1 %v8058_v5 }
 0x30f   :  { %v523_v17 = vpop.f32.mrb[0].mxu1 }
 0x310   :  { %v524_v18 = vadd.f32 %v523_v17, %v402_v11  ;;  %v525_v19 = vpop.f32.mrb[1].mxu1  ;;  %v8061_v17 = vld [vmem:[#allocation14 + $0x2c] ss:$16 sps:$4 sm:$0xff]  }
 0x311   :  { %v526_v20 = vadd.f32 %v525_v19, %v406_v14  ;;  %v527_v21 = vpop.f32.mrb[2].mxu1  ;;  %v8064_v19 = vld [vmem:[#allocation14 + $0x4c] ss:$16 sps:$4 sm:$0xff]  }
 0x312   :  { %v532_v22 = vrot.slane %v524_v18, 4  ;;  %v528_v23 = vpop.f32.mrb[3].mxu1  ;;  %v8067_v21 = vld [vmem:[#allocation14 + $0x6c] ss:$16 sps:$4 sm:$0xff]  }
 0x313   :  { %v538_v24 = vrot.slane %v526_v20, 4  ;;  %v8070_v23 = vld [vmem:[#allocation14 + $0x8c] ss:$16 sps:$4 sm:$0xff]  }
 0x314   :  { %v533_v25 = vadd.f32 %v532_v22, %v524_v18  ;;  %v8065_v22 = vld [vmem:[#allocation14 + $0x68] ss:$16 sps:$4 sm:$0xff]  }
 0x315   :  { %v539_v26 = vadd.f32 %v538_v24, %v526_v20  ;;  %v8068_v24 = vld [vmem:[#allocation14 + $0x88] ss:$16 sps:$4 sm:$0xff]  }
 0x316   :  { %v534_v27 = vrot.slane %v533_v25, 2 }
 0x317   :  { %v540_v28 = vrot.slane %v539_v26, 2 }
 0x318   :  { %v535_v29 = vadd.f32 %v534_v27, %v533_v25  ;;  %v8073_v25 = vld [vmem:[#allocation14 + $0xac] ss:$16 sps:$4 sm:$0xff]  }
 0x319   :  { %v541_v30 = vadd.f32 %v540_v28, %v539_v26  ;;  %v8071_v26 = vld [vmem:[#allocation14 + $0xa8] ss:$16 sps:$4 sm:$0xff]   ;;  %v8076_v27 = vld [vmem:[#allocation14 + $0xcc] ss:$16 sps:$4 sm:$0xff]  }
 0x31a   :  { %v536_v31 = vrot.slane %v535_v29, 1  ;;  %v8074_v28 = vld [vmem:[#allocation14 + $0xc8] ss:$16 sps:$4 sm:$0xff]  }
 0x31b   :  { %v542_v32 = vrot.slane %v541_v30, 1 }
 0x31c   :  { %v537_v33 = vadd.f32 %v536_v31, %v535_v29  ;;  %v8079_v29 = vld [vmem:[#allocation14 + $0xec] ss:$16 sps:$4 sm:$0xff]  }
 0x31d   :  { %v543_v34 = vadd.f32 %v542_v32, %v541_v30  ;;  %v8077_v30 = vld [vmem:[#allocation14 + $0xe8] ss:$16 sps:$4 sm:$0xff]   ;;  %v8082_v31 = vld [vmem:[#allocation14 + $0x10c] ss:$16 sps:$4 sm:$0xff]  }
 0x31e   :  { %v545_v35 = vmul.f32 0.125, %v537_v33  ;;  %v8080_v32 = vld [vmem:[#allocation14 + $0x108] ss:$16 sps:$4 sm:$0xff]   ;;  %v8085_v33 = vld [vmem:[#allocation14 + $0x12c] ss:$16 sps:$4 sm:$0xff]  }
 0x31f   :  { %v546_v36 = vmul.f32 0.125, %v543_v34  ;;  %v8083_v34 = vld [vmem:[#allocation14 + $0x128] ss:$16 sps:$4 sm:$0xff]  }
 0x320   :  { %v547_v37 = vsub.f32 %v524_v18, %v545_v35  ;;  %v8059_v18 = vld [vmem:[#allocation14 + $0x28] ss:$16 sps:$4 sm:$0xff]   ;;  %v8088_v35 = vld [vmem:[#allocation14 + $0x14c] ss:$16 sps:$4 sm:$0xff]  }
 0x321   :  { %v548_v38 = vsub.f32 %v526_v20, %v546_v36  ;;  %v8062_v20 = vld [vmem:[#allocation14 + $0x48] ss:$16 sps:$4 sm:$0xff]  }
 0x322   :  { %v549_v39 = vmul.f32 %v547_v37, %v547_v37  ;;  %v8086_v36 = vld [vmem:[#allocation14 + $0x148] ss:$16 sps:$4 sm:$0xff]  }
 0x323   :  { %v550_v40 = vmul.f32 %v548_v38, %v548_v38 }
 0x324   :  { %v551_v41 = vrot.slane %v549_v39, 4 }
 0x325   :  { %v557_v42 = vrot.slane %v550_v40, 4 }
 0x326   :  { %v552_v43 = vadd.f32 %v551_v41, %v549_v39  ;;  %v8094_v39 = vld [vmem:[#allocation14 + $0x18c] ss:$16 sps:$4 sm:$0xff]  }
 0x327   :  { %v558_v44 = vadd.f32 %v557_v42, %v550_v40  ;;  %v8092_v40 = vld [vmem:[#allocation14 + $0x188] ss:$16 sps:$4 sm:$0xff]   ;;  %v8097_v41 = vld [vmem:[#allocation14 + $0x1ac] ss:$16 sps:$4 sm:$0xff]  }
 0x328   :  { %v553_v45 = vrot.slane %v552_v43, 2  ;;  %v8095_v42 = vld [vmem:[#allocation14 + $0x1a8] ss:$16 sps:$4 sm:$0xff]  }
 0x329   :  { %v559_v46 = vrot.slane %v558_v44, 2 }
 0x32a   :  { %v554_v47 = vadd.f32 %v553_v45, %v552_v43  ;;  %v8100_v43 = vld [vmem:[#allocation14 + $0x1cc] ss:$16 sps:$4 sm:$0xff]  }
 0x32b   :  { %v560_v48 = vadd.f32 %v559_v46, %v558_v44  ;;  %v8098_v44 = vld [vmem:[#allocation14 + $0x1c8] ss:$16 sps:$4 sm:$0xff]   ;;  %v8103_v45 = vld [vmem:[#allocation14 + $0x1ec] ss:$16 sps:$4 sm:$0xff]  }
 0x32c   :  { %v555_v49 = vrot.slane %v554_v47, 1  ;;  %v1238_v46 = vld [vmem:[#allocation20 + $0x8] sm:$0xff] }
 0x32d   :  { %v561_v50 = vrot.slane %v560_v48, 1 }
 0x32e   :  { %v556_v51 = vadd.f32 %v555_v49, %v554_v47  ;;  %v1242_v47 = vld [vmem:[#allocation20 + $0x28] sm:$0xff] }
 0x32f   :  { %v562_v52 = vadd.f32 %v561_v50, %v560_v48  ;;  %v8101_v48 = vld [vmem:[#allocation14 + $0x1e8] ss:$16 sps:$4 sm:$0xff]   ;;  %v7061_v49 = vcombine.high %v1238_v46, %v1242_v47  ;;  %v7060_v50 = vcombine.low %v1238_v46, %v1242_v47  ;;  %v1301_v46 = vld [vmem:[#allocation20 + $0x200] sm:$0xff] }
 0x330   :  { %v563_v53 = vmul.f32 0.125, %v556_v51  ;;  %v1245_v51 = vld [vmem:[#allocation20 + $0x40] sm:$0xff] }
 0x331   :  { %v564_v54 = vmul.f32 0.125, %v562_v52  ;;  %v1249_v52 = vld [vmem:[#allocation20 + $0x60] sm:$0xff] }
 0x332   :  { %v565_v55 = vadd.f32 1e-05, %v563_v53  ;;  %v1246_v53 = vld [vmem:[#allocation20 + $0x48] sm:$0xff]  ;;  %v1305_v47 = vld [vmem:[#allocation20 + $0x220] sm:$0xff] }
 0x333   :  { %v566_v56 = vadd.f32 1e-05, %v564_v54  ;;  %v7067_v54 = vcombine.high %v1245_v51, %v1249_v52 }
 0x334   :  { %8744 = vrsqrt.f32 %v565_v55  ;;  %v1250_v55 = vld [vmem:[#allocation20 + $0x68] sm:$0xff] }
 0x335   :  { %8746 = vrsqrt.f32 %v566_v56  ;;  %v7066_v56 = vcombine.low %v1245_v51, %v1249_v52  ;;  %v7068_v57 = vcombine.low %v1246_v53, %v1250_v55  ;;  %v7069_v58 = vcombine.high %v1246_v53, %v1250_v55  ;;  %2817 = vmatprep.subr.bf16.mxu0 %v7067_v54  ;;  %v1309_v54 = vld [vmem:[#allocation20 + $0x240] sm:$0xff] }
 0x336   :  { %v7122_v51 = vcombine.low %v1301_v46, %v1305_v47  ;;  %v1313_v55 = vld [vmem:[#allocation20 + $0x260] sm:$0xff] }
 0x337   :  { %2818 = vmatpush1.bf16.msra.mxu0 %v7066_v56  ;;  %v1310_v56 = vld [vmem:[#allocation20 + $0x248] sm:$0xff] }
 0x33e   :  { %v8745_v60 = vpop.eup %8744 }
 0x33f   :  { %v8747_v62 = vpop.eup %8746  ;;  %v569_v63 = vmul.f32 %v8745_v60, %v547_v37  ;;  %v8091_v37 = vld [vmem:[#allocation14 + $0x16c] ss:$16 sps:$4 sm:$0xff]  }
 0x340   :  { %v570_v1 = vmul.f32 %v8747_v62, %v548_v38  ;;  %v8089_v38 = vld [vmem:[#allocation14 + $0x168] ss:$16 sps:$4 sm:$0xff]   ;;  %v1257_v60 = vld [vmem:[#allocation20 + $0xa0] sm:$0xff] }
 0x341   :  { %v582_v3 = vmul.f32 %v575_v59, %v569_v63  ;;  %v1253_v59 = vld [vmem:[#allocation20 + $0x80] sm:$0xff]  ;;  %v1258_v63 = vld [vmem:[#allocation20 + $0xa8] sm:$0xff] }
 0x342   :  { %v583_v4 = vmul.f32 %v579_v61, %v570_v1  ;;  %v1254_v61 = vld [vmem:[#allocation20 + $0x88] sm:$0xff]  ;;  %v7075_v62 = vcombine.high %v1253_v59, %v1257_v60 }
 0x343   :  { %v595_v5 = vadd.f32 %v588_v0, %v582_v3  ;;  %v7074_v0 = vcombine.low %v1253_v59, %v1257_v60  ;;  %v7076_v1 = vcombine.low %v1254_v61, %v1258_v63  ;;  %v1261_v3 = vld [vmem:[#allocation20 + $0xc0] sm:$0xff]  ;;  %v7130_v59 = vcombine.low %v1309_v54, %v1313_v55 }
 0x344   :  { %v596_v6 = vadd.f32 %v592_v2, %v583_v4  ;;  %v7077_v2 = vcombine.high %v1254_v61, %v1258_v63  ;;  %2819 = vmatprep.subr.bf16.mxu0 %v7075_v62  ;;  %v1265_v4 = vld [vmem:[#allocation20 + $0xe0] sm:$0xff] }
 0x345   :  { %vm597_vm2 = vcmp.gt.f32.partialorder %v595_v5, 0.0  ;;  %v599_v9 = vmul.f32 0.2, %v595_v5  ;;  %2820 = vmatpush1.bf16.msra.mxu0 %v7074_v0  ;;  %v1317_v62 = vld [vmem:[#allocation20 + $0x280] sm:$0xff]  ;;  %v1318_v0 = vld [vmem:[#allocation20 + $0x288] sm:$0xff] }
 0x346   :  { %vm598_vm3 = vcmp.gt.f32.partialorder %v596_v6, 0.0  ;;  %v600_v11 = vmul.f32 0.2, %v596_v6  ;;  %v1321_v63 = vld [vmem:[#allocation20 + $0x2a0] sm:$0xff] }
 0x347   :  { %v601_v12 = vsel %vm597_vm2, %v595_v5, %v599_v9  ;;  %v1262_v5 = vld [vmem:[#allocation20 + $0xc8] sm:$0xff] }
 0x348   :  { %v602_v13 = vsel %vm598_vm3, %v596_v6, %v600_v11  ;;  %v9564_v16 = vpack.c.bf16 %v601_v12, %v601_v12  ;;  %v7083_v6 = vcombine.high %v1261_v3, %v1265_v4  ;;  %v1266_v9 = vld [vmem:[#allocation20 + $0xe8] sm:$0xff]  ;;  %v7082_v11 = vcombine.low %v1261_v3, %v1265_v4 }
 0x349   :  { %v604_v14 = vpack.c.bf16 %v602_v13, %v602_v13  ;;  %v7084_v12 = vcombine.low %v1262_v5, %v1266_v9  ;;  %v7085_v13 = vcombine.high %v1262_v5, %v1266_v9  ;;  %v7138_v3 = vcombine.low %v1317_v62, %v1321_v63  ;;  %v1329_v9 = vld [vmem:[#allocation20 + $0x2e0] sm:$0xff] }
 0x34a   :  { %2821 = vmatprep.subr.bf16.mxu0 %v7083_v6  ;;  %v1325_v6 = vld [vmem:[#allocation20 + $0x2c0] sm:$0xff] }
 0x34b   :  { %1043 = vmatprep.mubr.bf16.mxu1 %v604_v14  ;;  %2822 = vmatpush1.bf16.msra.mxu0 %v7082_v11  ;;  %v1326_v11 = vld [vmem:[#allocation20 + $0x2c8] sm:$0xff] }
 0x34c   :  { %1044 = vmatmul.mubr.bf16.vlgmr.msra.gmra.mrb[4].mxu1 %v9564_v16 }
 0x34d   :  { %1053 = vmatpush1.bf16.msra.mxu1 %v8056_v15  ;;  %1084 = vmatprep.mubr.bf16.mxu1 %v604_v14  ;;  %v1269_v14 = vld [vmem:[#allocation20 + $0x100] sm:$0xff] }
 0x34e   :  { %1054 = vmatprep.subr.bf16.mxu1 %v8061_v17  ;;  %v1273_v15 = vld [vmem:[#allocation20 + $0x120] sm:$0xff] }
 0x34f   :  { %v7091_v17 = vcombine.high %v1269_v14, %v1273_v15 }
 0x351   :  { %1055 = vmatpush1.bf16.msra.mxu1 %v8059_v18  ;;  %v1274_v18 = vld [vmem:[#allocation20 + $0x128] sm:$0xff]  ;;  %2823 = vmatprep.subr.bf16.mxu0 %v7091_v17  ;;  %v1333_v17 = vld [vmem:[#allocation20 + $0x300] sm:$0xff] }
 0x352   :  { %1056 = vmatprep.subr.bf16.mxu1 %v8064_v19  ;;  %v7090_v19 = vcombine.low %v1269_v14, %v1273_v15  ;;  %v7146_v14 = vcombine.low %v1325_v6, %v1329_v9 }
 0x354   :  { %2824 = vmatpush1.bf16.msra.mxu0 %v7090_v19  ;;  %v1334_v19 = vld [vmem:[#allocation20 + $0x308] sm:$0xff] }
 0x355   :  { %1057 = vmatpush1.bf16.msra.mxu1 %v8062_v20 }
 0x356   :  { %1058 = vmatprep.subr.bf16.mxu1 %v8067_v21 }
 0x359   :  { %1059 = vmatpush1.bf16.msra.mxu1 %v8065_v22  ;;  %v1277_v22 = vld [vmem:[#allocation20 + $0x140] sm:$0xff] }
 0x35a   :  { %1060 = vmatprep.subr.bf16.mxu1 %v8070_v23  ;;  %v1281_v23 = vld [vmem:[#allocation20 + $0x160] sm:$0xff] }
 0x35d   :  { %1061 = vmatpush1.bf16.msra.mxu1 %v8068_v24  ;;  %v1278_v24 = vld [vmem:[#allocation20 + $0x148] sm:$0xff] }
 0x35e   :  { %1062 = vmatprep.subr.bf16.mxu1 %v8073_v25  ;;  %v7099_v25 = vcombine.high %v1277_v22, %v1281_v23 }
 0x360   :  { %2825 = vmatprep.subr.bf16.mxu0 %v7099_v25  ;;  %v1341_v25 = vld [vmem:[#allocation20 + $0x340] sm:$0xff] }
 0x361   :  { %1063 = vmatpush1.bf16.msra.mxu1 %v8071_v26  ;;  %v1282_v26 = vld [vmem:[#allocation20 + $0x168] sm:$0xff] }
 0x362   :  { %1064 = vmatprep.subr.bf16.mxu1 %v8076_v27  ;;  %v7098_v27 = vcombine.low %v1277_v22, %v1281_v23 }
 0x364   :  { %2826 = vmatpush1.bf16.msra.mxu0 %v7098_v27  ;;  %v1342_v27 = vld [vmem:[#allocation20 + $0x348] sm:$0xff] }
 0x365   :  { %1065 = vmatpush1.bf16.msra.mxu1 %v8074_v28  ;;  %v7100_v28 = vcombine.low %v1278_v24, %v1282_v26 }
 0x366   :  { %1066 = vmatprep.subr.bf16.mxu1 %v8079_v29  ;;  %v7101_v29 = vcombine.high %v1278_v24, %v1282_v26  ;;  %v1345_v26 = vld [vmem:[#allocation20 + $0x360] sm:$0xff] }
 0x369   :  { %1067 = vmatpush1.bf16.msra.mxu1 %v8077_v30  ;;  %v1285_v30 = vld [vmem:[#allocation20 + $0x180] sm:$0xff] }
 0x36a   :  { %1068 = vmatprep.subr.bf16.mxu1 %v8082_v31  ;;  %v1289_v31 = vld [vmem:[#allocation20 + $0x1a0] sm:$0xff] }
 0x36d   :  { %1069 = vmatpush1.bf16.msra.mxu1 %v8080_v32  ;;  %v1286_v32 = vld [vmem:[#allocation20 + $0x188] sm:$0xff] }
 0x36e   :  { %1070 = vmatprep.subr.bf16.mxu1 %v8085_v33  ;;  %v7107_v33 = vcombine.high %v1285_v30, %v1289_v31 }
 0x370   :  { %2827 = vmatprep.subr.bf16.mxu0 %v7107_v33  ;;  %v1349_v33 = vld [vmem:[#allocation20 + $0x380] sm:$0xff] }
 0x371   :  { %1071 = vmatpush1.bf16.msra.mxu1 %v8083_v34  ;;  %v1290_v34 = vld [vmem:[#allocation20 + $0x1a8] sm:$0xff] }
 0x372   :  { %1072 = vmatprep.subr.bf16.mxu1 %v8088_v35  ;;  %v7106_v35 = vcombine.low %v1285_v30, %v1289_v31  ;;  %v7162_v30 = vcombine.low %v1341_v25, %v1345_v26 }
 0x374   :  { %2828 = vmatpush1.bf16.msra.mxu0 %v7106_v35  ;;  %v1350_v35 = vld [vmem:[#allocation20 + $0x388] sm:$0xff] }
 0x375   :  { %1073 = vmatpush1.bf16.msra.mxu1 %v8086_v36  ;;  %v7108_v36 = vcombine.low %v1286_v32, %v1290_v34 }
 0x376   :  { %1074 = vmatprep.subr.bf16.mxu1 %v8091_v37  ;;  %v7109_v37 = vcombine.high %v1286_v32, %v1290_v34  ;;  %v1353_v34 = vld [vmem:[#allocation20 + $0x3a0] sm:$0xff] }
 0x379   :  { %1075 = vmatpush1.bf16.msra.mxu1 %v8089_v38  ;;  %v1293_v38 = vld [vmem:[#allocation20 + $0x1c0] sm:$0xff] }
 0x37a   :  { %1076 = vmatprep.subr.bf16.mxu1 %v8094_v39  ;;  %v1297_v39 = vld [vmem:[#allocation20 + $0x1e0] sm:$0xff] }
 0x37d   :  { %1077 = vmatpush1.bf16.msra.mxu1 %v8092_v40  ;;  %v1294_v40 = vld [vmem:[#allocation20 + $0x1c8] sm:$0xff] }
 0x37e   :  { %1078 = vmatprep.subr.bf16.mxu1 %v8097_v41  ;;  %v7115_v41 = vcombine.high %v1293_v38, %v1297_v39 }
 0x380   :  { %2829 = vmatprep.subr.bf16.mxu0 %v7115_v41  ;;  %v1357_v41 = vld [vmem:[#allocation20 + $0x3c0] sm:$0xff] }
 0x381   :  { %1079 = vmatpush1.bf16.msra.mxu1 %v8095_v42  ;;  %v1298_v42 = vld [vmem:[#allocation20 + $0x1e8] sm:$0xff] }
 0x382   :  { %1080 = vmatprep.subr.bf16.mxu1 %v8100_v43  ;;  %v7114_v43 = vcombine.low %v1293_v38, %v1297_v39  ;;  %v7170_v38 = vcombine.low %v1349_v33, %v1353_v34 }
 0x384   :  { %2830 = vmatpush1.bf16.msra.mxu0 %v7114_v43  ;;  %v1358_v43 = vld [vmem:[#allocation20 + $0x3c8] sm:$0xff] }
 0x385   :  { %1081 = vmatpush1.bf16.msra.mxu1 %v8098_v44  ;;  %v7116_v44 = vcombine.low %v1294_v40, %v1298_v42 }
 0x386   :  { %1082 = vmatprep.subr.bf16.mxu1 %v8103_v45  ;;  %v7117_v45 = vcombine.high %v1294_v40, %v1298_v42  ;;  %v1361_v42 = vld [vmem:[#allocation20 + $0x3e0] sm:$0xff] }
 0x389   :  { %1083 = vmatpush1.bf16.msra.mxu1 %v8101_v48  ;;  %v1302_v48 = vld [vmem:[#allocation20 + $0x208] sm:$0xff] }
 0x38a   :  { %2897 = vmatprep.subr.bf16.mxu1 %v7061_v49  ;;  %v7123_v49 = vcombine.high %v1301_v46, %v1305_v47  ;;  %v1362_v46 = vld [vmem:[#allocation20 + $0x3e8] sm:$0xff] }
 0x38b   :  { %v7180_v47 = vcombine.low %v1358_v43, %v1362_v46 }
 0x38c   :  { %1085 = vmatmul.mubr.bf16.vlgmr.msra.gmra.mrb[8].mxu1 %v9564_v16  ;;  %v1270_v16 = vld [vmem:[#allocation20 + $0x108] sm:$0xff]  ;;  %2831 = vmatprep.subr.bf16.mxu0 %v7123_v49  ;;  %v9568_v49 = vld [vmem:[#allocation20 + $0x400] sm:$0xff] }
 0x38d   :  { %2898 = vmatpush1.bf16.msra.mxu1 %v7060_v50  ;;  %v7092_v20 = vcombine.low %v1270_v16, %v1274_v18  ;;  %v7093_v21 = vcombine.high %v1270_v16, %v1274_v18  ;;  %v1306_v50 = vld [vmem:[#allocation20 + $0x228] sm:$0xff]  ;;  %2832 = vmatpush1.bf16.msra.mxu0 %v7122_v51  ;;  %v1337_v18 = vld [vmem:[#allocation20 + $0x320] sm:$0xff] }
 0x38e   :  { %2899 = vmatprep.subr.bf16.mxu1 %v7069_v58  ;;  %v7124_v52 = vcombine.low %v1302_v48, %v1306_v50  ;;  %v7125_v53 = vcombine.high %v1302_v48, %v1306_v50  ;;  %v1314_v58 = vld [vmem:[#allocation20 + $0x268] sm:$0xff]  ;;  %v7154_v22 = vcombine.low %v1333_v17, %v1337_v18  ;;  %v7181_v48 = vcombine.high %v1358_v43, %v1362_v46  ;;  %v9570_v50 = vld [vmem:[#allocation20 + $0x420] sm:$0xff] }
 0x38f   :  { %v7132_v60 = vcombine.low %v1310_v56, %v1314_v58  ;;  %v7133_v61 = vcombine.high %v1310_v56, %v1314_v58  ;;  %v9572_v51 = vld [vmem:[#allocation20 + $0x408] sm:$0xff] }
 0x391   :  { %2900 = vmatpush1.bf16.msra.mxu1 %v7068_v57  ;;  %v7131_v57 = vcombine.high %v1309_v54, %v1313_v55  ;;  %v7186_v54 = vcombine.low %v9568_v49, %v9570_v50 }
 0x392   :  { %2901 = vmatprep.subr.bf16.mxu1 %v7077_v2  ;;  %v1322_v2 = vld [vmem:[#allocation20 + $0x2a8] sm:$0xff] }
 0x393   :  { %2833 = vmatprep.subr.bf16.mxu0 %v7131_v57  ;;  %v7140_v4 = vcombine.low %v1318_v0, %v1322_v2  ;;  %v7141_v5 = vcombine.high %v1318_v0, %v1322_v2  ;;  %v9584_v57 = vld [vmem:[#allocation16] sm:$0xf] }
 0x394   :  { %2834 = vmatpush1.bf16.msra.mxu0 %v7130_v59  ;;  %v674_v58 = vrot.slane %v9584_v57, %v9553_v8  ;;  %v678_v59 = vrot.slane %v9584_v57, %v9556_v10 }
 0x395   :  { %2902 = vmatpush1.bf16.msra.mxu1 %v7076_v1  ;;  %v7139_v1 = vcombine.high %v1317_v62, %v1321_v63 }
 0x396   :  { %2903 = vmatprep.subr.bf16.mxu1 %v7085_v13  ;;  %v1330_v13 = vld [vmem:[#allocation20 + $0x2e8] sm:$0xff] }
 0x397   :  { %2835 = vmatprep.subr.bf16.mxu0 %v7139_v1  ;;  %v7148_v15 = vcombine.low %v1326_v11, %v1330_v13  ;;  %v7149_v16 = vcombine.high %v1326_v11, %v1330_v13 }
 0x398   :  { %2836 = vmatpush1.bf16.msra.mxu0 %v7138_v3 }
 0x399   :  { %2904 = vmatpush1.bf16.msra.mxu1 %v7084_v12  ;;  %v7147_v12 = vcombine.high %v1325_v6, %v1329_v9 }
 0x39a   :  { %2905 = vmatprep.subr.bf16.mxu1 %v7093_v21  ;;  %v1338_v21 = vld [vmem:[#allocation20 + $0x328] sm:$0xff] }
 0x39b   :  { %2837 = vmatprep.subr.bf16.mxu0 %v7147_v12  ;;  %v7156_v23 = vcombine.low %v1334_v19, %v1338_v21  ;;  %v7157_v24 = vcombine.high %v1334_v19, %v1338_v21 }
 0x39c   :  { %2838 = vmatpush1.bf16.msra.mxu0 %v7146_v14 }
 0x39d   :  { %2906 = vmatpush1.bf16.msra.mxu1 %v7092_v20  ;;  %v7155_v20 = vcombine.high %v1333_v17, %v1337_v18 }
 0x39e   :  { %2907 = vmatprep.subr.bf16.mxu1 %v7101_v29  ;;  %v1346_v29 = vld [vmem:[#allocation20 + $0x368] sm:$0xff] }
 0x39f   :  { %2839 = vmatprep.subr.bf16.mxu0 %v7155_v20  ;;  %v7164_v31 = vcombine.low %v1342_v27, %v1346_v29  ;;  %v7165_v32 = vcombine.high %v1342_v27, %v1346_v29 }
 0x3a0   :  { %2840 = vmatpush1.bf16.msra.mxu0 %v7154_v22 }
 0x3a1   :  { %2908 = vmatpush1.bf16.msra.mxu1 %v7100_v28  ;;  %v7163_v28 = vcombine.high %v1341_v25, %v1345_v26 }
 0x3a2   :  { %2909 = vmatprep.subr.bf16.mxu1 %v7109_v37  ;;  %v1354_v37 = vld [vmem:[#allocation20 + $0x3a8] sm:$0xff] }
 0x3a3   :  { %2841 = vmatprep.subr.bf16.mxu0 %v7163_v28  ;;  %v7172_v39 = vcombine.low %v1350_v35, %v1354_v37  ;;  %v7173_v40 = vcombine.high %v1350_v35, %v1354_v37 }
 0x3a4   :  { %2842 = vmatpush1.bf16.msra.mxu0 %v7162_v30 }
 0x3a5   :  { %2910 = vmatpush1.bf16.msra.mxu1 %v7108_v36  ;;  %v7171_v36 = vcombine.high %v1349_v33, %v1353_v34 }
 0x3a6   :  { %2911 = vmatprep.subr.bf16.mxu1 %v7117_v45  ;;  %v7179_v45 = vcombine.high %v1357_v41, %v1361_v42 }
 0x3a7   :  { %2843 = vmatprep.subr.bf16.mxu0 %v7171_v36 }
 0x3a8   :  { %2844 = vmatpush1.bf16.msra.mxu0 %v7170_v38 }
 0x3a9   :  { %2912 = vmatpush1.bf16.msra.mxu1 %v7116_v44  ;;  %v7178_v44 = vcombine.low %v1357_v41, %v1361_v42  ;;  %2845 = vmatprep.subr.bf16.mxu0 %v7179_v45 }
 0x3aa   :  { %2913 = vmatprep.subr.bf16.mxu1 %v7125_v53  ;;  %v9576_v53 = vld [vmem:[#allocation20 + $0x428] sm:$0xff] }
 0x3ab   :  { %v7188_v55 = vcombine.low %v9572_v51, %v9576_v53  ;;  %v7189_v56 = vcombine.high %v9572_v51, %v9576_v53 }
 0x3ac   :  { %2846 = vmatpush1.bf16.msra.mxu0 %v7178_v44 }
 0x3ad   :  { %2914 = vmatpush1.bf16.msra.mxu1 %v7124_v52  ;;  %v7187_v52 = vcombine.high %v9568_v49, %v9570_v50 }
 0x3ae   :  { %2915 = vmatprep.subr.bf16.mxu1 %v7133_v61 }
 0x3af   :  { %2856 = vmatprep.subr.bf16.mxu0 %v7187_v52 }
 0x3b1   :  { %2916 = vmatpush1.bf16.msra.mxu1 %v7132_v60 }
 0x3b2   :  { %2917 = vmatprep.subr.bf16.mxu1 %v7141_v5 }
 0x3b5   :  { %2918 = vmatpush1.bf16.msra.mxu1 %v7140_v4 }
 0x3b6   :  { %2919 = vmatprep.subr.bf16.mxu1 %v7149_v16 }
 0x3b9   :  { %2920 = vmatpush1.bf16.msra.mxu1 %v7148_v15 }
 0x3ba   :  { %2921 = vmatprep.subr.bf16.mxu1 %v7157_v24 }
 0x3bd   :  { %2922 = vmatpush1.bf16.msra.mxu1 %v7156_v23 }
 0x3be   :  { %2923 = vmatprep.subr.bf16.mxu1 %v7165_v32 }
 0x3c1   :  { %2924 = vmatpush1.bf16.msra.mxu1 %v7164_v31 }
 0x3c2   :  { %2925 = vmatprep.subr.bf16.mxu1 %v7173_v40  ;;  %v9592_v40 = vld [vmem:[#allocation19] sm:$0xf] }
 0x3c3   :  { %v1200_v46 = vrot.slane %v9592_v40, %v9553_v8 }
 0x3c5   :  { %2926 = vmatpush1.bf16.msra.mxu1 %v7172_v39  ;;  %v9590_v39 = vld [vmem:[#allocation17] sm:$0xf] }
 0x3c6   :  { %2927 = vmatprep.subr.bf16.mxu1 %v7181_v48  ;;  %v1175_v41 = vrot.slane %v9590_v39, %v9553_v8  ;;  %v1179_v43 = vrot.slane %v9590_v39, %v9556_v10  ;;  %v1204_v48 = vrot.slane %v9592_v40, %v9556_v10 }
 0x3c9   :  { %2928 = vmatpush1.bf16.msra.mxu1 %v7180_v47 }
 0x3ca   :  { %2938 = vmatprep.subr.bf16.mxu1 %v7189_v56 }
 0x41f   :  { %v1045_v60 = vpop.f32.mrb[4].mxu1 }
 0x420   :  { %v1046_v61 = vadd.f32 %v1045_v60, %v674_v58  ;;  %v1047_v62 = vpop.f32.mrb[5].mxu1 }
 0x421   :  { %v1048_v63 = vadd.f32 %v1047_v62, %v678_v59  ;;  %v1049_v0 = vpop.f32.mrb[6].mxu1  ;;  %v1373_v62 = vld [vmem:[#allocation20 + $0x440] sm:$0xff] }
 0x422   :  { %v1095_v1 = vrot.slane %v1046_v61, 4  ;;  %v1050_v2 = vpop.f32.mrb[7].mxu1  ;;  %v1377_v0 = vld [vmem:[#allocation20 + $0x460] sm:$0xff] }
 0x423   :  { %v1101_v3 = vrot.slane %v1048_v63, 4  ;;  %v1378_v2 = vld [vmem:[#allocation20 + $0x468] sm:$0xff] }
 0x424   :  { %v1096_v4 = vadd.f32 %v1095_v1, %v1046_v61  ;;  %v1374_v1 = vld [vmem:[#allocation20 + $0x448] sm:$0xff] }
 0x425   :  { %v1102_v5 = vadd.f32 %v1101_v3, %v1048_v63 }
 0x426   :  { %v1097_v6 = vrot.slane %v1096_v4, 2 }
 0x427   :  { %v1103_v9 = vrot.slane %v1102_v5, 2 }
 0x428   :  { %v1098_v11 = vadd.f32 %v1097_v6, %v1096_v4  ;;  %v9603_v4 = vsub.s32 2, %v9550_v7  ;;  %v9608_v6 = vsub.s32 3, %v9550_v7 }
 0x429   :  { %v1104_v12 = vadd.f32 %v1103_v9, %v1102_v5 }
 0x42a   :  { %v1099_v13 = vrot.slane %v1098_v11, 1 }
 0x42b   :  { %v1105_v14 = vrot.slane %v1104_v12, 1 }
 0x42c   :  { %v1100_v15 = vadd.f32 %v1099_v13, %v1098_v11  ;;  %v7195_v11 = vcombine.high %v1373_v62, %v1377_v0  ;;  %v1381_v13 = vld [vmem:[#allocation20 + $0x480] sm:$0xff] }
 0x42d   :  { %v1106_v16 = vadd.f32 %v1105_v14, %v1104_v12  ;;  %v7197_v12 = vcombine.high %v1374_v1, %v1378_v2  ;;  %v1385_v14 = vld [vmem:[#allocation20 + $0x4a0] sm:$0xff] }
 0x42e   :  { %v1119_v17 = vmul.f32 0.125, %v1100_v15  ;;  %v1382_v15 = vld [vmem:[#allocation20 + $0x488] sm:$0xff]  ;;  %v7202_v53 = vcombine.low %v1381_v13, %v1385_v14 }
 0x42f   :  { %v1120_v18 = vmul.f32 0.125, %v1106_v16  ;;  %v1386_v16 = vld [vmem:[#allocation20 + $0x4a8] sm:$0xff] }
 0x430   :  { %v1123_v19 = vsub.f32 %v1046_v61, %v1119_v17  ;;  %v682_v17 = vrot.slane %v9584_v57, %v9603_v4 }
 0x431   :  { %v1124_v20 = vsub.f32 %v1048_v63, %v1120_v18  ;;  %v686_v18 = vrot.slane %v9584_v57, %v9608_v6 }
 0x432   :  { %v1127_v21 = vmul.f32 %v1123_v19, %v1123_v19 }
 0x433   :  { %v1128_v22 = vmul.f32 %v1124_v20, %v1124_v20 }
 0x434   :  { %v1131_v23 = vrot.slane %v1127_v21, 4 }
 0x435   :  { %v1137_v24 = vrot.slane %v1128_v22, 4 }
 0x436   :  { %v1132_v25 = vadd.f32 %v1131_v23, %v1127_v21  ;;  %v7203_v21 = vcombine.high %v1381_v13, %v1385_v14  ;;  %v1389_v23 = vld [vmem:[#allocation20 + $0x4c0] sm:$0xff] }
 0x437   :  { %v1138_v26 = vadd.f32 %v1137_v24, %v1128_v22  ;;  %v7205_v22 = vcombine.high %v1382_v15, %v1386_v16 }
 0x438   :  { %v1133_v27 = vrot.slane %v1132_v25, 2 }
 0x439   :  { %v1139_v28 = vrot.slane %v1138_v26, 2 }
 0x43a   :  { %v1134_v29 = vadd.f32 %v1133_v27, %v1132_v25  ;;  %v1393_v25 = vld [vmem:[#allocation20 + $0x4e0] sm:$0xff]  ;;  %v1394_v27 = vld [vmem:[#allocation20 + $0x4e8] sm:$0xff] }
 0x43b   :  { %v1140_v30 = vadd.f32 %v1139_v28, %v1138_v26  ;;  %v1390_v26 = vld [vmem:[#allocation20 + $0x4c8] sm:$0xff] }
 0x43c   :  { %v1135_v31 = vrot.slane %v1134_v29, 1 }
 0x43d   :  { %v1141_v32 = vrot.slane %v1140_v30, 1 }
 0x43e   :  { %v1136_v33 = vadd.f32 %v1135_v31, %v1134_v29  ;;  %v7211_v29 = vcombine.high %v1389_v23, %v1393_v25  ;;  %v1397_v31 = vld [vmem:[#allocation20 + $0x500] sm:$0xff] }
 0x43f   :  { %v1142_v34 = vadd.f32 %v1141_v32, %v1140_v30  ;;  %v7213_v30 = vcombine.high %v1390_v26, %v1394_v27 }
 0x440   :  { %v1155_v35 = vmul.f32 0.125, %v1136_v33  ;;  %v1401_v33 = vld [vmem:[#allocation20 + $0x520] sm:$0xff] }
 0x441   :  { %v1156_v36 = vmul.f32 0.125, %v1142_v34  ;;  %v1398_v34 = vld [vmem:[#allocation20 + $0x508] sm:$0xff] }
 0x442   :  { %v1159_v37 = vadd.f32 1e-05, %v1155_v35  ;;  %v1402_v35 = vld [vmem:[#allocation20 + $0x528] sm:$0xff] }
 0x443   :  { %v1160_v38 = vadd.f32 1e-05, %v1156_v36 }
 0x444   :  { %8748 = vrsqrt.f32 %v1159_v37 }
 0x445   :  { %8750 = vrsqrt.f32 %v1160_v38  ;;  %v7210_v38 = vcombine.low %v1389_v23, %v1393_v25  ;;  %v1426_v23 = vld [vmem:[#allocation20 + $0x5e8] sm:$0xff] }
 0x44e   :  { %v8749_v42 = vpop.eup %8748 }
 0x44f   :  { %v8751_v44 = vpop.eup %8750  ;;  %v1167_v45 = vmul.f32 %v8749_v42, %v1123_v19  ;;  %v7194_v19 = vcombine.low %v1373_v62, %v1377_v0  ;;  %v1413_v0 = vld [vmem:[#allocation20 + $0x580] sm:$0xff] }
 0x450   :  { %v1168_v47 = vmul.f32 %v8751_v44, %v1124_v20  ;;  %v7196_v20 = vcombine.low %v1374_v1, %v1378_v2  ;;  %v7221_v44 = vcombine.high %v1398_v34, %v1402_v35  ;;  %v1417_v2 = vld [vmem:[#allocation20 + $0x5a0] sm:$0xff] }
 0x451   :  { %v1192_v52 = vmul.f32 %v1175_v41, %v1167_v45  ;;  %v7212_v41 = vcombine.low %v1390_v26, %v1394_v27  ;;  %v1405_v45 = vld [vmem:[#allocation20 + $0x540] sm:$0xff]  ;;  %v7234_v26 = vcombine.low %v1413_v0, %v1417_v2 }
 0x452   :  { %v1193_v56 = vmul.f32 %v1179_v43, %v1168_v47  ;;  %v7219_v43 = vcombine.high %v1397_v31, %v1401_v33  ;;  %v1409_v47 = vld [vmem:[#allocation20 + $0x560] sm:$0xff] }
 0x453   :  { %v1217_v58 = vadd.f32 %v1200_v46, %v1192_v52  ;;  %v1410_v52 = vld [vmem:[#allocation20 + $0x568] sm:$0xff]  ;;  %v7227_v62 = vcombine.high %v1405_v45, %v1409_v47  ;;  %v7226_v14 = vcombine.low %v1405_v45, %v1409_v47 }
 0x454   :  { %v1218_v59 = vadd.f32 %v1204_v48, %v1193_v56  ;;  %v1406_v48 = vld [vmem:[#allocation20 + $0x548] sm:$0xff] }
 0x455   :  { %vm1221_vm4 = vcmp.gt.f32.partialorder %v1217_v58, 0.0  ;;  %v1225_v60 = vmul.f32 0.2, %v1217_v58 }
 0x456   :  { %vm1222_vm5 = vcmp.gt.f32.partialorder %v1218_v59, 0.0  ;;  %v1226_v61 = vmul.f32 0.2, %v1218_v59 }
 0x457   :  { %v1229_v63 = vsel %vm1221_vm4, %v1217_v58, %v1225_v60  ;;  %v7220_v60 = vcombine.low %v1398_v34, %v1402_v35 }
 0x458   :  { %v1230_v3 = vsel %vm1222_vm5, %v1218_v59, %v1226_v61  ;;  %v9610_v9 = vpack.c.bf16 %v1229_v63, %v1229_v63  ;;  %v7218_v59 = vcombine.low %v1397_v31, %v1401_v33  ;;  %v7229_v63 = vcombine.high %v1406_v48, %v1410_v52 }
 0x459   :  { %v9605_v5 = vpack.c.bf16 %v1230_v3, %v1230_v3  ;;  %v1414_v3 = vld [vmem:[#allocation20 + $0x588] sm:$0xff] }
 0x45b   :  { %2847 = vmatprep.mubr.bf16.mxu0 %v9605_v5  ;;  %2929 = vmatprep.mubr.bf16.mxu1 %v9605_v5 }
 0x45c   :  { %2848 = vmatmul.mubr.bf16.vlgmr.msra.gmra.mrb[4].mxu0 %v9610_v9  ;;  %2930 = vmatmul.mubr.bf16.vlgmr.msra.gmra.mrb[12].mxu1 %v9610_v9 }
 0x45d   :  { %2857 = vmatpush1.bf16.msra.mxu0 %v7186_v54  ;;  %2939 = vmatpush1.bf16.msra.mxu1 %v7188_v55  ;;  %v7204_v55 = vcombine.low %v1382_v15, %v1386_v16  ;;  %v7228_v15 = vcombine.low %v1406_v48, %v1410_v52 }
 0x45e   :  { %2858 = vmatprep.subr.bf16.mxu0 %v7195_v11  ;;  %2940 = vmatprep.subr.bf16.mxu1 %v7197_v12  ;;  %v1418_v11 = vld [vmem:[#allocation20 + $0x5a8] sm:$0xff] }
 0x45f   :  { %v1086_v24 = vpop.f32.mrb[8].mxu1  ;;  %v7236_v27 = vcombine.low %v1414_v3, %v1418_v11 }
 0x460   :  { %v9626_v49 = vadd.f32 %v1086_v24, %v682_v17  ;;  %v1088_v50 = vpop.f32.mrb[9].mxu1  ;;  %v7235_v17 = vcombine.high %v1413_v0, %v1417_v2 }
 0x461   :  { %v9628_v54 = vadd.f32 %v1088_v50, %v686_v18  ;;  %v1090_v51 = vpop.f32.mrb[10].mxu1  ;;  %2859 = vmatpush1.bf16.msra.mxu0 %v7194_v19  ;;  %2941 = vmatpush1.bf16.msra.mxu1 %v7196_v20  ;;  %v7237_v18 = vcombine.high %v1414_v3, %v1418_v11  ;;  %v1421_v19 = vld [vmem:[#allocation20 + $0x5c0] sm:$0xff] }
 0x462   :  { %v1107_v57 = vrot.slane %v9626_v49, 4  ;;  %v1091_v28 = vpop.f32.mrb[11].mxu1  ;;  %2860 = vmatprep.subr.bf16.mxu0 %v7203_v21  ;;  %2942 = vmatprep.subr.bf16.mxu1 %v7205_v22  ;;  %v1425_v21 = vld [vmem:[#allocation20 + $0x5e0] sm:$0xff]  ;;  %v1422_v22 = vld [vmem:[#allocation20 + $0x5c8] sm:$0xff] }
 0x463   :  { %v1113_v32 = vrot.slane %v9628_v54, 4  ;;  %v7243_v51 = vcombine.high %v1421_v19, %v1425_v21  ;;  %v1430_v28 = vld [vmem:[#allocation20 + $0x608] sm:$0xff]  ;;  %v7242_v31 = vcombine.low %v1421_v19, %v1425_v21 }
 0x464   :  { %v1108_v36 = vadd.f32 %v1107_v57, %v9626_v49 }
 0x465   :  { %v1114_v37 = vadd.f32 %v1113_v32, %v9628_v54  ;;  %2861 = vmatpush1.bf16.msra.mxu0 %v7202_v53  ;;  %2943 = vmatpush1.bf16.msra.mxu1 %v7204_v55  ;;  %v7245_v53 = vcombine.high %v1422_v22, %v1426_v23  ;;  %v1429_v55 = vld [vmem:[#allocation20 + $0x600] sm:$0xff]  ;;  %v7244_v32 = vcombine.low %v1422_v22, %v1426_v23 }
 0x466   :  { %v1109_v42 = vrot.slane %v1108_v36, 2  ;;  %2862 = vmatprep.subr.bf16.mxu0 %v7211_v29  ;;  %2944 = vmatprep.subr.bf16.mxu1 %v7213_v30  ;;  %v1434_v29 = vld [vmem:[#allocation20 + $0x628] sm:$0xff] }
 0x467   :  { %v1115_v46 = vrot.slane %v1114_v37, 2  ;;  %v7253_v35 = vcombine.high %v1430_v28, %v1434_v29 }
 0x468   :  { %v1110_v56 = vadd.f32 %v1109_v42, %v1108_v36  ;;  %v1437_v36 = vld [vmem:[#allocation20 + $0x640] sm:$0xff]  ;;  %v1442_v42 = vld [vmem:[#allocation20 + $0x668] sm:$0xff] }
 0x469   :  { %v1116_v58 = vadd.f32 %v1115_v46, %v1114_v37  ;;  %2863 = vmatpush1.bf16.msra.mxu0 %v7210_v38  ;;  %2945 = vmatpush1.bf16.msra.mxu1 %v7212_v41  ;;  %v1441_v38 = vld [vmem:[#allocation20 + $0x660] sm:$0xff]  ;;  %v1438_v41 = vld [vmem:[#allocation20 + $0x648] sm:$0xff]  ;;  %v7252_v46 = vcombine.low %v1430_v28, %v1434_v29 }
 0x46a   :  { %v1111_v61 = vrot.slane %v1110_v56, 1  ;;  %2864 = vmatprep.subr.bf16.mxu0 %v7219_v43  ;;  %2946 = vmatprep.subr.bf16.mxu1 %v7221_v44  ;;  %v7259_v48 = vcombine.high %v1437_v36, %v1441_v38  ;;  %v7261_v52 = vcombine.high %v1438_v41, %v1442_v42  ;;  %v7258_v0 = vcombine.low %v1437_v36, %v1441_v38  ;;  %v1469_v29 = vld [vmem:[#allocation20 + $0x740] sm:$0xff]  ;;  %v1478_v38 = vld [vmem:[#allocation20 + $0x788] sm:$0xff] }
 0x46b   :  { %v1117_v1 = vrot.slane %v1116_v58, 1  ;;  %v1477_v36 = vld [vmem:[#allocation20 + $0x780] sm:$0xff] }
 0x46c   :  { %v1112_v12 = vadd.f32 %v1111_v61, %v1110_v56  ;;  %v1445_v56 = vld [vmem:[#allocation20 + $0x680] sm:$0xff]  ;;  %v1450_v61 = vld [vmem:[#allocation20 + $0x6a8] sm:$0xff] }
 0x46d   :  { %v1118_v13 = vadd.f32 %v1117_v1, %v1116_v58  ;;  %2865 = vmatpush1.bf16.msra.mxu0 %v7218_v59  ;;  %2947 = vmatpush1.bf16.msra.mxu1 %v7220_v60  ;;  %v1449_v59 = vld [vmem:[#allocation20 + $0x6a0] sm:$0xff]  ;;  %v1446_v60 = vld [vmem:[#allocation20 + $0x688] sm:$0xff]  ;;  %v7260_v1 = vcombine.low %v1438_v41, %v1442_v42  ;;  %v1183_v42 = vrot.slane %v9590_v39, %v9603_v4 }
 0x46e   :  { %v1121_v16 = vmul.f32 0.125, %v1112_v12  ;;  %2866 = vmatprep.subr.bf16.mxu0 %v7227_v62  ;;  %2948 = vmatprep.subr.bf16.mxu1 %v7229_v63  ;;  %v7267_v3 = vcombine.high %v1445_v56, %v1449_v59  ;;  %v7269_v11 = vcombine.high %v1446_v60, %v1450_v61  ;;  %v1453_v12 = vld [vmem:[#allocation20 + $0x6c0] sm:$0xff]  ;;  %v7266_v19 = vcombine.low %v1445_v56, %v1449_v59  ;;  %v1482_v41 = vld [vmem:[#allocation20 + $0x7a8] sm:$0xff] }
 0x46f   :  { %v1122_v20 = vmul.f32 0.125, %v1118_v13  ;;  %v1208_v59 = vrot.slane %v9592_v40, %v9603_v4 }
 0x470   :  { %v9635_v24 = vsub.f32 %v9626_v49, %v1121_v16  ;;  %v1433_v49 = vld [vmem:[#allocation20 + $0x620] sm:$0xff]  ;;  %v1458_v16 = vld [vmem:[#allocation20 + $0x6e8] sm:$0xff] }
 0x471   :  { %v9638_v25 = vsub.f32 %v9628_v54, %v1122_v20  ;;  %2867 = vmatpush1.bf16.msra.mxu0 %v7226_v14  ;;  %2949 = vmatpush1.bf16.msra.mxu1 %v7228_v15  ;;  %v7251_v34 = vcombine.high %v1429_v55, %v1433_v49  ;;  %v7250_v45 = vcombine.low %v1429_v55, %v1433_v49  ;;  %v1457_v14 = vld [vmem:[#allocation20 + $0x6e0] sm:$0xff]  ;;  %v1454_v15 = vld [vmem:[#allocation20 + $0x6c8] sm:$0xff] }
 0x472   :  { %v1129_v50 = vmul.f32 %v9635_v24, %v9635_v24  ;;  %2868 = vmatprep.subr.bf16.mxu0 %v7235_v17  ;;  %2950 = vmatprep.subr.bf16.mxu1 %v7237_v18  ;;  %v7268_v20 = vcombine.low %v1446_v60, %v1450_v61  ;;  %v7275_v22 = vcombine.high %v1453_v12, %v1457_v14  ;;  %v1489_v60 = vld [vmem:[#allocation20 + $0x7e0] sm:$0xff]  ;;  %v1486_v61 = vld [vmem:[#allocation20 + $0x7c8] sm:$0xff] }
 0x473   :  { %v1130_v57 = vmul.f32 %v9638_v25, %v9638_v25  ;;  %v7277_v23 = vcombine.high %v1454_v15, %v1458_v16  ;;  %v7274_v55 = vcombine.low %v1453_v12, %v1457_v14  ;;  %v1239_v12 = vld [vmem:[#allocation20 + $0x10] sm:$0xff] }
 0x474   :  { %v1143_v54 = vrot.slane %v1129_v50, 4  ;;  %v1243_v14 = vld [vmem:[#allocation20 + $0x30] sm:$0xff] }
 0x475   :  { %v1149_v30 = vrot.slane %v1130_v57, 4  ;;  %2869 = vmatpush1.bf16.msra.mxu0 %v7234_v26  ;;  %2951 = vmatpush1.bf16.msra.mxu1 %v7236_v27  ;;  %v1461_v26 = vld [vmem:[#allocation20 + $0x700] sm:$0xff] }
 0x476   :  { %v1144_v33 = vadd.f32 %v1143_v54, %v1129_v50  ;;  %2870 = vmatprep.subr.bf16.mxu0 %v7243_v51  ;;  %2952 = vmatprep.subr.bf16.mxu1 %v7245_v53  ;;  %v1465_v50 = vld [vmem:[#allocation20 + $0x720] sm:$0xff]  ;;  %v1462_v51 = vld [vmem:[#allocation20 + $0x708] sm:$0xff] }
 0x477   :  { %v1150_v37 = vadd.f32 %v1149_v30, %v1130_v57  ;;  %v1466_v53 = vld [vmem:[#allocation20 + $0x728] sm:$0xff]  ;;  %v7276_v57 = vcombine.low %v1454_v15, %v1458_v16  ;;  %v7283_v49 = vcombine.high %v1461_v26, %v1465_v50  ;;  %v1473_v54 = vld [vmem:[#allocation20 + $0x760] sm:$0xff]  ;;  %v1240_v15 = vld [vmem:[#allocation20 + $0x18] sm:$0xff] }
 0x478   :  { %v1145_v43 = vrot.slane %v1144_v33, 2  ;;  %v7285_v28 = vcombine.high %v1462_v51, %v1466_v53  ;;  %v1470_v30 = vld [vmem:[#allocation20 + $0x748] sm:$0xff]  ;;  %v1244_v16 = vld [vmem:[#allocation20 + $0x38] sm:$0xff] }
 0x479   :  { %v1151_v44 = vrot.slane %v1150_v37, 2  ;;  %2871 = vmatpush1.bf16.msra.mxu0 %v7242_v31  ;;  %2953 = vmatpush1.bf16.msra.mxu1 %v7244_v32  ;;  %v1474_v31 = vld [vmem:[#allocation20 + $0x768] sm:$0xff]  ;;  %v7282_v32 = vcombine.low %v1461_v26, %v1465_v50  ;;  %v1248_v50 = vld [vmem:[#allocation20 + $0x58] sm:$0xff] }
 0x47a   :  { %v1146_v47 = vadd.f32 %v1145_v43, %v1144_v33  ;;  %2872 = vmatprep.subr.bf16.mxu0 %v7251_v34  ;;  %2954 = vmatprep.subr.bf16.mxu1 %v7253_v35  ;;  %v7284_v33 = vcombine.low %v1462_v51, %v1466_v53  ;;  %v7291_v34 = vcombine.high %v1469_v29, %v1473_v54  ;;  %v1252_v51 = vld [vmem:[#allocation20 + $0x78] sm:$0xff] }
 0x47b   :  { %v1152_v58 = vadd.f32 %v1151_v44, %v1150_v37  ;;  %v7293_v35 = vcombine.high %v1470_v30, %v1474_v31  ;;  %v1481_v37 = vld [vmem:[#allocation20 + $0x7a0] sm:$0xff]  ;;  %v7290_v43 = vcombine.low %v1469_v29, %v1473_v54  ;;  %v7292_v44 = vcombine.low %v1470_v30, %v1474_v31  ;;  %v1255_v54 = vld [vmem:[#allocation20 + $0x90] sm:$0xff]  ;;  %v1256_v31 = vld [vmem:[#allocation20 + $0x98] sm:$0xff] }
 0x47c   :  { %v1147_v62 = vrot.slane %v1146_v47, 1  ;;  %v7073_v29 = vcombine.high %v1248_v50, %v1252_v51  ;;  %v1259_v30 = vld [vmem:[#allocation20 + $0xb0] sm:$0xff] }
 0x47d   :  { %v1153_v63 = vrot.slane %v1152_v58, 1  ;;  %2873 = vmatpush1.bf16.msra.mxu0 %v7250_v45  ;;  %2955 = vmatpush1.bf16.msra.mxu1 %v7252_v46  ;;  %v1187_v46 = vrot.slane %v9590_v39, %v9608_v6 }
 0x47e   :  { %v1148_v2 = vadd.f32 %v1147_v62, %v1146_v47  ;;  %2874 = vmatprep.subr.bf16.mxu0 %v7259_v48  ;;  %2956 = vmatprep.subr.bf16.mxu1 %v7261_v52  ;;  %v7299_v47 = vcombine.high %v1477_v36, %v1481_v37  ;;  %v7301_v48 = vcombine.high %v1478_v38, %v1482_v41  ;;  %v1485_v52 = vld [vmem:[#allocation20 + $0x7c0] sm:$0xff]  ;;  %v1490_v62 = vld [vmem:[#allocation20 + $0x7e8] sm:$0xff] }
 0x47f   :  { %v1154_v13 = vadd.f32 %v1153_v63, %v1152_v58 }
 0x480   :  { %v1157_v17 = vmul.f32 0.125, %v1148_v2  ;;  %v7300_v2 = vcombine.low %v1478_v38, %v1482_v41  ;;  %v1267_v38 = vld [vmem:[#allocation20 + $0xf0] sm:$0xff]  ;;  %v1264_v41 = vld [vmem:[#allocation20 + $0xd8] sm:$0xff] }
 0x481   :  { %v1158_v18 = vmul.f32 0.125, %v1154_v13  ;;  %2875 = vmatpush1.bf16.msra.mxu0 %v7258_v0  ;;  %2957 = vmatpush1.bf16.msra.mxu1 %v7260_v1  ;;  %v1212_v0 = vrot.slane %v9592_v40, %v9608_v6  ;;  %v7298_v1 = vcombine.low %v1477_v36, %v1481_v37  ;;  %v7308_v40 = vcombine.low %v1486_v61, %v1490_v62  ;;  %v1263_v37 = vld [vmem:[#allocation20 + $0xd0] sm:$0xff] }
 0x482   :  { %v1161_v21 = vadd.f32 1e-05, %v1157_v17  ;;  %2876 = vmatprep.subr.bf16.mxu0 %v7267_v3  ;;  %2958 = vmatprep.subr.bf16.mxu1 %v7269_v11  ;;  %v7309_v11 = vcombine.high %v1486_v61, %v1490_v62  ;;  %v1279_v61 = vld [vmem:[#allocation20 + $0x150] sm:$0xff] }
 0x483   :  { %v1162_v27 = vadd.f32 1e-05, %v1158_v18  ;;  %v1283_v62 = vld [vmem:[#allocation20 + $0x170] sm:$0xff] }
 0x484   :  { %8752 = vrsqrt.f32 %v1161_v21  ;;  %v7065_v21 = vcombine.high %v1240_v15, %v1244_v16 }
 0x485   :  { %8754 = vrsqrt.f32 %v1162_v27  ;;  %2877 = vmatpush1.bf16.msra.mxu0 %v7266_v19  ;;  %2959 = vmatpush1.bf16.msra.mxu1 %v7268_v20  ;;  %v7063_v20 = vcombine.high %v1239_v12, %v1243_v14  ;;  %v1251_v27 = vld [vmem:[#allocation20 + $0x70] sm:$0xff] }
 0x486   :  { %2878 = vmatprep.subr.bf16.mxu0 %v7275_v22  ;;  %2960 = vmatprep.subr.bf16.mxu1 %v7277_v23  ;;  %v1247_v23 = vld [vmem:[#allocation20 + $0x50] sm:$0xff] }
 0x489   :  { %2879 = vmatpush1.bf16.msra.mxu0 %v7274_v55  ;;  %2961 = vmatpush1.bf16.msra.mxu1 %v7276_v57  ;;  %v7062_v55 = vcombine.low %v1239_v12, %v1243_v14  ;;  %v1288_v12 = vld [vmem:[#allocation20 + $0x198] sm:$0xff]  ;;  %v7102_v14 = vcombine.low %v1279_v61, %v1283_v62 }
 0x48a   :  { %2880 = vmatprep.subr.bf16.mxu0 %v7283_v49  ;;  %2962 = vmatprep.subr.bf16.mxu1 %v7285_v28  ;;  %v7064_v49 = vcombine.low %v1240_v15, %v1244_v16  ;;  %v7071_v28 = vcombine.high %v1247_v23, %v1251_v27 }
 0x48d   :  { %2881 = vmatpush1.bf16.msra.mxu0 %v7282_v32  ;;  %2963 = vmatpush1.bf16.msra.mxu1 %v7284_v33  ;;  %v1260_v32 = vld [vmem:[#allocation20 + $0xb8] sm:$0xff]  ;;  %v7070_v33 = vcombine.low %v1247_v23, %v1251_v27  ;;  %v1307_v27 = vld [vmem:[#allocation20 + $0x230] sm:$0xff] }
 0x48e   :  { %v8753_v45 = vpop.eup %8752  ;;  %2882 = vmatprep.subr.bf16.mxu0 %v7291_v34  ;;  %2964 = vmatprep.subr.bf16.mxu1 %v7293_v35  ;;  %v7072_v34 = vcombine.low %v1248_v50, %v1252_v51  ;;  %v7079_v35 = vcombine.high %v1255_v54, %v1259_v30  ;;  %v7081_v36 = vcombine.high %v1256_v31, %v1260_v32  ;;  %v1304_v50 = vld [vmem:[#allocation20 + $0x218] sm:$0xff] }
 0x48f   :  { %v8755_v56 = vpop.eup %8754  ;;  %v1169_v58 = vmul.f32 %v8753_v45, %v9635_v24  ;;  %v7307_v24 = vcombine.high %v1485_v52, %v1489_v60  ;;  %v7087_v45 = vcombine.high %v1263_v37, %v1267_v38  ;;  %v1308_v51 = vld [vmem:[#allocation20 + $0x238] sm:$0xff] }
 0x490   :  { %v1170_v63 = vmul.f32 %v8755_v56, %v9638_v25  ;;  %v7306_v25 = vcombine.low %v1485_v52, %v1489_v60  ;;  %v1276_v52 = vld [vmem:[#allocation20 + $0x138] sm:$0xff]  ;;  %v7086_v56 = vcombine.low %v1263_v37, %v1267_v38  ;;  %v1319_v37 = vld [vmem:[#allocation20 + $0x290] sm:$0xff] }
 0x491   :  { %v1194_v39 = vmul.f32 %v1183_v42, %v1169_v58  ;;  %2883 = vmatpush1.bf16.msra.mxu0 %v7290_v43  ;;  %2965 = vmatpush1.bf16.msra.mxu1 %v7292_v44  ;;  %v1268_v42 = vld [vmem:[#allocation20 + $0xf8] sm:$0xff]  ;;  %v7078_v43 = vcombine.low %v1255_v54, %v1259_v30  ;;  %v7080_v44 = vcombine.low %v1256_v31, %v1260_v32  ;;  %v1311_v54 = vld [vmem:[#allocation20 + $0x250] sm:$0xff] }
 0x492   :  { %v1195_v3 = vmul.f32 %v1187_v46, %v1170_v63  ;;  %2884 = vmatprep.subr.bf16.mxu0 %v7299_v47  ;;  %2966 = vmatprep.subr.bf16.mxu1 %v7301_v48  ;;  %v7089_v46 = vcombine.high %v1264_v41, %v1268_v42  ;;  %v1271_v47 = vld [vmem:[#allocation20 + $0x110] sm:$0xff]  ;;  %v7088_v58 = vcombine.low %v1264_v41, %v1268_v42  ;;  %v1280_v63 = vld [vmem:[#allocation20 + $0x158] sm:$0xff] }
 0x493   :  { %v1219_v13 = vadd.f32 %v1208_v59, %v1194_v39  ;;  %v1275_v48 = vld [vmem:[#allocation20 + $0x130] sm:$0xff]  ;;  %v1312_v31 = vld [vmem:[#allocation20 + $0x258] sm:$0xff] }
 0x494   :  { %v1220_v17 = vadd.f32 %v1212_v0, %v1195_v3  ;;  %v7095_v59 = vcombine.high %v1271_v47, %v1275_v48  ;;  %v1284_v0 = vld [vmem:[#allocation20 + $0x178] sm:$0xff]  ;;  %v7094_v39 = vcombine.low %v1271_v47, %v1275_v48  ;;  %v1315_v30 = vld [vmem:[#allocation20 + $0x270] sm:$0xff] }
 0x495   :  { %2885 = vmatpush1.bf16.msra.mxu0 %v7298_v1  ;;  %2967 = vmatpush1.bf16.msra.mxu1 %v7300_v2  ;;  %vm1223_vm6 = vcmp.gt.f32.partialorder %v1219_v13, 0.0  ;;  %v1227_v18 = vmul.f32 0.2, %v1219_v13  ;;  %v7103_v2 = vcombine.high %v1279_v61, %v1283_v62  ;;  %v7105_v3 = vcombine.high %v1280_v63, %v1284_v0  ;;  %v1316_v32 = vld [vmem:[#allocation20 + $0x278] sm:$0xff]  ;;  %v1323_v38 = vld [vmem:[#allocation20 + $0x2b0] sm:$0xff] }
 0x496   :  { %2886 = vmatprep.subr.bf16.mxu0 %v7307_v24  ;;  %2968 = vmatprep.subr.bf16.mxu1 %v7309_v11  ;;  %vm1224_vm7 = vcmp.gt.f32.partialorder %v1220_v17, 0.0  ;;  %v1228_v19 = vmul.f32 0.2, %v1220_v17  ;;  %v1287_v24 = vld [vmem:[#allocation20 + $0x190] sm:$0xff]  ;;  %v7104_v15 = vcombine.low %v1280_v63, %v1284_v0  ;;  %v1320_v41 = vld [vmem:[#allocation20 + $0x298] sm:$0xff] }
 0x497   :  { %v1231_v22 = vsel %vm1223_vm6, %v1219_v13, %v1227_v18  ;;  %v1291_v11 = vld [vmem:[#allocation20 + $0x1b0] sm:$0xff]  ;;  %v1292_v13 = vld [vmem:[#allocation20 + $0x1b8] sm:$0xff] }
 0x498   :  { %v1232_v26 = vsel %vm1224_vm7, %v1220_v17, %v1228_v19  ;;  %v9656_v57 = vpack.c.bf16 %v1231_v22, %v1231_v22  ;;  %v7111_v16 = vcombine.high %v1287_v24, %v1291_v11  ;;  %v7113_v17 = vcombine.high %v1288_v12, %v1292_v13  ;;  %v1296_v18 = vld [vmem:[#allocation20 + $0x1d8] sm:$0xff]  ;;  %v1327_v47 = vld [vmem:[#allocation20 + $0x2d0] sm:$0xff] }
 0x499   :  { %2887 = vmatpush1.bf16.msra.mxu0 %v7306_v25  ;;  %2969 = vmatpush1.bf16.msra.mxu1 %v7308_v40  ;;  %v9654_v53 = vpack.c.bf16 %v1232_v26, %v1232_v26  ;;  %v1295_v25 = vld [vmem:[#allocation20 + $0x1d0] sm:$0xff]  ;;  %v1300_v19 = vld [vmem:[#allocation20 + $0x1f8] sm:$0xff] }
 0x49a   :  { %2979 = vmatprep.subr.bf16.mxu0 %v7063_v20  ;;  %3061 = vmatprep.subr.bf16.mxu1 %v7065_v21  ;;  %v1299_v40 = vld [vmem:[#allocation20 + $0x1f0] sm:$0xff]  ;;  %v7110_v20 = vcombine.low %v1287_v24, %v1291_v11  ;;  %v7112_v21 = vcombine.low %v1288_v12, %v1292_v13  ;;  %v7121_v23 = vcombine.high %v1296_v18, %v1300_v19  ;;  %v1324_v42 = vld [vmem:[#allocation20 + $0x2b8] sm:$0xff] }
 0x49b   :  { %2888 = vmatprep.mubr.bf16.mxu0 %v9654_v53  ;;  %2970 = vmatprep.mubr.bf16.mxu1 %v9654_v53  ;;  %v7119_v22 = vcombine.high %v1295_v25, %v1299_v40  ;;  %v1303_v26 = vld [vmem:[#allocation20 + $0x210] sm:$0xff]  ;;  %v1336_v63 = vld [vmem:[#allocation20 + $0x318] sm:$0xff] }
 0x49c   :  { %2889 = vmatmul.mubr.bf16.vlgmr.msra.gmra.mrb[4].mxu0 %v9656_v57  ;;  %2971 = vmatmul.mubr.bf16.vlgmr.msra.gmra.mrb[12].mxu1 %v9656_v57  ;;  %v1331_v48 = vld [vmem:[#allocation20 + $0x2f0] sm:$0xff]  ;;  %v1340_v0 = vld [vmem:[#allocation20 + $0x338] sm:$0xff] }
 0x49d   :  { %2980 = vmatpush1.bf16.msra.mxu0 %v7062_v55  ;;  %3011 = vmatprep.mubr.bf16.mxu0 %v9605_v5  ;;  %v7118_v55 = vcombine.low %v1295_v25, %v1299_v40  ;;  %v1335_v61 = vld [vmem:[#allocation20 + $0x310] sm:$0xff]  ;;  %v1344_v12 = vld [vmem:[#allocation20 + $0x358] sm:$0xff] }
 0x49e   :  { %3062 = vmatpush1.bf16.msra.mxu1 %v7064_v49  ;;  %3093 = vmatprep.mubr.bf16.mxu1 %v9605_v5  ;;  %v1272_v5 = vld [vmem:[#allocation20 + $0x118] sm:$0xff]  ;;  %v7120_v49 = vcombine.low %v1296_v18, %v1300_v19  ;;  %v1339_v62 = vld [vmem:[#allocation20 + $0x330] sm:$0xff] }
 0x49f   :  { %2981 = vmatprep.subr.bf16.mxu0 %v7071_v28  ;;  %3063 = vmatprep.subr.bf16.mxu1 %v7073_v29  ;;  %v7097_v60 = vcombine.high %v1272_v5, %v1276_v52  ;;  %v7096_v1 = vcombine.low %v1272_v5, %v1276_v52  ;;  %v7127_v28 = vcombine.high %v1303_v26, %v1307_v27  ;;  %v1328_v5 = vld [vmem:[#allocation20 + $0x2d8] sm:$0xff]  ;;  %v1343_v24 = vld [vmem:[#allocation20 + $0x350] sm:$0xff] }
 0x4a0   :  { %v7129_v29 = vcombine.high %v1304_v50, %v1308_v51  ;;  %v1332_v52 = vld [vmem:[#allocation20 + $0x2f8] sm:$0xff]  ;;  %v1347_v11 = vld [vmem:[#allocation20 + $0x370] sm:$0xff] }
 0x4a1   :  { %2982 = vmatpush1.bf16.msra.mxu0 %v7070_v33  ;;  %v7126_v33 = vcombine.low %v1303_v26, %v1307_v27  ;;  %v1348_v13 = vld [vmem:[#allocation20 + $0x378] sm:$0xff]  ;;  %v1351_v25 = vld [vmem:[#allocation20 + $0x390] sm:$0xff] }
 0x4a2   :  { %3064 = vmatpush1.bf16.msra.mxu1 %v7072_v34  ;;  %2983 = vmatprep.subr.bf16.mxu0 %v7079_v35  ;;  %v7128_v34 = vcombine.low %v1304_v50, %v1308_v51  ;;  %v7135_v35 = vcombine.high %v1311_v54, %v1315_v30  ;;  %v1355_v40 = vld [vmem:[#allocation20 + $0x3b0] sm:$0xff]  ;;  %v1352_v18 = vld [vmem:[#allocation20 + $0x398] sm:$0xff] }
 0x4a3   :  { %3065 = vmatprep.subr.bf16.mxu1 %v7081_v36  ;;  %v7137_v36 = vcombine.high %v1312_v31, %v1316_v32  ;;  %v1356_v19 = vld [vmem:[#allocation20 + $0x3b8] sm:$0xff]  ;;  %v1359_v26 = vld [vmem:[#allocation20 + $0x3d0] sm:$0xff] }
 0x4a4   :  { %v1363_v27 = vld [vmem:[#allocation20 + $0x3f0] sm:$0xff]  ;;  %v1360_v50 = vld [vmem:[#allocation20 + $0x3d8] sm:$0xff] }
 0x4a5   :  { %2984 = vmatpush1.bf16.msra.mxu0 %v7078_v43  ;;  %v7134_v43 = vcombine.low %v1311_v54, %v1315_v30  ;;  %v1364_v51 = vld [vmem:[#allocation20 + $0x3f8] sm:$0xff]  ;;  %v1367_v54 = vld [vmem:[#allocation20 + $0x410] sm:$0xff] }
 0x4a6   :  { %3066 = vmatpush1.bf16.msra.mxu1 %v7080_v44  ;;  %2985 = vmatprep.subr.bf16.mxu0 %v7087_v45  ;;  %v7136_v44 = vcombine.low %v1312_v31, %v1316_v32  ;;  %v7143_v45 = vcombine.high %v1319_v37, %v1323_v38  ;;  %v1371_v30 = vld [vmem:[#allocation20 + $0x430] sm:$0xff]  ;;  %v1368_v31 = vld [vmem:[#allocation20 + $0x418] sm:$0xff] }
 0x4a7   :  { %3067 = vmatprep.subr.bf16.mxu1 %v7089_v46  ;;  %v7145_v46 = vcombine.high %v1320_v41, %v1324_v42  ;;  %v1372_v32 = vld [vmem:[#allocation20 + $0x438] sm:$0xff] }
 0x4a9   :  { %2986 = vmatpush1.bf16.msra.mxu0 %v7086_v56  ;;  %v7142_v56 = vcombine.low %v1319_v37, %v1323_v38  ;;  %v1375_v37 = vld [vmem:[#allocation20 + $0x450] sm:$0xff] }
 0x4aa   :  { %3068 = vmatpush1.bf16.msra.mxu1 %v7088_v58  ;;  %2987 = vmatprep.subr.bf16.mxu0 %v7095_v59  ;;  %v7144_v58 = vcombine.low %v1320_v41, %v1324_v42  ;;  %v7151_v59 = vcombine.high %v1327_v47, %v1331_v48  ;;  %v1379_v38 = vld [vmem:[#allocation20 + $0x470] sm:$0xff]  ;;  %v7190_v41 = vcombine.low %v1367_v54, %v1371_v30  ;;  %v1376_v42 = vld [vmem:[#allocation20 + $0x458] sm:$0xff] }
 0x4ab   :  { %3069 = vmatprep.subr.bf16.mxu1 %v7097_v60  ;;  %v7153_v60 = vcombine.high %v1328_v5, %v1332_v52 }
 0x4ad   :  { %2988 = vmatpush1.bf16.msra.mxu0 %v7094_v39  ;;  %v7150_v39 = vcombine.low %v1327_v47, %v1331_v48  ;;  %v1387_v47 = vld [vmem:[#allocation20 + $0x4b0] sm:$0xff] }
 0x4ae   :  { %3070 = vmatpush1.bf16.msra.mxu1 %v7096_v1  ;;  %2989 = vmatprep.subr.bf16.mxu0 %v7103_v2  ;;  %v7152_v1 = vcombine.low %v1328_v5, %v1332_v52  ;;  %v7159_v2 = vcombine.high %v1335_v61, %v1339_v62  ;;  %v1384_v5 = vld [vmem:[#allocation20 + $0x498] sm:$0xff] }
 0x4af   :  { %3071 = vmatprep.subr.bf16.mxu1 %v7105_v3  ;;  %v7161_v3 = vcombine.high %v1336_v63, %v1340_v0  ;;  %v1388_v52 = vld [vmem:[#allocation20 + $0x4b8] sm:$0xff] }
 0x4b1   :  { %2990 = vmatpush1.bf16.msra.mxu0 %v7102_v14  ;;  %v7158_v14 = vcombine.low %v1335_v61, %v1339_v62  ;;  %v1391_v61 = vld [vmem:[#allocation20 + $0x4d0] sm:$0xff] }
 0x4b2   :  { %3072 = vmatpush1.bf16.msra.mxu1 %v7104_v15  ;;  %2991 = vmatprep.subr.bf16.mxu0 %v7111_v16  ;;  %v7160_v15 = vcombine.low %v1336_v63, %v1340_v0  ;;  %v7167_v16 = vcombine.high %v1343_v24, %v1347_v11  ;;  %v1395_v62 = vld [vmem:[#allocation20 + $0x4f0] sm:$0xff]  ;;  %v1392_v63 = vld [vmem:[#allocation20 + $0x4d8] sm:$0xff] }
 0x4b3   :  { %3073 = vmatprep.subr.bf16.mxu1 %v7113_v17  ;;  %v7169_v17 = vcombine.high %v1344_v12, %v1348_v13  ;;  %v1396_v0 = vld [vmem:[#allocation20 + $0x4f8] sm:$0xff] }
 0x4b5   :  { %2992 = vmatpush1.bf16.msra.mxu0 %v7110_v20  ;;  %v7166_v20 = vcombine.low %v1343_v24, %v1347_v11  ;;  %v1403_v24 = vld [vmem:[#allocation20 + $0x530] sm:$0xff]  ;;  %v1400_v11 = vld [vmem:[#allocation20 + $0x518] sm:$0xff] }
 0x4b6   :  { %3074 = vmatpush1.bf16.msra.mxu1 %v7112_v21  ;;  %2993 = vmatprep.subr.bf16.mxu0 %v7119_v22  ;;  %v7168_v21 = vcombine.low %v1344_v12, %v1348_v13  ;;  %v7175_v22 = vcombine.high %v1351_v25, %v1355_v40  ;;  %v1404_v12 = vld [vmem:[#allocation20 + $0x538] sm:$0xff]  ;;  %v7216_v13 = vcombine.low %v1392_v63, %v1396_v0 }
 0x4b7   :  { %3075 = vmatprep.subr.bf16.mxu1 %v7121_v23  ;;  %v7177_v23 = vcombine.high %v1352_v18, %v1356_v19 }
 0x4b9   :  { %2994 = vmatpush1.bf16.msra.mxu0 %v7118_v55  ;;  %v7174_v55 = vcombine.low %v1351_v25, %v1355_v40  ;;  %v1408_v25 = vld [vmem:[#allocation20 + $0x558] sm:$0xff] }
 0x4ba   :  { %3076 = vmatpush1.bf16.msra.mxu1 %v7120_v49  ;;  %2995 = vmatprep.subr.bf16.mxu0 %v7127_v28  ;;  %v7176_v49 = vcombine.low %v1352_v18, %v1356_v19  ;;  %v7183_v28 = vcombine.high %v1359_v26, %v1363_v27  ;;  %v1412_v40 = vld [vmem:[#allocation20 + $0x578] sm:$0xff]  ;;  %v7224_v19 = vcombine.low %v1400_v11, %v1404_v12 }
 0x4bb   :  { %3077 = vmatprep.subr.bf16.mxu1 %v7129_v29  ;;  %v7185_v29 = vcombine.high %v1360_v50, %v1364_v51 }
 0x4bd   :  { %2996 = vmatpush1.bf16.msra.mxu0 %v7126_v33  ;;  %v7182_v33 = vcombine.low %v1359_v26, %v1363_v27  ;;  %v1416_v26 = vld [vmem:[#allocation20 + $0x598] sm:$0xff] }
 0x4be   :  { %3078 = vmatpush1.bf16.msra.mxu1 %v7128_v34  ;;  %2997 = vmatprep.subr.bf16.mxu0 %v7135_v35  ;;  %v7184_v34 = vcombine.low %v1360_v50, %v1364_v51  ;;  %v7191_v35 = vcombine.high %v1367_v54, %v1371_v30  ;;  %v1420_v27 = vld [vmem:[#allocation20 + $0x5b8] sm:$0xff]  ;;  %v7232_v51 = vcombine.low %v1408_v25, %v1412_v40 }
 0x4bf   :  { %3079 = vmatprep.subr.bf16.mxu1 %v7137_v36  ;;  %v7193_v36 = vcombine.high %v1368_v31, %v1372_v32  ;;  %v1424_v54 = vld [vmem:[#allocation20 + $0x5d8] sm:$0xff] }
 0x4c0   :  { %v1428_v30 = vld [vmem:[#allocation20 + $0x5f8] sm:$0xff] }
 0x4c1   :  { %2998 = vmatpush1.bf16.msra.mxu0 %v7134_v43  ;;  %v1380_v43 = vld [vmem:[#allocation20 + $0x478] sm:$0xff] }
 0x4c2   :  { %3080 = vmatpush1.bf16.msra.mxu1 %v7136_v44  ;;  %2999 = vmatprep.subr.bf16.mxu0 %v7143_v45  ;;  %v7192_v44 = vcombine.low %v1368_v31, %v1372_v32  ;;  %v7199_v45 = vcombine.high %v1375_v37, %v1379_v38  ;;  %v7201_v48 = vcombine.high %v1376_v42, %v1380_v43 }
 0x4c3   :  { %3081 = vmatprep.subr.bf16.mxu1 %v7145_v46  ;;  %v1383_v46 = vld [vmem:[#allocation20 + $0x490] sm:$0xff]  ;;  %v7240_v32 = vcombine.low %v1416_v26, %v1420_v27 }
 0x4c5   :  { %3000 = vmatpush1.bf16.msra.mxu0 %v7142_v56  ;;  %v7198_v56 = vcombine.low %v1375_v37, %v1379_v38  ;;  %v1432_v37 = vld [vmem:[#allocation20 + $0x618] sm:$0xff] }
 0x4c6   :  { %3082 = vmatpush1.bf16.msra.mxu1 %v7144_v58  ;;  %3001 = vmatprep.subr.bf16.mxu0 %v7151_v59  ;;  %v7200_v58 = vcombine.low %v1376_v42, %v1380_v43  ;;  %v7207_v59 = vcombine.high %v1383_v46, %v1387_v47  ;;  %v1436_v38 = vld [vmem:[#allocation20 + $0x638] sm:$0xff]  ;;  %v7248_v42 = vcombine.low %v1424_v54, %v1428_v30 }
 0x4c7   :  { %3083 = vmatprep.subr.bf16.mxu1 %v7153_v60  ;;  %v7209_v60 = vcombine.high %v1384_v5, %v1388_v52 }
 0x4c9   :  { %3002 = vmatpush1.bf16.msra.mxu0 %v7150_v39  ;;  %v7206_v39 = vcombine.low %v1383_v46, %v1387_v47  ;;  %v1443_v46 = vld [vmem:[#allocation20 + $0x670] sm:$0xff]  ;;  %v1440_v47 = vld [vmem:[#allocation20 + $0x658] sm:$0xff] }
 0x4ca   :  { %3084 = vmatpush1.bf16.msra.mxu1 %v7152_v1  ;;  %3003 = vmatprep.subr.bf16.mxu0 %v7159_v2  ;;  %v7215_v1 = vcombine.high %v1391_v61, %v1395_v62  ;;  %v7217_v2 = vcombine.high %v1392_v63, %v1396_v0 }
 0x4cb   :  { %3085 = vmatprep.subr.bf16.mxu1 %v7161_v3  ;;  %v1399_v3 = vld [vmem:[#allocation20 + $0x510] sm:$0xff] }
 0x4cc   :  { %v7222_v18 = vcombine.low %v1399_v3, %v1403_v24 }
 0x4cd   :  { %3004 = vmatpush1.bf16.msra.mxu0 %v7158_v14  ;;  %v7223_v14 = vcombine.high %v1399_v3, %v1403_v24  ;;  %v1456_v3 = vld [vmem:[#allocation20 + $0x6d8] sm:$0xff] }
 0x4ce   :  { %3086 = vmatpush1.bf16.msra.mxu1 %v7160_v15  ;;  %3005 = vmatprep.subr.bf16.mxu0 %v7167_v16  ;;  %v7225_v15 = vcombine.high %v1400_v11, %v1404_v12  ;;  %v1407_v16 = vld [vmem:[#allocation20 + $0x550] sm:$0xff]  ;;  %v1460_v24 = vld [vmem:[#allocation20 + $0x6f8] sm:$0xff] }
 0x4cf   :  { %3087 = vmatprep.subr.bf16.mxu1 %v7169_v17  ;;  %v1411_v17 = vld [vmem:[#allocation20 + $0x570] sm:$0xff] }
 0x4d0   :  { %v7230_v50 = vcombine.low %v1407_v16, %v1411_v17 }
 0x4d1   :  { %3006 = vmatpush1.bf16.msra.mxu0 %v7166_v20  ;;  %v7231_v20 = vcombine.high %v1407_v16, %v1411_v17  ;;  %v1464_v16 = vld [vmem:[#allocation20 + $0x718] sm:$0xff] }
 0x4d2   :  { %3088 = vmatpush1.bf16.msra.mxu1 %v7168_v21  ;;  %3007 = vmatprep.subr.bf16.mxu0 %v7175_v22  ;;  %v7233_v21 = vcombine.high %v1408_v25, %v1412_v40  ;;  %v1415_v22 = vld [vmem:[#allocation20 + $0x590] sm:$0xff]  ;;  %v1468_v17 = vld [vmem:[#allocation20 + $0x738] sm:$0xff]  ;;  %v7280_v40 = vcombine.low %v1456_v3, %v1460_v24 }
 0x4d3   :  { %3089 = vmatprep.subr.bf16.mxu1 %v7177_v23  ;;  %v1419_v23 = vld [vmem:[#allocation20 + $0x5b0] sm:$0xff] }
 0x4d4   :  { %v7238_v31 = vcombine.low %v1415_v22, %v1419_v23 }
 0x4d5   :  { %3008 = vmatpush1.bf16.msra.mxu0 %v7174_v55  ;;  %v7239_v55 = vcombine.high %v1415_v22, %v1419_v23  ;;  %v1472_v22 = vld [vmem:[#allocation20 + $0x758] sm:$0xff] }
 0x4d6   :  { %3090 = vmatpush1.bf16.msra.mxu1 %v7176_v49  ;;  %3009 = vmatprep.subr.bf16.mxu0 %v7183_v28  ;;  %v7241_v49 = vcombine.high %v1416_v26, %v1420_v27  ;;  %v1423_v28 = vld [vmem:[#allocation20 + $0x5d0] sm:$0xff]  ;;  %v1476_v23 = vld [vmem:[#allocation20 + $0x778] sm:$0xff]  ;;  %v7288_v27 = vcombine.low %v1464_v16, %v1468_v17 }
 0x4d7   :  { %3091 = vmatprep.subr.bf16.mxu1 %v7185_v29  ;;  %v1427_v29 = vld [vmem:[#allocation20 + $0x5f0] sm:$0xff] }
 0x4d9   :  { %3010 = vmatpush1.bf16.msra.mxu0 %v7182_v33  ;;  %v7247_v33 = vcombine.high %v1423_v28, %v1427_v29 }
 0x4da   :  { %3092 = vmatpush1.bf16.msra.mxu1 %v7184_v34  ;;  %3020 = vmatprep.subr.bf16.mxu0 %v7191_v35  ;;  %v7249_v34 = vcombine.high %v1424_v54, %v1428_v30  ;;  %v1431_v35 = vld [vmem:[#allocation20 + $0x610] sm:$0xff]  ;;  %v7296_v30 = vcombine.low %v1472_v22, %v1476_v23 }
 0x4db   :  { %3102 = vmatprep.subr.bf16.mxu1 %v7193_v36  ;;  %v1435_v36 = vld [vmem:[#allocation20 + $0x630] sm:$0xff] }
 0x4dc   :  { %3012 = vmatmul.mubr.bf16.vlgmr.msra.gmra.mrb[8].mxu0 %v9610_v9  ;;  %v7255_v43 = vcombine.high %v1431_v35, %v1435_v36 }
 0x4dd   :  { %3094 = vmatmul.mubr.bf16.vlgmr.msra.gmra.mrb[16].mxu1 %v9610_v9  ;;  %3021 = vmatpush1.bf16.msra.mxu0 %v7190_v41  ;;  %v7208_v9 = vcombine.low %v1384_v5, %v1388_v52  ;;  %v7246_v41 = vcombine.low %v1423_v28, %v1427_v29  ;;  %v7254_v5 = vcombine.low %v1431_v35, %v1435_v36  ;;  %v1480_v28 = vld [vmem:[#allocation20 + $0x798] sm:$0xff] }
 0x4de   :  { %3052 = vmatprep.mubr.bf16.mxu0 %v9654_v53  ;;  %3103 = vmatpush1.bf16.msra.mxu1 %v7192_v44  ;;  %v7257_v44 = vcombine.high %v1432_v37, %v1436_v38  ;;  %v7256_v52 = vcombine.low %v1432_v37, %v1436_v38  ;;  %v1484_v29 = vld [vmem:[#allocation20 + $0x7b8] sm:$0xff] }
 0x4df   :  { %3134 = vmatprep.mubr.bf16.mxu1 %v9654_v53  ;;  %3022 = vmatprep.subr.bf16.mxu0 %v7199_v45  ;;  %v7214_v53 = vcombine.low %v1391_v61, %v1395_v62  ;;  %v1439_v45 = vld [vmem:[#allocation20 + $0x650] sm:$0xff]  ;;  %v1448_v61 = vld [vmem:[#allocation20 + $0x698] sm:$0xff]  ;;  %v7304_v38 = vcombine.low %v1480_v28, %v1484_v29 }
 0x4e0   :  { %3104 = vmatprep.subr.bf16.mxu1 %v7201_v48  ;;  %v1444_v48 = vld [vmem:[#allocation20 + $0x678] sm:$0xff]  ;;  %v7262_v63 = vcombine.low %v1439_v45, %v1443_v46 }
 0x4e1   :  { %3023 = vmatpush1.bf16.msra.mxu0 %v7198_v56  ;;  %v7263_v56 = vcombine.high %v1439_v45, %v1443_v46  ;;  %v1452_v62 = vld [vmem:[#allocation20 + $0x6b8] sm:$0xff]  ;;  %v7264_v0 = vcombine.low %v1440_v47, %v1444_v48  ;;  %v8109_v46 = vld [vmem:[#allocation26 + $0xc] ss:$28 sps:$4 sm:$0xff]  }
 0x4e2   :  { %3105 = vmatpush1.bf16.msra.mxu1 %v7200_v58  ;;  %3024 = vmatprep.subr.bf16.mxu0 %v7207_v59  ;;  %v7265_v58 = vcombine.high %v1440_v47, %v1444_v48  ;;  %v1447_v59 = vld [vmem:[#allocation20 + $0x690] sm:$0xff]  ;;  %v7272_v12 = vcombine.low %v1448_v61, %v1452_v62  ;;  %v1488_v35 = vld [vmem:[#allocation20 + $0x7d8] sm:$0xff] }
 0x4e3   :  { %3106 = vmatprep.subr.bf16.mxu1 %v7209_v60  ;;  %v1451_v60 = vld [vmem:[#allocation20 + $0x6b0] sm:$0xff]  ;;  %v1492_v36 = vld [vmem:[#allocation20 + $0x7f8] sm:$0xff] }
 0x4e4   :  { %v7270_v11 = vcombine.low %v1447_v59, %v1451_v60  ;;  %v8106_v45 = vld [vmem:[#allocation26 + $0x4] ss:$28 sps:$4 sm:$0xff]  }
 0x4e5   :  { %3025 = vmatpush1.bf16.msra.mxu0 %v7206_v39  ;;  %v7271_v39 = vcombine.high %v1447_v59, %v1451_v60  ;;  %v8104_v47 = vld [vmem:[#allocation26] ss:$28 sps:$4 sm:$0xff]   ;;  %v8107_v48 = vld [vmem:[#allocation26 + $0x8] ss:$28 sps:$4 sm:$0xff]   ;;  %v8118_v59 = vld [vmem:[#allocation26 + $0x74] ss:$28 sps:$4 sm:$0xff]  }
 0x4e6   :  { %3107 = vmatpush1.bf16.msra.mxu1 %v7208_v9  ;;  %3026 = vmatprep.subr.bf16.mxu0 %v7215_v1  ;;  %v7273_v9 = vcombine.high %v1448_v61, %v1452_v62  ;;  %v1455_v1 = vld [vmem:[#allocation20 + $0x6d0] sm:$0xff]  ;;  %v8116_v61 = vld [vmem:[#allocation26 + $0x70] ss:$28 sps:$4 sm:$0xff]  }
 0x4e7   :  { %3108 = vmatprep.subr.bf16.mxu1 %v7217_v2  ;;  %v1459_v2 = vld [vmem:[#allocation20 + $0x6f0] sm:$0xff] }
 0x4e8   :  { %v7278_v25 = vcombine.low %v1455_v1, %v1459_v2  ;;  %v8121_v60 = vld [vmem:[#allocation26 + $0x7c] ss:$28 sps:$4 sm:$0xff]  }
 0x4e9   :  { %3027 = vmatpush1.bf16.msra.mxu0 %v7214_v53  ;;  %v7279_v53 = vcombine.high %v1455_v1, %v1459_v2  ;;  %v8119_v62 = vld [vmem:[#allocation26 + $0x78] ss:$28 sps:$4 sm:$0xff]   ;;  %v8133_v1 = vld [vmem:[#allocation26 + $0xec] ss:$28 sps:$4 sm:$0xff]   ;;  %v8128_v2 = vld [vmem:[#allocation26 + $0xe0] ss:$28 sps:$4 sm:$0xff]  }
 0x4ea   :  { %3109 = vmatpush1.bf16.msra.mxu1 %v7216_v13  ;;  %3028 = vmatprep.subr.bf16.mxu0 %v7223_v14  ;;  %v7281_v13 = vcombine.high %v1456_v3, %v1460_v24  ;;  %v1463_v14 = vld [vmem:[#allocation20 + $0x710] sm:$0xff]  ;;  %v8131_v3 = vld [vmem:[#allocation26 + $0xe8] ss:$28 sps:$4 sm:$0xff]  }
 0x4eb   :  { %3110 = vmatprep.subr.bf16.mxu1 %v7225_v15  ;;  %v1467_v15 = vld [vmem:[#allocation20 + $0x730] sm:$0xff] }
 0x4ec   :  { %v7286_v26 = vcombine.low %v1463_v14, %v1467_v15  ;;  %v8136_v24 = vld [vmem:[#allocation26 + $0x11c] ss:$28 sps:$4 sm:$0xff]  }
 0x4ed   :  { %3029 = vmatpush1.bf16.msra.mxu0 %v7222_v18  ;;  %v7287_v18 = vcombine.high %v1463_v14, %v1467_v15  ;;  %v8145_v14 = vld [vmem:[#allocation26 + $0x15c] ss:$28 sps:$4 sm:$0xff]   ;;  %v8140_v15 = vld [vmem:[#allocation26 + $0x150] ss:$28 sps:$4 sm:$0xff]  }
 0x4ee   :  { %3111 = vmatpush1.bf16.msra.mxu1 %v7224_v19  ;;  %3030 = vmatprep.subr.bf16.mxu0 %v7231_v20  ;;  %v7289_v19 = vcombine.high %v1464_v16, %v1468_v17  ;;  %v1471_v20 = vld [vmem:[#allocation20 + $0x750] sm:$0xff]  ;;  %v8148_v17 = vld [vmem:[#allocation26 + $0x18c] ss:$28 sps:$4 sm:$0xff]  }
 0x4ef   :  { %3112 = vmatprep.subr.bf16.mxu1 %v7233_v21  ;;  %v1475_v21 = vld [vmem:[#allocation20 + $0x770] sm:$0xff] }
 0x4f0   :  { %v7294_v54 = vcombine.low %v1471_v20, %v1475_v21  ;;  %v8143_v16 = vld [vmem:[#allocation26 + $0x158] ss:$28 sps:$4 sm:$0xff]  }
 0x4f1   :  { %3031 = vmatpush1.bf16.msra.mxu0 %v7230_v50  ;;  %v7295_v50 = vcombine.high %v1471_v20, %v1475_v21  ;;  %v8157_v20 = vld [vmem:[#allocation26 + $0x1cc] ss:$28 sps:$4 sm:$0xff]   ;;  %v8152_v21 = vld [vmem:[#allocation26 + $0x1c0] ss:$28 sps:$4 sm:$0xff]  }
 0x4f2   :  { %3113 = vmatpush1.bf16.msra.mxu1 %v7232_v51  ;;  %3032 = vmatprep.subr.bf16.mxu0 %v7239_v55  ;;  %v7297_v51 = vcombine.high %v1472_v22, %v1476_v23  ;;  %v1479_v55 = vld [vmem:[#allocation20 + $0x790] sm:$0xff]  ;;  %v8155_v22 = vld [vmem:[#allocation26 + $0x1c8] ss:$28 sps:$4 sm:$0xff]  }
 0x4f3   :  { %3114 = vmatprep.subr.bf16.mxu1 %v7241_v49  ;;  %v1483_v49 = vld [vmem:[#allocation20 + $0x7b0] sm:$0xff] }
 0x4f4   :  { %v7302_v37 = vcombine.low %v1479_v55, %v1483_v49  ;;  %v8160_v23 = vld [vmem:[#allocation26 + $0x1fc] ss:$28 sps:$4 sm:$0xff]  }
 0x4f5   :  { %3033 = vmatpush1.bf16.msra.mxu0 %v7238_v31  ;;  %v7303_v31 = vcombine.high %v1479_v55, %v1483_v49  ;;  %v8169_v55 = vld [vmem:[#allocation26 + $0x23c] ss:$28 sps:$4 sm:$0xff]   ;;  %v8164_v49 = vld [vmem:[#allocation26 + $0x230] ss:$28 sps:$4 sm:$0xff]  }
 0x4f6   :  { %3115 = vmatpush1.bf16.msra.mxu1 %v7240_v32  ;;  %3034 = vmatprep.subr.bf16.mxu0 %v7247_v33  ;;  %v7305_v32 = vcombine.high %v1480_v28, %v1484_v29  ;;  %v1487_v33 = vld [vmem:[#allocation20 + $0x7d0] sm:$0xff]  ;;  %v8172_v29 = vld [vmem:[#allocation26 + $0x26c] ss:$28 sps:$4 sm:$0xff]  }
 0x4f7   :  { %3116 = vmatprep.subr.bf16.mxu1 %v7249_v34  ;;  %v1491_v34 = vld [vmem:[#allocation20 + $0x7f0] sm:$0xff] }
 0x4f8   :  { %v8167_v28 = vld [vmem:[#allocation26 + $0x238] ss:$28 sps:$4 sm:$0xff]  }
 0x4f9   :  { %3035 = vmatpush1.bf16.msra.mxu0 %v7246_v41  ;;  %v7311_v41 = vcombine.high %v1487_v33, %v1491_v34 }
 0x4fa   :  { %3117 = vmatpush1.bf16.msra.mxu1 %v7248_v42  ;;  %3036 = vmatprep.subr.bf16.mxu0 %v7255_v43  ;;  %v7313_v42 = vcombine.high %v1488_v35, %v1492_v36  ;;  %v7310_v43 = vcombine.low %v1487_v33, %v1491_v34  ;;  %v8181_v33 = vld [vmem:[#allocation26 + $0x2ac] ss:$28 sps:$4 sm:$0xff]   ;;  %v8176_v34 = vld [vmem:[#allocation26 + $0x2a0] ss:$28 sps:$4 sm:$0xff]  }
 0x4fb   :  { %3118 = vmatprep.subr.bf16.mxu1 %v7257_v44  ;;  %v7312_v44 = vcombine.low %v1488_v35, %v1492_v36  ;;  %v8179_v35 = vld [vmem:[#allocation26 + $0x2a8] ss:$28 sps:$4 sm:$0xff]   ;;  %v8184_v36 = vld [vmem:[#allocation26 + $0x2dc] ss:$28 sps:$4 sm:$0xff]  }
 0x4fd   :  { %3037 = vmatpush1.bf16.msra.mxu0 %v7254_v5  ;;  %v8112_v5 = vld [vmem:[#allocation26 + $0x3c] ss:$28 sps:$4 sm:$0xff]  }
 0x4fe   :  { %3119 = vmatpush1.bf16.msra.mxu1 %v7256_v52  ;;  %3038 = vmatprep.subr.bf16.mxu0 %v7263_v56  ;;  %v8115_v52 = vld [vmem:[#allocation26 + $0x44] ss:$28 sps:$4 sm:$0xff]   ;;  %v8110_v56 = vld [vmem:[#allocation26 + $0x38] ss:$28 sps:$4 sm:$0xff]  }
 0x4ff   :  { %3120 = vmatprep.subr.bf16.mxu1 %v7265_v58  ;;  %v8113_v58 = vld [vmem:[#allocation26 + $0x40] ss:$28 sps:$4 sm:$0xff]  }
 0x501   :  { %3039 = vmatpush1.bf16.msra.mxu0 %v7262_v63  ;;  %v8124_v63 = vld [vmem:[#allocation26 + $0xac] ss:$28 sps:$4 sm:$0xff]  }
 0x502   :  { %3121 = vmatpush1.bf16.msra.mxu1 %v7264_v0  ;;  %3040 = vmatprep.subr.bf16.mxu0 %v7271_v39  ;;  %v8127_v0 = vld [vmem:[#allocation26 + $0xb4] ss:$28 sps:$4 sm:$0xff]   ;;  %v8122_v39 = vld [vmem:[#allocation26 + $0xa8] ss:$28 sps:$4 sm:$0xff]  }
 0x503   :  { %3122 = vmatprep.subr.bf16.mxu1 %v7273_v9  ;;  %v8130_v9 = vld [vmem:[#allocation26 + $0xe4] ss:$28 sps:$4 sm:$0xff]  }
 0x505   :  { %3041 = vmatpush1.bf16.msra.mxu0 %v7270_v11  ;;  %v8139_v11 = vld [vmem:[#allocation26 + $0x124] ss:$28 sps:$4 sm:$0xff]  }
 0x506   :  { %3123 = vmatpush1.bf16.msra.mxu1 %v7272_v12  ;;  %3042 = vmatprep.subr.bf16.mxu0 %v7279_v53  ;;  %v8134_v12 = vld [vmem:[#allocation26 + $0x118] ss:$28 sps:$4 sm:$0xff]   ;;  %v8137_v53 = vld [vmem:[#allocation26 + $0x120] ss:$28 sps:$4 sm:$0xff]  }
 0x507   :  { %3124 = vmatprep.subr.bf16.mxu1 %v7281_v13  ;;  %v8142_v13 = vld [vmem:[#allocation26 + $0x154] ss:$28 sps:$4 sm:$0xff]  }
 0x509   :  { %3043 = vmatpush1.bf16.msra.mxu0 %v7278_v25  ;;  %v8151_v25 = vld [vmem:[#allocation26 + $0x194] ss:$28 sps:$4 sm:$0xff]  }
 0x50a   :  { %3125 = vmatpush1.bf16.msra.mxu1 %v7280_v40  ;;  %3044 = vmatprep.subr.bf16.mxu0 %v7287_v18  ;;  %v8146_v40 = vld [vmem:[#allocation26 + $0x188] ss:$28 sps:$4 sm:$0xff]   ;;  %v8149_v18 = vld [vmem:[#allocation26 + $0x190] ss:$28 sps:$4 sm:$0xff]  }
 0x50b   :  { %3126 = vmatprep.subr.bf16.mxu1 %v7289_v19  ;;  %v8154_v19 = vld [vmem:[#allocation26 + $0x1c4] ss:$28 sps:$4 sm:$0xff]  }
 0x50d   :  { %3045 = vmatpush1.bf16.msra.mxu0 %v7286_v26  ;;  %v8163_v26 = vld [vmem:[#allocation26 + $0x204] ss:$28 sps:$4 sm:$0xff]  }
 0x50e   :  { %3127 = vmatpush1.bf16.msra.mxu1 %v7288_v27  ;;  %3046 = vmatprep.subr.bf16.mxu0 %v7295_v50  ;;  %v8158_v27 = vld [vmem:[#allocation26 + $0x1f8] ss:$28 sps:$4 sm:$0xff]   ;;  %v8161_v50 = vld [vmem:[#allocation26 + $0x200] ss:$28 sps:$4 sm:$0xff]  }
 0x50f   :  { %3128 = vmatprep.subr.bf16.mxu1 %v7297_v51  ;;  %v8166_v51 = vld [vmem:[#allocation26 + $0x234] ss:$28 sps:$4 sm:$0xff]  }
 0x511   :  { %3047 = vmatpush1.bf16.msra.mxu0 %v7294_v54  ;;  %v8175_v54 = vld [vmem:[#allocation26 + $0x274] ss:$28 sps:$4 sm:$0xff]  }
 0x512   :  { %3129 = vmatpush1.bf16.msra.mxu1 %v7296_v30  ;;  %3048 = vmatprep.subr.bf16.mxu0 %v7303_v31  ;;  %v8170_v30 = vld [vmem:[#allocation26 + $0x268] ss:$28 sps:$4 sm:$0xff]   ;;  %v8173_v31 = vld [vmem:[#allocation26 + $0x270] ss:$28 sps:$4 sm:$0xff]  }
 0x513   :  { %3130 = vmatprep.subr.bf16.mxu1 %v7305_v32  ;;  %v8178_v32 = vld [vmem:[#allocation26 + $0x2a4] ss:$28 sps:$4 sm:$0xff]  }
 0x515   :  { %3049 = vmatpush1.bf16.msra.mxu0 %v7302_v37  ;;  %v8187_v37 = vld [vmem:[#allocation26 + $0x2e4] ss:$28 sps:$4 sm:$0xff]  }
 0x516   :  { %3131 = vmatpush1.bf16.msra.mxu1 %v7304_v38  ;;  %3050 = vmatprep.subr.bf16.mxu0 %v7311_v41  ;;  %v8182_v38 = vld [vmem:[#allocation26 + $0x2d8] ss:$28 sps:$4 sm:$0xff]   ;;  %v8185_v41 = vld [vmem:[#allocation26 + $0x2e0] ss:$28 sps:$4 sm:$0xff]  }
 0x517   :  { %3132 = vmatprep.subr.bf16.mxu1 %v7313_v42  ;;  %v8190_v42 = vld [vmem:[#allocation26 + $0x314] ss:$28 sps:$4 sm:$0xff]  }
 0x519   :  { %3051 = vmatpush1.bf16.msra.mxu0 %v7310_v43  ;;  %v8193_v43 = vld [vmem:[#allocation26 + $0x31c] ss:$28 sps:$4 sm:$0xff]  }
 0x51a   :  { %3133 = vmatpush1.bf16.msra.mxu1 %v7312_v44  ;;  %6280 = vmatprep.subr.bf16.mxu0 %v8106_v45  ;;  %v8188_v44 = vld [vmem:[#allocation26 + $0x310] ss:$28 sps:$4 sm:$0xff]   ;;  %v8191_v45 = vld [vmem:[#allocation26 + $0x318] ss:$28 sps:$4 sm:$0xff]  }
 0x51b   :  { %6444 = vmatprep.subr.bf16.mxu1 %v8109_v46  ;;  %v8196_v46 = vld [vmem:[#allocation26 + $0x34c] ss:$28 sps:$4 sm:$0xff]  }
 0x51c   :  { %3053 = vmatmul.mubr.bf16.vlgmr.msra.gmra.mrb[8].mxu0 %v9656_v57 }
 0x51d   :  { %3135 = vmatmul.mubr.bf16.vlgmr.msra.gmra.mrb[16].mxu1 %v9656_v57  ;;  %6281 = vmatpush1.bf16.msra.mxu0 %v8104_v47  ;;  %v8125_v57 = vld [vmem:[#allocation26 + $0xb0] ss:$28 sps:$4 sm:$0xff]  }
 0x51e   :  { %6445 = vmatpush1.bf16.msra.mxu1 %v8107_v48  ;;  %6282 = vmatprep.subr.bf16.mxu0 %v8112_v5  ;;  %v8199_v47 = vld [vmem:[#allocation26 + $0x354] ss:$28 sps:$4 sm:$0xff]   ;;  %v8194_v48 = vld [vmem:[#allocation26 + $0x348] ss:$28 sps:$4 sm:$0xff]  }
 0x51f   :  { %6446 = vmatprep.subr.bf16.mxu1 %v8115_v52  ;;  %v8197_v5 = vld [vmem:[#allocation26 + $0x350] ss:$28 sps:$4 sm:$0xff]   ;;  %v8202_v52 = vld [vmem:[#allocation26 + $0x384] ss:$28 sps:$4 sm:$0xff]  }
 0x521   :  { %6283 = vmatpush1.bf16.msra.mxu0 %v8110_v56  ;;  %v8205_v56 = vld [vmem:[#allocation26 + $0x38c] ss:$28 sps:$4 sm:$0xff]  }
 0x522   :  { %6447 = vmatpush1.bf16.msra.mxu1 %v8113_v58  ;;  %6284 = vmatprep.subr.bf16.mxu0 %v8118_v59  ;;  %v9670_v58 = vld [vmem:[#allocation22] sm:$0xff] }
 0x523   :  { %6448 = vmatprep.subr.bf16.mxu1 %v8121_v60  ;;  %v1498_v59 = vrot.slane %v9670_v58, %v9553_v8  ;;  %v1502_v60 = vrot.slane %v9670_v58, %v9556_v10 }
 0x525   :  { %6285 = vmatpush1.bf16.msra.mxu0 %v8116_v61  ;;  %v1510_v61 = vrot.slane %v9670_v58, %v9608_v6 }
 0x526   :  { %6449 = vmatpush1.bf16.msra.mxu1 %v8119_v62  ;;  %6286 = vmatprep.subr.bf16.mxu0 %v8124_v63 }
 0x527   :  { %6450 = vmatprep.subr.bf16.mxu1 %v8127_v0 }
 0x529   :  { %6287 = vmatpush1.bf16.msra.mxu0 %v8122_v39 }
 0x52a   :  { %6451 = vmatpush1.bf16.msra.mxu1 %v8125_v57  ;;  %6288 = vmatprep.subr.bf16.mxu0 %v8130_v9 }
 0x52b   :  { %6452 = vmatprep.subr.bf16.mxu1 %v8133_v1 }
 0x52d   :  { %6289 = vmatpush1.bf16.msra.mxu0 %v8128_v2 }
 0x52e   :  { %6453 = vmatpush1.bf16.msra.mxu1 %v8131_v3  ;;  %6290 = vmatprep.subr.bf16.mxu0 %v8136_v24 }
 0x52f   :  { %6454 = vmatprep.subr.bf16.mxu1 %v8139_v11 }
 0x531   :  { %6291 = vmatpush1.bf16.msra.mxu0 %v8134_v12 }
 0x532   :  { %6455 = vmatpush1.bf16.msra.mxu1 %v8137_v53  ;;  %6292 = vmatprep.subr.bf16.mxu0 %v8142_v13 }
 0x533   :  { %6456 = vmatprep.subr.bf16.mxu1 %v8145_v14 }
 0x535   :  { %6293 = vmatpush1.bf16.msra.mxu0 %v8140_v15 }
 0x536   :  { %6457 = vmatpush1.bf16.msra.mxu1 %v8143_v16  ;;  %6294 = vmatprep.subr.bf16.mxu0 %v8148_v17 }
 0x537   :  { %6458 = vmatprep.subr.bf16.mxu1 %v8151_v25 }
 0x539   :  { %6295 = vmatpush1.bf16.msra.mxu0 %v8146_v40 }
 0x53a   :  { %6459 = vmatpush1.bf16.msra.mxu1 %v8149_v18  ;;  %6296 = vmatprep.subr.bf16.mxu0 %v8154_v19 }
 0x53b   :  { %6460 = vmatprep.subr.bf16.mxu1 %v8157_v20 }
 0x53d   :  { %6297 = vmatpush1.bf16.msra.mxu0 %v8152_v21 }
 0x53e   :  { %6461 = vmatpush1.bf16.msra.mxu1 %v8155_v22  ;;  %6298 = vmatprep.subr.bf16.mxu0 %v8160_v23 }
 0x53f   :  { %6462 = vmatprep.subr.bf16.mxu1 %v8163_v26 }
 0x541   :  { %6299 = vmatpush1.bf16.msra.mxu0 %v8158_v27 }
 0x542   :  { %6463 = vmatpush1.bf16.msra.mxu1 %v8161_v50  ;;  %6300 = vmatprep.subr.bf16.mxu0 %v8166_v51 }
 0x543   :  { %6464 = vmatprep.subr.bf16.mxu1 %v8169_v55  ;;  %v1506_v55 = vrot.slane %v9670_v58, %v9603_v4 }
 0x545   :  { %6301 = vmatpush1.bf16.msra.mxu0 %v8164_v49 }
 0x546   :  { %6465 = vmatpush1.bf16.msra.mxu1 %v8167_v28  ;;  %6302 = vmatprep.subr.bf16.mxu0 %v8172_v29 }
 0x547   :  { %6466 = vmatprep.subr.bf16.mxu1 %v8175_v54 }
 0x549   :  { %6303 = vmatpush1.bf16.msra.mxu0 %v8170_v30 }
 0x54a   :  { %6467 = vmatpush1.bf16.msra.mxu1 %v8173_v31  ;;  %6304 = vmatprep.subr.bf16.mxu0 %v8178_v32 }
 0x54b   :  { %6468 = vmatprep.subr.bf16.mxu1 %v8181_v33 }
 0x54d   :  { %6305 = vmatpush1.bf16.msra.mxu0 %v8176_v34 }
 0x54e   :  { %6469 = vmatpush1.bf16.msra.mxu1 %v8179_v35  ;;  %6306 = vmatprep.subr.bf16.mxu0 %v8184_v36 }
 0x54f   :  { %6470 = vmatprep.subr.bf16.mxu1 %v8187_v37 }
 0x551   :  { %6307 = vmatpush1.bf16.msra.mxu0 %v8182_v38 }
 0x552   :  { %6471 = vmatpush1.bf16.msra.mxu1 %v8185_v41  ;;  %6308 = vmatprep.subr.bf16.mxu0 %v8190_v42 }
 0x553   :  { %6472 = vmatprep.subr.bf16.mxu1 %v8193_v43 }
 0x555   :  { %6309 = vmatpush1.bf16.msra.mxu0 %v8188_v44 }
 0x556   :  { %6473 = vmatpush1.bf16.msra.mxu1 %v8191_v45  ;;  %6310 = vmatprep.subr.bf16.mxu0 %v8196_v46 }
 0x557   :  { %6474 = vmatprep.subr.bf16.mxu1 %v8199_v47 }
 0x559   :  { %6311 = vmatpush1.bf16.msra.mxu0 %v8194_v48 }
 0x55a   :  { %6475 = vmatpush1.bf16.msra.mxu1 %v8197_v5  ;;  %6321 = vmatprep.subr.bf16.mxu0 %v8202_v52 }
 0x55b   :  { %6485 = vmatprep.subr.bf16.mxu1 %v8205_v56 }
 0x56f   :  { %v2890_v62 = vpop.f32.mrb[4].mxu0  ;;  %v2972_v63 = vpop.f32.mrb[12].mxu1 }
 0x570   :  { %v7879_v0 = vadd.f32 %v2890_v62, %v1498_v59  ;;  %v2892_v39 = vpop.f32.mrb[5].mxu0  ;;  %v2974_v57 = vpop.f32.mrb[13].mxu1  ;;  %v7881_v32 = vadd.f32 %v2972_v63, %v1506_v55 }
 0x571   :  { %v7880_v9 = vadd.f32 %v2892_v39, %v1502_v60  ;;  %v7882_v1 = vadd.f32 %v2974_v57, %v1510_v61  ;;  %v2894_v2 = vpop.f32.mrb[6].mxu0  ;;  %v2976_v3 = vpop.f32.mrb[14].mxu1 }
 0x572   :  { %v3145_v24 = vrot.slane %v7879_v0, 4  ;;  %v2895_v11 = vpop.f32.mrb[7].mxu0  ;;  %v2977_v12 = vpop.f32.mrb[15].mxu1  ;;  %v3157_v41 = vrot.slane %v7881_v32, 4 }
 0x573   :  { %v3151_v53 = vrot.slane %v7880_v9, 4  ;;  %v3163_v13 = vrot.slane %v7882_v1, 4  ;;  %v9680_v12 = vld [vmem:[#allocation23] sm:$0xff] }
 0x574   :  { %v3146_v14 = vadd.f32 %v7879_v0, %v3145_v24  ;;  %v3158_v48 = vadd.f32 %v7881_v32, %v3157_v41 }
 0x575   :  { %v3152_v15 = vadd.f32 %v7880_v9, %v3151_v53  ;;  %v3164_v16 = vadd.f32 %v7882_v1, %v3163_v13  ;;  %v9682_v13 = vld [vmem:[#allocation25] sm:$0xff] }
 0x576   :  { %v3147_v17 = vrot.slane %v3146_v14, 2  ;;  %v3159_v62 = vrot.slane %v3158_v48, 2 }
 0x577   :  { %v3153_v25 = vrot.slane %v3152_v15, 2  ;;  %v3165_v40 = vrot.slane %v3164_v16, 2 }
 0x578   :  { %v3148_v18 = vadd.f32 %v3147_v17, %v3146_v14  ;;  %v3160_v2 = vadd.f32 %v3159_v62, %v3158_v48  ;;  %v3301_v14 = vrot.slane %v9680_v12, %v9553_v8  ;;  %v3350_v17 = vrot.slane %v9682_v13, %v9553_v8  ;;  %v8223_v62 = vld [vmem:[#allocation26 + $0x434] ss:$28 sps:$4 sm:$0xff]  }
 0x579   :  { %v3154_v19 = vadd.f32 %v3153_v25, %v3152_v15  ;;  %v3166_v20 = vadd.f32 %v3165_v40, %v3164_v16  ;;  %v3305_v40 = vrot.slane %v9680_v12, %v9556_v10 }
 0x57a   :  { %v3149_v21 = vrot.slane %v3148_v18, 1  ;;  %v3161_v11 = vrot.slane %v3160_v2, 1 }
 0x57b   :  { %v3155_v22 = vrot.slane %v3154_v19, 1  ;;  %v3167_v23 = vrot.slane %v3166_v20, 1 }
 0x57c   :  { %v3150_v26 = vadd.f32 %v3149_v21, %v3148_v18  ;;  %v3162_v53 = vadd.f32 %v3161_v11, %v3160_v2  ;;  %v8227_v2 = vld [vmem:[#allocation26 + $0x468] ss:$28 sps:$4 sm:$0xff]  }
 0x57d   :  { %v3156_v27 = vadd.f32 %v3155_v22, %v3154_v19  ;;  %v3168_v50 = vadd.f32 %v3167_v23, %v3166_v20  ;;  %v3313_v19 = vrot.slane %v9680_v12, %v9608_v6  ;;  %v3354_v23 = vrot.slane %v9682_v13, %v9556_v10  ;;  %v8235_v11 = vld [vmem:[#allocation26 + $0x4a4] ss:$28 sps:$4 sm:$0xff]  }
 0x57e   :  { %v3193_v51 = vmul.f32 0.125, %v3150_v26  ;;  %v3195_v25 = vmul.f32 0.125, %v3162_v53  ;;  %v8230_v53 = vld [vmem:[#allocation26 + $0x498] ss:$28 sps:$4 sm:$0xff]  }
 0x57f   :  { %v3194_v49 = vmul.f32 0.125, %v3156_v27  ;;  %v3196_v28 = vmul.f32 0.125, %v3168_v50  ;;  %v3362_v27 = vrot.slane %v9682_v13, %v9608_v6 }
 0x580   :  { %v3201_v29 = vsub.f32 %v7879_v0, %v3193_v51  ;;  %v9696_v51 = vsub.f32 %v7881_v32, %v3195_v25  ;;  %v8203_v32 = vld [vmem:[#allocation26 + $0x388] ss:$28 sps:$4 sm:$0xff]   ;;  %v8236_v25 = vld [vmem:[#allocation26 + $0x4d0] ss:$28 sps:$4 sm:$0xff]  }
 0x581   :  { %v3202_v54 = vsub.f32 %v7880_v9, %v3194_v49  ;;  %v3204_v30 = vsub.f32 %v7882_v1, %v3196_v28 }
 0x582   :  { %v3209_v31 = vmul.f32 %v3201_v29, %v3201_v29 }
 0x583   :  { %v3210_v33 = vmul.f32 %v3202_v54, %v3202_v54  ;;  %v3212_v34 = vmul.f32 %v3204_v30, %v3204_v30 }
 0x584   :  { %v3217_v35 = vrot.slane %v3209_v31, 4 }
 0x585   :  { %v3223_v36 = vrot.slane %v3210_v33, 4  ;;  %v3235_v37 = vrot.slane %v3212_v34, 4 }
 0x586   :  { %v3218_v38 = vadd.f32 %v3217_v35, %v3209_v31 }
 0x587   :  { %v3224_v42 = vadd.f32 %v3223_v36, %v3210_v33  ;;  %v3236_v43 = vadd.f32 %v3235_v37, %v3212_v34  ;;  %v3211_v33 = vmul.f32 %v9696_v51, %v9696_v51  ;;  %v8200_v37 = vld [vmem:[#allocation26 + $0x380] ss:$28 sps:$4 sm:$0xff]  }
 0x588   :  { %v3219_v44 = vrot.slane %v3218_v38, 2 }
 0x589   :  { %v3225_v45 = vrot.slane %v3224_v42, 2  ;;  %v3237_v46 = vrot.slane %v3236_v43, 2  ;;  %v3229_v41 = vrot.slane %v3211_v33, 4 }
 0x58a   :  { %v3220_v47 = vadd.f32 %v3219_v44, %v3218_v38  ;;  %v8211_v44 = vld [vmem:[#allocation26 + $0x3c4] ss:$28 sps:$4 sm:$0xff]  }
 0x58b   :  { %v3226_v5 = vadd.f32 %v3225_v45, %v3224_v42  ;;  %v3238_v52 = vadd.f32 %v3237_v46, %v3236_v43  ;;  %v8208_v43 = vld [vmem:[#allocation26 + $0x3bc] ss:$28 sps:$4 sm:$0xff]   ;;  %v3230_v48 = vadd.f32 %v3229_v41, %v3211_v33  ;;  %v8262_v33 = vld [vmem:[#allocation26 + $0x5b4] ss:$28 sps:$4 sm:$0xff]  }
 0x58c   :  { %v3221_v56 = vrot.slane %v3220_v47, 1  ;;  %v8206_v46 = vld [vmem:[#allocation26 + $0x3b8] ss:$28 sps:$4 sm:$0xff]   ;;  %v8269_v41 = vld [vmem:[#allocation26 + $0x5f0] ss:$28 sps:$4 sm:$0xff]  }
 0x58d   :  { %v3227_v59 = vrot.slane %v3226_v5, 1  ;;  %v3239_v60 = vrot.slane %v3238_v52, 1 }
 0x58e   :  { %v3222_v61 = vadd.f32 %v3221_v56, %v3220_v47  ;;  %v8209_v47 = vld [vmem:[#allocation26 + $0x3c0] ss:$28 sps:$4 sm:$0xff]   ;;  %v8212_v56 = vld [vmem:[#allocation26 + $0x3f0] ss:$28 sps:$4 sm:$0xff]  }
 0x58f   :  { %v3228_v63 = vadd.f32 %v3227_v59, %v3226_v5  ;;  %v3240_v0 = vadd.f32 %v3239_v60, %v3238_v52  ;;  %v8214_v5 = vld [vmem:[#allocation26 + $0x3f4] ss:$28 sps:$4 sm:$0xff]   ;;  %v8217_v52 = vld [vmem:[#allocation26 + $0x3fc] ss:$28 sps:$4 sm:$0xff]   ;;  %v3231_v60 = vrot.slane %v3230_v48, 2 }
 0x590   :  { %v3265_v39 = vmul.f32 0.125, %v3222_v61  ;;  %v8215_v59 = vld [vmem:[#allocation26 + $0x3f8] ss:$28 sps:$4 sm:$0xff]   ;;  %v8220_v61 = vld [vmem:[#allocation26 + $0x42c] ss:$28 sps:$4 sm:$0xff]  }
 0x591   :  { %v3266_v57 = vmul.f32 0.125, %v3228_v63  ;;  %v3268_v9 = vmul.f32 0.125, %v3240_v0  ;;  %v8218_v63 = vld [vmem:[#allocation26 + $0x428] ss:$28 sps:$4 sm:$0xff]   ;;  %v8221_v0 = vld [vmem:[#allocation26 + $0x430] ss:$28 sps:$4 sm:$0xff]  }
 0x592   :  { %v3273_v1 = vadd.f32 1e-05, %v3265_v39  ;;  %v3232_v39 = vadd.f32 %v3231_v60, %v3230_v48  ;;  %v8272_v48 = vld [vmem:[#allocation26 + $0x620] ss:$28 sps:$4 sm:$0xff]   ;;  %v3358_v60 = vrot.slane %v9682_v13, %v9603_v4 }
 0x593   :  { %v3274_v3 = vadd.f32 1e-05, %v3266_v57  ;;  %v3276_v24 = vadd.f32 1e-05, %v3268_v9  ;;  %v8226_v57 = vld [vmem:[#allocation26 + $0x464] ss:$28 sps:$4 sm:$0xff]  }
 0x594   :  { %8756 = vrsqrt.f32 %v3273_v1  ;;  %v8229_v9 = vld [vmem:[#allocation26 + $0x46c] ss:$28 sps:$4 sm:$0xff]   ;;  %v8224_v1 = vld [vmem:[#allocation26 + $0x460] ss:$28 sps:$4 sm:$0xff]  }
 0x595   :  { %8758 = vrsqrt.f32 %v3274_v3  ;;  %v3233_v3 = vrot.slane %v3232_v39, 1 }
 0x596   :  { %8760 = vrsqrt.f32 %v3276_v24  ;;  %v8232_v24 = vld [vmem:[#allocation26 + $0x49c] ss:$28 sps:$4 sm:$0xff]  }
 0x59e   :  { %v8757_v15 = vpop.eup %8756 }
 0x59f   :  { %v3289_v16 = vmul.f32 %v8757_v15, %v3201_v29  ;;  %v8759_v18 = vpop.eup %8758  ;;  %v3234_v15 = vadd.f32 %v3233_v3, %v3232_v39  ;;  %v8284_v39 = vld [vmem:[#allocation26 + $0x690] ss:$28 sps:$4 sm:$0xff]   ;;  %v8290_v3 = vld [vmem:[#allocation26 + $0x6c8] ss:$28 sps:$4 sm:$0xff]  }
 0x5a0   :  { %v8761_v20 = vpop.eup %8760  ;;  %v3290_v22 = vmul.f32 %v8759_v18, %v3202_v54 }
 0x5a1   :  { %v3338_v21 = vmul.f32 %v3301_v14, %v3289_v16  ;;  %v3292_v26 = vmul.f32 %v8761_v20, %v3204_v30  ;;  %v8233_v14 = vld [vmem:[#allocation26 + $0x4a0] ss:$28 sps:$4 sm:$0xff]   ;;  %v8238_v16 = vld [vmem:[#allocation26 + $0x4d4] ss:$28 sps:$4 sm:$0xff]   ;;  %v3267_v18 = vmul.f32 0.125, %v3234_v15  ;;  %v9718_v15 = vsub.s32 4, %v9550_v7 }
 0x5a2   :  { %v3339_v55 = vmul.f32 %v3305_v40, %v3290_v22  ;;  %v8239_v40 = vld [vmem:[#allocation26 + $0x4d8] ss:$28 sps:$4 sm:$0xff]   ;;  %v8245_v22 = vld [vmem:[#allocation26 + $0x510] ss:$28 sps:$4 sm:$0xff]  }
 0x5a3   :  { %v3387_v50 = vadd.f32 %v3350_v17, %v3338_v21  ;;  %v3341_v49 = vmul.f32 %v3313_v19, %v3292_v26  ;;  %v8241_v17 = vld [vmem:[#allocation26 + $0x4dc] ss:$28 sps:$4 sm:$0xff]   ;;  %v8244_v19 = vld [vmem:[#allocation26 + $0x50c] ss:$28 sps:$4 sm:$0xff]   ;;  %v8247_v20 = vld [vmem:[#allocation26 + $0x514] ss:$28 sps:$4 sm:$0xff]  }
 0x5a4   :  { %v3388_v28 = vadd.f32 %v3354_v23, %v3339_v55  ;;  %v8242_v21 = vld [vmem:[#allocation26 + $0x508] ss:$28 sps:$4 sm:$0xff]   ;;  %v3275_v23 = vadd.f32 1e-05, %v3267_v18 }
 0x5a5   :  { %vm3395_vm8 = vcmp.gt.f32.partialorder %v3387_v50, 0.0  ;;  %v3403_v29 = vmul.f32 0.2, %v3387_v50  ;;  %v3390_v31 = vadd.f32 %v3362_v27, %v3341_v49  ;;  %v8250_v26 = vld [vmem:[#allocation26 + $0x544] ss:$28 sps:$4 sm:$0xff]  }
 0x5a6   :  { %vm3396_vm9 = vcmp.gt.f32.partialorder %v3388_v28, 0.0  ;;  %v3404_v54 = vmul.f32 0.2, %v3388_v28  ;;  %v8253_v27 = vld [vmem:[#allocation26 + $0x54c] ss:$28 sps:$4 sm:$0xff]   ;;  %8762 = vrsqrt.f32 %v3275_v23 }
 0x5a7   :  { %v3411_v34 = vsel %vm3395_vm8, %v3387_v50, %v3403_v29  ;;  %vm3398_vm10 = vcmp.gt.f32.partialorder %v3390_v31, 0.0  ;;  %v3406_v30 = vmul.f32 0.2, %v3390_v31  ;;  %v8248_v50 = vld [vmem:[#allocation26 + $0x540] ss:$28 sps:$4 sm:$0xff]  }
 0x5a8   :  { %v3412_v35 = vsel %vm3396_vm9, %v3388_v28, %v3404_v54  ;;  %v9702_v42 = vpack.c.bf16 %v3411_v34, %v3411_v34  ;;  %v8251_v55 = vld [vmem:[#allocation26 + $0x548] ss:$28 sps:$4 sm:$0xff]   ;;  %v8256_v49 = vld [vmem:[#allocation26 + $0x57c] ss:$28 sps:$4 sm:$0xff]   ;;  %v8260_v34 = vld [vmem:[#allocation26 + $0x5b0] ss:$28 sps:$4 sm:$0xff]  }
 0x5a9   :  { %v9700_v36 = vpack.c.bf16 %v3412_v35, %v3412_v35  ;;  %v3414_v38 = vsel %vm3398_vm10, %v3390_v31, %v3406_v30  ;;  %v8259_v28 = vld [vmem:[#allocation26 + $0x584] ss:$28 sps:$4 sm:$0xff]   ;;  %v8254_v29 = vld [vmem:[#allocation26 + $0x578] ss:$28 sps:$4 sm:$0xff]   ;;  %v8268_v35 = vld [vmem:[#allocation26 + $0x5ec] ss:$28 sps:$4 sm:$0xff]  }
 0x5aa   :  { %v9708_v45 = vpack.c.bf16 %v3414_v38, %v3414_v38  ;;  %v8257_v31 = vld [vmem:[#allocation26 + $0x580] ss:$28 sps:$4 sm:$0xff]   ;;  %v8263_v30 = vld [vmem:[#allocation26 + $0x5b8] ss:$28 sps:$4 sm:$0xff]   ;;  %v8266_v38 = vld [vmem:[#allocation26 + $0x5e8] ss:$28 sps:$4 sm:$0xff]  }
 0x5ab   :  { %6312 = vmatprep.mubr.bf16.mxu0 %v9700_v36  ;;  %6476 = vmatprep.mubr.bf16.mxu1 %v9700_v36  ;;  %v8265_v54 = vld [vmem:[#allocation26 + $0x5bc] ss:$28 sps:$4 sm:$0xff]  }
 0x5ac   :  { %6313 = vmatmul.mubr.bf16.vlgmr.msra.gmra.mrb[12].mxu0 %v9702_v42  ;;  %6477 = vmatmul.mubr.bf16.vlgmr.msra.gmra.mrb[20].mxu1 %v9702_v42  ;;  %v8302_v23 = vld [vmem:[#allocation26 + $0x738] ss:$28 sps:$4 sm:$0xff]  }
 0x5ad   :  { %6322 = vmatpush1.bf16.msra.mxu0 %v8200_v37  ;;  %6486 = vmatpush1.bf16.msra.mxu1 %v8203_v32  ;;  %v8271_v37 = vld [vmem:[#allocation26 + $0x5f4] ss:$28 sps:$4 sm:$0xff]  }
 0x5ae   :  { %6353 = vmatprep.mubr.bf16.mxu0 %v9708_v45  ;;  %6517 = vmatprep.mubr.bf16.mxu1 %v9708_v45 }
 0x5af   :  { %6323 = vmatprep.subr.bf16.mxu0 %v8208_v43  ;;  %6487 = vmatprep.subr.bf16.mxu1 %v8211_v44  ;;  %v8274_v43 = vld [vmem:[#allocation26 + $0x624] ss:$28 sps:$4 sm:$0xff]   ;;  %v8277_v44 = vld [vmem:[#allocation26 + $0x62c] ss:$28 sps:$4 sm:$0xff]  }
 0x5b0   :  { %v8763_v32 = vpop.eup %8762 }
 0x5b1   :  { %6324 = vmatpush1.bf16.msra.mxu0 %v8206_v46  ;;  %6488 = vmatpush1.bf16.msra.mxu1 %v8209_v47  ;;  %v3291_v46 = vmul.f32 %v8763_v32, %v9696_v51  ;;  %v3309_v47 = vrot.slane %v9680_v12, %v9603_v4  ;;  %v8286_v51 = vld [vmem:[#allocation26 + $0x694] ss:$28 sps:$4 sm:$0xff]  }
 0x5b2   :  { %6325 = vmatprep.subr.bf16.mxu0 %v8214_v5  ;;  %6489 = vmatprep.subr.bf16.mxu1 %v8217_v52  ;;  %v8275_v5 = vld [vmem:[#allocation26 + $0x628] ss:$28 sps:$4 sm:$0xff]   ;;  %v8280_v52 = vld [vmem:[#allocation26 + $0x65c] ss:$28 sps:$4 sm:$0xff]  }
 0x5b5   :  { %6326 = vmatpush1.bf16.msra.mxu0 %v8212_v56  ;;  %6490 = vmatpush1.bf16.msra.mxu1 %v8215_v59  ;;  %v8283_v56 = vld [vmem:[#allocation26 + $0x664] ss:$28 sps:$4 sm:$0xff]   ;;  %v3340_v59 = vmul.f32 %v3309_v47, %v3291_v46  ;;  %v8316_v46 = vld [vmem:[#allocation26 + $0x7ac] ss:$28 sps:$4 sm:$0xff]   ;;  %v8319_v47 = vld [vmem:[#allocation26 + $0x7b4] ss:$28 sps:$4 sm:$0xff]  }
 0x5b6   :  { %6327 = vmatprep.subr.bf16.mxu0 %v8220_v61  ;;  %6491 = vmatprep.subr.bf16.mxu1 %v8223_v62  ;;  %v8278_v61 = vld [vmem:[#allocation26 + $0x658] ss:$28 sps:$4 sm:$0xff]   ;;  %v8281_v62 = vld [vmem:[#allocation26 + $0x660] ss:$28 sps:$4 sm:$0xff]  }
 0x5b9   :  { %6328 = vmatpush1.bf16.msra.mxu0 %v8218_v63  ;;  %6492 = vmatpush1.bf16.msra.mxu1 %v8221_v0  ;;  %v8289_v63 = vld [vmem:[#allocation26 + $0x69c] ss:$28 sps:$4 sm:$0xff]   ;;  %v3389_v0 = vadd.f32 %v3358_v60, %v3340_v59  ;;  %v8314_v60 = vld [vmem:[#allocation26 + $0x7a8] ss:$28 sps:$4 sm:$0xff]  }
 0x5ba   :  { %6329 = vmatprep.subr.bf16.mxu0 %v8226_v57  ;;  %6493 = vmatprep.subr.bf16.mxu1 %v8229_v9  ;;  %v8287_v57 = vld [vmem:[#allocation26 + $0x698] ss:$28 sps:$4 sm:$0xff]   ;;  %v8292_v9 = vld [vmem:[#allocation26 + $0x6cc] ss:$28 sps:$4 sm:$0xff]  }
 0x5bb   :  { %vm3397_vm11 = vcmp.gt.f32.partialorder %v3389_v0, 0.0 }
 0x5bd   :  { %6330 = vmatpush1.bf16.msra.mxu0 %v8224_v1  ;;  %6494 = vmatpush1.bf16.msra.mxu1 %v8227_v2  ;;  %v8295_v1 = vld [vmem:[#allocation26 + $0x6d4] ss:$28 sps:$4 sm:$0xff]   ;;  %v3405_v2 = vmul.f32 0.2, %v3389_v0 }
 0x5be   :  { %6331 = vmatprep.subr.bf16.mxu0 %v8232_v24  ;;  %6495 = vmatprep.subr.bf16.mxu1 %v8235_v11  ;;  %v8293_v24 = vld [vmem:[#allocation26 + $0x6d0] ss:$28 sps:$4 sm:$0xff]   ;;  %v8298_v11 = vld [vmem:[#allocation26 + $0x704] ss:$28 sps:$4 sm:$0xff]  }
 0x5c1   :  { %6332 = vmatpush1.bf16.msra.mxu0 %v8230_v53  ;;  %6496 = vmatpush1.bf16.msra.mxu1 %v8233_v14  ;;  %v8301_v53 = vld [vmem:[#allocation26 + $0x70c] ss:$28 sps:$4 sm:$0xff]   ;;  %v3413_v14 = vsel %vm3397_vm11, %v3389_v0, %v3405_v2  ;;  %v8320_v2 = vld [vmem:[#allocation26 + $0x7e0] ss:$28 sps:$4 sm:$0xff]  }
 0x5c2   :  { %6333 = vmatprep.subr.bf16.mxu0 %v8238_v16  ;;  %6497 = vmatprep.subr.bf16.mxu1 %v8241_v17  ;;  %v9721_v16 = vsub.s32 5, %v9550_v7  ;;  %v8296_v17 = vld [vmem:[#allocation26 + $0x700] ss:$28 sps:$4 sm:$0xff]   ;;  %v9726_v18 = vpack.c.bf16 %v3413_v14, %v3413_v14 }
 0x5c3   :  { %v8331_v14 = vld [vmem:[#allocation26 + $0x824] ss:$28 sps:$4 sm:$0xff]  }
 0x5c5   :  { %6334 = vmatpush1.bf16.msra.mxu0 %v8236_v25  ;;  %6498 = vmatpush1.bf16.msra.mxu1 %v8239_v40  ;;  %v8299_v25 = vld [vmem:[#allocation26 + $0x708] ss:$28 sps:$4 sm:$0xff]   ;;  %v9724_v40 = vsub.s32 7, %v9550_v7 }
 0x5c6   :  { %6335 = vmatprep.subr.bf16.mxu0 %v8244_v19  ;;  %6499 = vmatprep.subr.bf16.mxu1 %v8247_v20  ;;  %v8304_v19 = vld [vmem:[#allocation26 + $0x73c] ss:$28 sps:$4 sm:$0xff]   ;;  %v8307_v20 = vld [vmem:[#allocation26 + $0x744] ss:$28 sps:$4 sm:$0xff]  }
 0x5c9   :  { %6336 = vmatpush1.bf16.msra.mxu0 %v8242_v21  ;;  %6500 = vmatpush1.bf16.msra.mxu1 %v8245_v22  ;;  %v1514_v21 = vrot.slane %v9670_v58, %v9718_v15  ;;  %v1518_v22 = vrot.slane %v9670_v58, %v9721_v16 }
 0x5ca   :  { %6337 = vmatprep.subr.bf16.mxu0 %v8250_v26  ;;  %6501 = vmatprep.subr.bf16.mxu1 %v8253_v27  ;;  %v8305_v26 = vld [vmem:[#allocation26 + $0x740] ss:$28 sps:$4 sm:$0xff]   ;;  %v1526_v27 = vrot.slane %v9670_v58, %v9724_v40 }
 0x5cd   :  { %6338 = vmatpush1.bf16.msra.mxu0 %v8248_v50  ;;  %6502 = vmatpush1.bf16.msra.mxu1 %v8251_v55  ;;  %v8310_v55 = vld [vmem:[#allocation26 + $0x774] ss:$28 sps:$4 sm:$0xff]  }
 0x5ce   :  { %6339 = vmatprep.subr.bf16.mxu0 %v8256_v49  ;;  %6503 = vmatprep.subr.bf16.mxu1 %v8259_v28  ;;  %v8313_v49 = vld [vmem:[#allocation26 + $0x77c] ss:$28 sps:$4 sm:$0xff]  }
 0x5d1   :  { %6340 = vmatpush1.bf16.msra.mxu0 %v8254_v29  ;;  %6504 = vmatpush1.bf16.msra.mxu1 %v8257_v31 }
 0x5d2   :  { %6341 = vmatprep.subr.bf16.mxu0 %v8262_v33  ;;  %6505 = vmatprep.subr.bf16.mxu1 %v8265_v54 }
 0x5d5   :  { %6342 = vmatpush1.bf16.msra.mxu0 %v8260_v34  ;;  %6506 = vmatpush1.bf16.msra.mxu1 %v8263_v30  ;;  %v8308_v30 = vld [vmem:[#allocation26 + $0x770] ss:$28 sps:$4 sm:$0xff]  }
 0x5d6   :  { %6343 = vmatprep.subr.bf16.mxu0 %v8268_v35  ;;  %6507 = vmatprep.subr.bf16.mxu1 %v8271_v37 }
 0x5d9   :  { %6344 = vmatpush1.bf16.msra.mxu0 %v8266_v38  ;;  %6508 = vmatpush1.bf16.msra.mxu1 %v8269_v41  ;;  %v8311_v41 = vld [vmem:[#allocation26 + $0x778] ss:$28 sps:$4 sm:$0xff]  }
 0x5da   :  { %6345 = vmatprep.subr.bf16.mxu0 %v8274_v43  ;;  %6509 = vmatprep.subr.bf16.mxu1 %v8277_v44 }
 0x5dd   :  { %6346 = vmatpush1.bf16.msra.mxu0 %v8272_v48  ;;  %6510 = vmatpush1.bf16.msra.mxu1 %v8275_v5 }
 0x5de   :  { %6347 = vmatprep.subr.bf16.mxu0 %v8280_v52  ;;  %6511 = vmatprep.subr.bf16.mxu1 %v8283_v56 }
 0x5e1   :  { %6348 = vmatpush1.bf16.msra.mxu0 %v8278_v61  ;;  %6512 = vmatpush1.bf16.msra.mxu1 %v8281_v62  ;;  %v8317_v61 = vld [vmem:[#allocation26 + $0x7b0] ss:$28 sps:$4 sm:$0xff]  }
 0x5e2   :  { %6349 = vmatprep.subr.bf16.mxu0 %v8286_v51  ;;  %6513 = vmatprep.subr.bf16.mxu1 %v8289_v63  ;;  %v8322_v51 = vld [vmem:[#allocation26 + $0x7e4] ss:$28 sps:$4 sm:$0xff]   ;;  %v8325_v63 = vld [vmem:[#allocation26 + $0x7ec] ss:$28 sps:$4 sm:$0xff]  }
 0x5e5   :  { %6350 = vmatpush1.bf16.msra.mxu0 %v8284_v39  ;;  %6514 = vmatpush1.bf16.msra.mxu1 %v8287_v57 }
 0x5e6   :  { %6351 = vmatprep.subr.bf16.mxu0 %v8292_v9  ;;  %6515 = vmatprep.subr.bf16.mxu1 %v8295_v1 }
 0x5e9   :  { %6352 = vmatpush1.bf16.msra.mxu0 %v8290_v3  ;;  %6516 = vmatpush1.bf16.msra.mxu1 %v8293_v24  ;;  %v8323_v3 = vld [vmem:[#allocation26 + $0x7e8] ss:$28 sps:$4 sm:$0xff]   ;;  %v9747_v24 = vsub.s32 6, %v9550_v7  ;;  %v8334_v7 = vld [vmem:[#allocation26 + $0x854] ss:$28 sps:$4 sm:$0xff]  }
 0x5ea   :  { %6362 = vmatprep.subr.bf16.mxu0 %v8298_v11  ;;  %6526 = vmatprep.subr.bf16.mxu1 %v8301_v53  ;;  %v8328_v53 = vld [vmem:[#allocation26 + $0x81c] ss:$28 sps:$4 sm:$0xff]  }
 0x5ec   :  { %6354 = vmatmul.mubr.bf16.vlgmr.msra.gmra.mrb[12].mxu0 %v9726_v18  ;;  %6518 = vmatmul.mubr.bf16.vlgmr.msra.gmra.mrb[20].mxu1 %v9726_v18 }
 0x5ed   :  { %6363 = vmatpush1.bf16.msra.mxu0 %v8296_v17  ;;  %6527 = vmatpush1.bf16.msra.mxu1 %v8299_v25 }
 0x5ee   :  { %6364 = vmatprep.subr.bf16.mxu0 %v8304_v19  ;;  %6528 = vmatprep.subr.bf16.mxu1 %v8307_v20 }
 0x5ef   :  { %v3054_v50 = vpop.f32.mrb[8].mxu0 }
 0x5f0   :  { %v9736_v28 = vadd.f32 %v3054_v50, %v1514_v21  ;;  %v9738_v29 = vpop.f32.mrb[16].mxu1  ;;  %v3056_v31 = vpop.f32.mrb[9].mxu0  ;;  %v8337_v50 = vld [vmem:[#allocation26 + $0x85c] ss:$28 sps:$4 sm:$0xff]  }
 0x5f1   :  { %v9740_v33 = vadd.f32 %v3056_v31, %v1518_v22  ;;  %v3138_v54 = vpop.f32.mrb[17].mxu1  ;;  %v3058_v34 = vpop.f32.mrb[10].mxu0  ;;  %6365 = vmatpush1.bf16.msra.mxu0 %v8302_v23  ;;  %6529 = vmatpush1.bf16.msra.mxu1 %v8305_v26  ;;  %v8326_v22 = vld [vmem:[#allocation26 + $0x818] ss:$28 sps:$4 sm:$0xff]   ;;  %v8329_v23 = vld [vmem:[#allocation26 + $0x820] ss:$28 sps:$4 sm:$0xff]   ;;  %v1522_v26 = vrot.slane %v9670_v58, %v9747_v24 }
 0x5f2   :  { %v3169_v35 = vrot.slane %v9736_v28, 4  ;;  %v7886_v37 = vadd.f32 %v3138_v54, %v1526_v27  ;;  %v3140_v32 = vpop.f32.mrb[18].mxu1  ;;  %v3059_v38 = vpop.f32.mrb[11].mxu0  ;;  %6366 = vmatprep.subr.bf16.mxu0 %v8310_v55  ;;  %6530 = vmatprep.subr.bf16.mxu1 %v8313_v49  ;;  %v8332_v58 = vld [vmem:[#allocation26 + $0x850] ss:$28 sps:$4 sm:$0xff]  }
 0x5f3   :  { %v3175_v43 = vrot.slane %v9740_v33, 4  ;;  %v3141_v44 = vpop.f32.mrb[19].mxu1  ;;  %v8340_v32 = vld [vmem:[#allocation26 + $0x88c] ss:$28 sps:$4 sm:$0xff]  }
 0x5f4   :  { %v3170_v48 = vadd.f32 %v9736_v28, %v3169_v35  ;;  %v3187_v5 = vrot.slane %v7886_v37, 4  ;;  %v9762_v35 = vadd.f32 %v9738_v29, %v1522_v26 }
 0x5f5   :  { %v3176_v52 = vadd.f32 %v9740_v33, %v3175_v43  ;;  %6367 = vmatpush1.bf16.msra.mxu0 %v8308_v30  ;;  %6531 = vmatpush1.bf16.msra.mxu1 %v8311_v41  ;;  %v8335_v30 = vld [vmem:[#allocation26 + $0x858] ss:$28 sps:$4 sm:$0xff]  }
 0x5f6   :  { %v3171_v56 = vrot.slane %v3170_v48, 2  ;;  %v3188_v59 = vadd.f32 %v7886_v37, %v3187_v5  ;;  %6368 = vmatprep.subr.bf16.mxu0 %v8316_v46  ;;  %6532 = vmatprep.subr.bf16.mxu1 %v8319_v47  ;;  %v8338_v46 = vld [vmem:[#allocation26 + $0x888] ss:$28 sps:$4 sm:$0xff]   ;;  %v8341_v47 = vld [vmem:[#allocation26 + $0x890] ss:$28 sps:$4 sm:$0xff]   ;;  %v3181_v29 = vrot.slane %v9762_v35, 4 }
 0x5f7   :  { %v3177_v62 = vrot.slane %v3176_v52, 2  ;;  %v8346_v5 = vld [vmem:[#allocation26 + $0x8c4] ss:$28 sps:$4 sm:$0xff]  }
 0x5f8   :  { %v3172_v0 = vadd.f32 %v3171_v56, %v3170_v48  ;;  %v3189_v39 = vrot.slane %v3188_v59, 2 }
 0x5f9   :  { %v3178_v57 = vadd.f32 %v3177_v62, %v3176_v52  ;;  %6369 = vmatpush1.bf16.msra.mxu0 %v8314_v60  ;;  %6533 = vmatpush1.bf16.msra.mxu1 %v8317_v61  ;;  %v8349_v52 = vld [vmem:[#allocation26 + $0x8cc] ss:$28 sps:$4 sm:$0xff]  }
 0x5fa   :  { %v3173_v9 = vrot.slane %v3172_v0, 1  ;;  %v3190_v1 = vadd.f32 %v3189_v39, %v3188_v59  ;;  %6370 = vmatprep.subr.bf16.mxu0 %v8322_v51  ;;  %6534 = vmatprep.subr.bf16.mxu1 %v8325_v63  ;;  %v8344_v51 = vld [vmem:[#allocation26 + $0x8c0] ss:$28 sps:$4 sm:$0xff]   ;;  %v8347_v63 = vld [vmem:[#allocation26 + $0x8c8] ss:$28 sps:$4 sm:$0xff]  }
 0x5fb   :  { %v3179_v11 = vrot.slane %v3178_v57, 1 }
 0x5fc   :  { %v3174_v17 = vadd.f32 %v3173_v9, %v3172_v0  ;;  %v3191_v25 = vrot.slane %v3190_v1, 1  ;;  %v3182_v0 = vadd.f32 %v9762_v35, %v3181_v29  ;;  %v8355_v9 = vld [vmem:[#allocation26 + $0x904] ss:$28 sps:$4 sm:$0xff]   ;;  %v8376_v29 = vld [vmem:[#allocation26 + $0x9dc] ss:$28 sps:$4 sm:$0xff]  }
 0x5fd   :  { %v3180_v19 = vadd.f32 %v3179_v11, %v3178_v57  ;;  %6371 = vmatpush1.bf16.msra.mxu0 %v8320_v2  ;;  %6535 = vmatpush1.bf16.msra.mxu1 %v8323_v3  ;;  %v8352_v57 = vld [vmem:[#allocation26 + $0x8fc] ss:$28 sps:$4 sm:$0xff]  }
 0x5fe   :  { %v3197_v20 = vmul.f32 0.125, %v3174_v17  ;;  %v3192_v21 = vadd.f32 %v3191_v25, %v3190_v1  ;;  %6372 = vmatprep.subr.bf16.mxu0 %v8328_v53  ;;  %6536 = vmatprep.subr.bf16.mxu1 %v8331_v14  ;;  %v8350_v14 = vld [vmem:[#allocation26 + $0x8f8] ss:$28 sps:$4 sm:$0xff]   ;;  %v8353_v17 = vld [vmem:[#allocation26 + $0x900] ss:$28 sps:$4 sm:$0xff]   ;;  %v3183_v25 = vrot.slane %v3182_v0, 2 }
 0x5ff   :  { %v3198_v27 = vmul.f32 0.125, %v3180_v19 }
 0x600   :  { %v9752_v55 = vsub.f32 %v9736_v28, %v3197_v20  ;;  %v3200_v49 = vmul.f32 0.125, %v3192_v21  ;;  %v8358_v20 = vld [vmem:[#allocation26 + $0x934] ss:$28 sps:$4 sm:$0xff]   ;;  %v8361_v21 = vld [vmem:[#allocation26 + $0x93c] ss:$28 sps:$4 sm:$0xff]  }
 0x601   :  { %v9755_v31 = vsub.f32 %v9740_v33, %v3198_v27  ;;  %6373 = vmatpush1.bf16.msra.mxu0 %v8326_v22  ;;  %6537 = vmatpush1.bf16.msra.mxu1 %v8329_v23  ;;  %v8343_v33 = vld [vmem:[#allocation26 + $0x894] ss:$28 sps:$4 sm:$0xff]  }
 0x602   :  { %v3213_v54 = vmul.f32 %v9752_v55, %v9752_v55  ;;  %v9759_v34 = vsub.f32 %v7886_v37, %v3200_v49  ;;  %6374 = vmatprep.subr.bf16.mxu0 %v8334_v7  ;;  %6538 = vmatprep.subr.bf16.mxu1 %v8337_v50  ;;  %v8356_v27 = vld [vmem:[#allocation26 + $0x930] ss:$28 sps:$4 sm:$0xff]   ;;  %v8359_v49 = vld [vmem:[#allocation26 + $0x938] ss:$28 sps:$4 sm:$0xff]  }
 0x603   :  { %v3214_v28 = vmul.f32 %v9755_v31, %v9755_v31 }
 0x604   :  { %v3241_v38 = vrot.slane %v3213_v54, 4  ;;  %v3216_v41 = vmul.f32 %v9759_v34, %v9759_v34 }
 0x605   :  { %v3247_v37 = vrot.slane %v3214_v28, 4  ;;  %6375 = vmatpush1.bf16.msra.mxu0 %v8332_v58  ;;  %6539 = vmatpush1.bf16.msra.mxu1 %v8335_v30  ;;  %v8364_v30 = vld [vmem:[#allocation26 + $0x96c] ss:$28 sps:$4 sm:$0xff]  }
 0x606   :  { %v3242_v43 = vadd.f32 %v3241_v38, %v3213_v54  ;;  %v3259_v44 = vrot.slane %v3216_v41, 4  ;;  %6376 = vmatprep.subr.bf16.mxu0 %v8340_v32  ;;  %6540 = vmatprep.subr.bf16.mxu1 %v8343_v33  ;;  %v3184_v54 = vadd.f32 %v3183_v25, %v3182_v0  ;;  %v8362_v33 = vld [vmem:[#allocation26 + $0x968] ss:$28 sps:$4 sm:$0xff]   ;;  %v8365_v38 = vld [vmem:[#allocation26 + $0x970] ss:$28 sps:$4 sm:$0xff]  }
 0x607   :  { %v3248_v48 = vadd.f32 %v3247_v37, %v3214_v28  ;;  %v8367_v28 = vld [vmem:[#allocation26 + $0x974] ss:$28 sps:$4 sm:$0xff]   ;;  %v8370_v37 = vld [vmem:[#allocation26 + $0x9a4] ss:$28 sps:$4 sm:$0xff]   ;;  %v8385_v0 = vld [vmem:[#allocation26 + $0xa1c] ss:$28 sps:$4 sm:$0xff]  }
 0x608   :  { %v3243_v56 = vrot.slane %v3242_v43, 2  ;;  %v3260_v59 = vadd.f32 %v3259_v44, %v3216_v41  ;;  %v3185_v41 = vrot.slane %v3184_v54, 1  ;;  %v8368_v44 = vld [vmem:[#allocation26 + $0x9a0] ss:$28 sps:$4 sm:$0xff]  }
 0x609   :  { %v3249_v60 = vrot.slane %v3248_v48, 2  ;;  %6377 = vmatpush1.bf16.msra.mxu0 %v8338_v46  ;;  %6541 = vmatpush1.bf16.msra.mxu1 %v8341_v47  ;;  %v8371_v46 = vld [vmem:[#allocation26 + $0x9a8] ss:$28 sps:$4 sm:$0xff]  }
 0x60a   :  { %v3244_v61 = vadd.f32 %v3243_v56, %v3242_v43  ;;  %v3261_v62 = vrot.slane %v3260_v59, 2  ;;  %6378 = vmatprep.subr.bf16.mxu0 %v8346_v5  ;;  %6542 = vmatprep.subr.bf16.mxu1 %v8349_v52  ;;  %v8373_v43 = vld [vmem:[#allocation26 + $0x9ac] ss:$28 sps:$4 sm:$0xff]   ;;  %v3186_v47 = vadd.f32 %v3185_v41, %v3184_v54  ;;  %v3317_v5 = vrot.slane %v9680_v12, %v9718_v15  ;;  %v8374_v56 = vld [vmem:[#allocation26 + $0x9d8] ss:$28 sps:$4 sm:$0xff]  }
 0x60b   :  { %v3250_v39 = vadd.f32 %v3249_v60, %v3248_v48  ;;  %v8379_v48 = vld [vmem:[#allocation26 + $0x9e4] ss:$28 sps:$4 sm:$0xff]  }
 0x60c   :  { %v3245_v1 = vrot.slane %v3244_v61, 1  ;;  %v3262_v2 = vadd.f32 %v3261_v62, %v3260_v59  ;;  %v8377_v59 = vld [vmem:[#allocation26 + $0x9e0] ss:$28 sps:$4 sm:$0xff]   ;;  %v3199_v62 = vmul.f32 0.125, %v3186_v47  ;;  %v8406_v47 = vld [vmem:[#allocation26 + $0xaf4] ss:$28 sps:$4 sm:$0xff]  }
 0x60d   :  { %v3251_v3 = vrot.slane %v3250_v39, 1  ;;  %6379 = vmatpush1.bf16.msra.mxu0 %v8344_v51  ;;  %6543 = vmatpush1.bf16.msra.mxu1 %v8347_v63  ;;  %v3321_v51 = vrot.slane %v9680_v12, %v9721_v16  ;;  %v8382_v63 = vld [vmem:[#allocation26 + $0xa14] ss:$28 sps:$4 sm:$0xff]   ;;  %v8403_v41 = vld [vmem:[#allocation26 + $0xac4] ss:$28 sps:$4 sm:$0xff]  }
 0x60e   :  { %v3246_v11 = vadd.f32 %v3245_v1, %v3244_v61  ;;  %v3263_v53 = vrot.slane %v3262_v2, 1  ;;  %6380 = vmatprep.subr.bf16.mxu0 %v8352_v57  ;;  %6544 = vmatprep.subr.bf16.mxu1 %v8355_v9  ;;  %v3366_v61 = vrot.slane %v9682_v13, %v9718_v15  ;;  %v3329_v57 = vrot.slane %v9680_v12, %v9724_v40 }
 0x60f   :  { %v3252_v19 = vadd.f32 %v3251_v3, %v3250_v39  ;;  %v9786_v25 = vsub.f32 %v9762_v35, %v3199_v62 }
 0x610   :  { %v3269_v22 = vmul.f32 0.125, %v3246_v11  ;;  %v3264_v23 = vadd.f32 %v3263_v53, %v3262_v2  ;;  %v3378_v11 = vrot.slane %v9682_v13, %v9724_v40  ;;  %v8380_v53 = vld [vmem:[#allocation26 + $0xa10] ss:$28 sps:$4 sm:$0xff]  }
 0x611   :  { %v3270_v26 = vmul.f32 0.125, %v3252_v19  ;;  %6381 = vmatpush1.bf16.msra.mxu0 %v8350_v14  ;;  %6545 = vmatpush1.bf16.msra.mxu1 %v8353_v17  ;;  %v8383_v14 = vld [vmem:[#allocation26 + $0xa18] ss:$28 sps:$4 sm:$0xff]   ;;  %v8389_v40 = vld [vmem:[#allocation26 + $0xa50] ss:$28 sps:$4 sm:$0xff]  }
 0x612   :  { %v3277_v7 = vadd.f32 1e-05, %v3269_v22  ;;  %v3272_v50 = vmul.f32 0.125, %v3264_v23  ;;  %6382 = vmatprep.subr.bf16.mxu0 %v8358_v20  ;;  %6546 = vmatprep.subr.bf16.mxu1 %v8361_v21  ;;  %v8391_v19 = vld [vmem:[#allocation26 + $0xa54] ss:$28 sps:$4 sm:$0xff]  }
 0x613   :  { %v3278_v58 = vadd.f32 1e-05, %v3270_v26  ;;  %v8394_v23 = vld [vmem:[#allocation26 + $0xa84] ss:$28 sps:$4 sm:$0xff]   ;;  %v3215_v26 = vmul.f32 %v9786_v25, %v9786_v25 }
 0x614   :  { %8764 = vrsqrt.f32 %v3277_v7  ;;  %v3280_v32 = vadd.f32 1e-05, %v3272_v50 }
 0x615   :  { %8766 = vrsqrt.f32 %v3278_v58  ;;  %6383 = vmatpush1.bf16.msra.mxu0 %v8356_v27  ;;  %6547 = vmatpush1.bf16.msra.mxu1 %v8359_v49  ;;  %v8397_v27 = vld [vmem:[#allocation26 + $0xa8c] ss:$28 sps:$4 sm:$0xff]   ;;  %v8392_v58 = vld [vmem:[#allocation26 + $0xa80] ss:$28 sps:$4 sm:$0xff]  }
 0x616   :  { %8768 = vrsqrt.f32 %v3280_v32  ;;  %6384 = vmatprep.subr.bf16.mxu0 %v8364_v30  ;;  %6548 = vmatprep.subr.bf16.mxu1 %v8367_v28  ;;  %v8395_v30 = vld [vmem:[#allocation26 + $0xa88] ss:$28 sps:$4 sm:$0xff]   ;;  %v3253_v32 = vrot.slane %v3215_v26, 4 }
 0x619   :  { %6385 = vmatpush1.bf16.msra.mxu0 %v8362_v33  ;;  %6549 = vmatpush1.bf16.msra.mxu1 %v8365_v38  ;;  %v8400_v38 = vld [vmem:[#allocation26 + $0xabc] ss:$28 sps:$4 sm:$0xff]  }
 0x61a   :  { %6386 = vmatprep.subr.bf16.mxu0 %v8370_v37  ;;  %6550 = vmatprep.subr.bf16.mxu1 %v8373_v43  ;;  %v8398_v43 = vld [vmem:[#allocation26 + $0xab8] ss:$28 sps:$4 sm:$0xff]  }
 0x61d   :  { %6387 = vmatpush1.bf16.msra.mxu0 %v8368_v44  ;;  %6551 = vmatpush1.bf16.msra.mxu1 %v8371_v46  ;;  %v8401_v44 = vld [vmem:[#allocation26 + $0xac0] ss:$28 sps:$4 sm:$0xff]   ;;  %v3254_v46 = vadd.f32 %v3253_v32, %v3215_v26  ;;  %v8463_v32 = vld [vmem:[#allocation26 + $0xcf4] ss:$28 sps:$4 sm:$0xff]  }
 0x61e   :  { %v8765_v52 = vpop.eup %8764  ;;  %6388 = vmatprep.subr.bf16.mxu0 %v8376_v29  ;;  %6552 = vmatprep.subr.bf16.mxu1 %v8379_v48  ;;  %v8409_v29 = vld [vmem:[#allocation26 + $0xafc] ss:$28 sps:$4 sm:$0xff]   ;;  %v8404_v48 = vld [vmem:[#allocation26 + $0xaf0] ss:$28 sps:$4 sm:$0xff]  }
 0x61f   :  { %v3293_v60 = vmul.f32 %v8765_v52, %v9752_v55  ;;  %v8767_v39 = vpop.eup %8766  ;;  %v3370_v55 = vrot.slane %v9682_v13, %v9721_v16  ;;  %v8386_v13 = vld [vmem:[#allocation26 + $0xa48] ss:$28 sps:$4 sm:$0xff]   ;;  %v3255_v52 = vrot.slane %v3254_v46, 2  ;;  %v8448_v26 = vld [vmem:[#allocation26 + $0xc7c] ss:$28 sps:$4 sm:$0xff]  }
 0x620   :  { %v8769_v9 = vpop.eup %8768  ;;  %v3294_v2 = vmul.f32 %v8767_v39, %v9755_v31  ;;  %v8388_v31 = vld [vmem:[#allocation26 + $0xa4c] ss:$28 sps:$4 sm:$0xff]  }
 0x621   :  { %v3342_v1 = vmul.f32 %v3317_v5, %v3293_v60  ;;  %v3296_v3 = vmul.f32 %v8769_v9, %v9759_v34  ;;  %6389 = vmatpush1.bf16.msra.mxu0 %v8374_v56  ;;  %6553 = vmatpush1.bf16.msra.mxu1 %v8377_v59  ;;  %v8407_v5 = vld [vmem:[#allocation26 + $0xaf8] ss:$28 sps:$4 sm:$0xff]   ;;  %v8412_v56 = vld [vmem:[#allocation26 + $0xb2c] ss:$28 sps:$4 sm:$0xff]   ;;  %v3256_v62 = vadd.f32 %v3255_v52, %v3254_v46 }
 0x622   :  { %v3343_v12 = vmul.f32 %v3321_v51, %v3294_v2  ;;  %6390 = vmatprep.subr.bf16.mxu0 %v8382_v63  ;;  %6554 = vmatprep.subr.bf16.mxu1 %v8385_v0  ;;  %v8415_v59 = vld [vmem:[#allocation26 + $0xb34] ss:$28 sps:$4 sm:$0xff]   ;;  %v8410_v60 = vld [vmem:[#allocation26 + $0xb28] ss:$28 sps:$4 sm:$0xff]   ;;  %v8416_v0 = vld [vmem:[#allocation26 + $0xb60] ss:$28 sps:$4 sm:$0xff]  }
 0x623   :  { %v3391_v17 = vadd.f32 %v3366_v61, %v3342_v1  ;;  %v3345_v20 = vmul.f32 %v3329_v57, %v3296_v3  ;;  %v8413_v61 = vld [vmem:[#allocation26 + $0xb30] ss:$28 sps:$4 sm:$0xff]   ;;  %v8418_v51 = vld [vmem:[#allocation26 + $0xb64] ss:$28 sps:$4 sm:$0xff]   ;;  %v3257_v57 = vrot.slane %v3256_v62, 1 }
 0x624   :  { %v3392_v21 = vadd.f32 %v3370_v55, %v3343_v12  ;;  %v8421_v63 = vld [vmem:[#allocation26 + $0xb6c] ss:$28 sps:$4 sm:$0xff]   ;;  %v8424_v9 = vld [vmem:[#allocation26 + $0xb9c] ss:$28 sps:$4 sm:$0xff]   ;;  %v8427_v1 = vld [vmem:[#allocation26 + $0xba4] ss:$28 sps:$4 sm:$0xff]  }
 0x625   :  { %vm3399_vm12 = vcmp.gt.f32.partialorder %v3391_v17, 0.0  ;;  %v3407_v34 = vmul.f32 0.2, %v3391_v17  ;;  %v3394_v22 = vadd.f32 %v3378_v11, %v3345_v20  ;;  %6391 = vmatpush1.bf16.msra.mxu0 %v8380_v53  ;;  %6555 = vmatpush1.bf16.msra.mxu1 %v8383_v14  ;;  %v8419_v39 = vld [vmem:[#allocation26 + $0xb68] ss:$28 sps:$4 sm:$0xff]   ;;  %v3258_v3 = vadd.f32 %v3257_v57, %v3256_v62 }
 0x626   :  { %6392 = vmatprep.subr.bf16.mxu0 %v8388_v31  ;;  %6556 = vmatprep.subr.bf16.mxu1 %v8391_v19  ;;  %vm3400_vm13 = vcmp.gt.f32.partialorder %v3392_v21, 0.0  ;;  %v3408_v35 = vmul.f32 0.2, %v3392_v21  ;;  %v8422_v2 = vld [vmem:[#allocation26 + $0xb98] ss:$28 sps:$4 sm:$0xff]  }
 0x627   :  { %v3415_v7 = vsel %vm3399_vm12, %v3391_v17, %v3407_v34  ;;  %vm3402_vm14 = vcmp.gt.f32.partialorder %v3394_v22, 0.0  ;;  %v3410_v50 = vmul.f32 0.2, %v3394_v22  ;;  %v8425_v55 = vld [vmem:[#allocation26 + $0xba0] ss:$28 sps:$4 sm:$0xff]   ;;  %v3271_v12 = vmul.f32 0.125, %v3258_v3 }
 0x628   :  { %v3416_v49 = vsel %vm3400_vm13, %v3392_v21, %v3408_v35  ;;  %v9792_v33 = vpack.c.bf16 %v3415_v7, %v3415_v7  ;;  %v8430_v11 = vld [vmem:[#allocation26 + $0xbd4] ss:$28 sps:$4 sm:$0xff]   ;;  %v8433_v53 = vld [vmem:[#allocation26 + $0xbdc] ss:$28 sps:$4 sm:$0xff]   ;;  %v8436_v31 = vld [vmem:[#allocation26 + $0xc0c] ss:$28 sps:$4 sm:$0xff]  }
 0x629   :  { %6393 = vmatpush1.bf16.msra.mxu0 %v8386_v13  ;;  %6557 = vmatpush1.bf16.msra.mxu1 %v8389_v40  ;;  %v9790_v54 = vpack.c.bf16 %v3416_v49, %v3416_v49  ;;  %v3418_v28 = vsel %vm3402_vm14, %v3394_v22, %v3410_v50  ;;  %v8428_v14 = vld [vmem:[#allocation26 + $0xbd0] ss:$28 sps:$4 sm:$0xff]   ;;  %v8431_v17 = vld [vmem:[#allocation26 + $0xbd8] ss:$28 sps:$4 sm:$0xff]   ;;  %v8434_v20 = vld [vmem:[#allocation26 + $0xc08] ss:$28 sps:$4 sm:$0xff]  }
 0x62a   :  { %6403 = vmatprep.subr.bf16.mxu0 %v8394_v23  ;;  %6567 = vmatprep.subr.bf16.mxu1 %v8397_v27  ;;  %v9798_v37 = vpack.c.bf16 %v3418_v28, %v3418_v28  ;;  %v8439_v19 = vld [vmem:[#allocation26 + $0xc14] ss:$28 sps:$4 sm:$0xff]   ;;  %v3279_v34 = vadd.f32 1e-05, %v3271_v12  ;;  %v8442_v22 = vld [vmem:[#allocation26 + $0xc44] ss:$28 sps:$4 sm:$0xff]  }
 0x62b   :  { %6394 = vmatprep.mubr.bf16.mxu0 %v9790_v54  ;;  %6558 = vmatprep.mubr.bf16.mxu1 %v9790_v54  ;;  %v8437_v21 = vld [vmem:[#allocation26 + $0xc10] ss:$28 sps:$4 sm:$0xff]   ;;  %v8440_v40 = vld [vmem:[#allocation26 + $0xc40] ss:$28 sps:$4 sm:$0xff]   ;;  %v8443_v23 = vld [vmem:[#allocation26 + $0xc48] ss:$28 sps:$4 sm:$0xff]  }
 0x62c   :  { %6395 = vmatmul.mubr.bf16.vlgmr.msra.gmra.mrb[12].mxu0 %v9792_v33  ;;  %6559 = vmatmul.mubr.bf16.vlgmr.msra.gmra.mrb[20].mxu1 %v9792_v33  ;;  %v8445_v13 = vld [vmem:[#allocation26 + $0xc4c] ss:$28 sps:$4 sm:$0xff]   ;;  %8770 = vrsqrt.f32 %v3279_v34  ;;  %v8451_v35 = vld [vmem:[#allocation26 + $0xc84] ss:$28 sps:$4 sm:$0xff]   ;;  %v8446_v27 = vld [vmem:[#allocation26 + $0xc78] ss:$28 sps:$4 sm:$0xff]  }
 0x62d   :  { %6404 = vmatpush1.bf16.msra.mxu0 %v8392_v58  ;;  %6568 = vmatpush1.bf16.msra.mxu1 %v8395_v30  ;;  %v8449_v7 = vld [vmem:[#allocation26 + $0xc80] ss:$28 sps:$4 sm:$0xff]   ;;  %v8454_v50 = vld [vmem:[#allocation26 + $0xcb4] ss:$28 sps:$4 sm:$0xff]   ;;  %v8460_v28 = vld [vmem:[#allocation26 + $0xcec] ss:$28 sps:$4 sm:$0xff]  }
 0x62e   :  { %6435 = vmatprep.mubr.bf16.mxu0 %v9798_v37  ;;  %6599 = vmatprep.mubr.bf16.mxu1 %v9798_v37  ;;  %v8457_v49 = vld [vmem:[#allocation26 + $0xcbc] ss:$28 sps:$4 sm:$0xff]   ;;  %v8452_v58 = vld [vmem:[#allocation26 + $0xcb0] ss:$28 sps:$4 sm:$0xff]   ;;  %v8467_v52 = vld [vmem:[#allocation26 + $0xd28] ss:$28 sps:$4 sm:$0xff]  }
 0x62f   :  { %6405 = vmatprep.subr.bf16.mxu0 %v8400_v38  ;;  %6569 = vmatprep.subr.bf16.mxu1 %v8403_v41  ;;  %v8455_v30 = vld [vmem:[#allocation26 + $0xcb8] ss:$28 sps:$4 sm:$0xff]   ;;  %v8458_v41 = vld [vmem:[#allocation26 + $0xce8] ss:$28 sps:$4 sm:$0xff]   ;;  %v8476_v57 = vld [vmem:[#allocation26 + $0xd90] ss:$28 sps:$4 sm:$0xff]  }
 0x630   :  { %v8469_v46 = vld [vmem:[#allocation26 + $0xd2c] ss:$28 sps:$4 sm:$0xff]  }
 0x631   :  { %6406 = vmatpush1.bf16.msra.mxu0 %v8398_v43  ;;  %6570 = vmatpush1.bf16.msra.mxu1 %v8401_v44  ;;  %v8461_v43 = vld [vmem:[#allocation26 + $0xcf0] ss:$28 sps:$4 sm:$0xff]   ;;  %v8466_v44 = vld [vmem:[#allocation26 + $0xd24] ss:$28 sps:$4 sm:$0xff]  }
 0x632   :  { %6407 = vmatprep.subr.bf16.mxu0 %v8406_v47  ;;  %6571 = vmatprep.subr.bf16.mxu1 %v8409_v29  ;;  %v8786_v29 = vld [vmem:[#allocation23] sm:$0xff]  ;;  %v8482_v3 = vld [vmem:[#allocation26 + $0xdc8] ss:$28 sps:$4 sm:$0xff]  }
 0x633   :  { %v8488_v12 = vld [vmem:[#allocation26 + $0x10] ss:$28 sps:$4 sm:$0xff]   ;;  %v8493_v34 = vld [vmem:[#allocation26 + $0x48] ss:$28 sps:$4 sm:$0xff]  }
 0x635   :  { %6408 = vmatpush1.bf16.msra.mxu0 %v8404_v48  ;;  %6572 = vmatpush1.bf16.msra.mxu1 %v8407_v5  ;;  %v3325_v48 = vrot.slane %v8786_v29, %v9747_v24  ;;  %v8464_v5 = vld [vmem:[#allocation26 + $0xd20] ss:$28 sps:$4 sm:$0xff]  }
 0x636   :  { %6409 = vmatprep.subr.bf16.mxu0 %v8412_v56  ;;  %6573 = vmatprep.subr.bf16.mxu1 %v8415_v59  ;;  %v8771_v38 = vpop.eup %8770  ;;  %v8472_v56 = vld [vmem:[#allocation26 + $0xd5c] ss:$28 sps:$4 sm:$0xff]   ;;  %v8475_v59 = vld [vmem:[#allocation26 + $0xd64] ss:$28 sps:$4 sm:$0xff]  }
 0x637   :  { %v3295_v47 = vmul.f32 %v8771_v38, %v9786_v25  ;;  %v8478_v25 = vld [vmem:[#allocation26 + $0xd94] ss:$28 sps:$4 sm:$0xff]   ;;  %v8513_v38 = vld [vmem:[#allocation26 + $0x128] ss:$28 sps:$4 sm:$0xff]   ;;  %v8525_v29 = vld [vmem:[#allocation26 + $0x19c] ss:$28 sps:$4 sm:$0xff]  }
 0x639   :  { %6410 = vmatpush1.bf16.msra.mxu0 %v8410_v60  ;;  %6574 = vmatpush1.bf16.msra.mxu1 %v8413_v61  ;;  %v3344_v60 = vmul.f32 %v3325_v48, %v3295_v47  ;;  %v8787_v61 = vld [vmem:[#allocation25] sm:$0xff]  ;;  %v8522_v47 = vld [vmem:[#allocation26 + $0x168] ss:$28 sps:$4 sm:$0xff]  }
 0x63a   :  { %6411 = vmatprep.subr.bf16.mxu0 %v8418_v51  ;;  %6575 = vmatprep.subr.bf16.mxu1 %v8421_v63  ;;  %v3374_v62 = vrot.slane %v8787_v61, %v9747_v24  ;;  %v8470_v51 = vld [vmem:[#allocation26 + $0xd58] ss:$28 sps:$4 sm:$0xff]   ;;  %v8473_v63 = vld [vmem:[#allocation26 + $0xd60] ss:$28 sps:$4 sm:$0xff]  }
 0x63b   :  { %v8526_v48 = vld [vmem:[#allocation26 + $0x360] ss:$28 sps:$4 sm:$0xff]   ;;  %v8532_v61 = vld [vmem:[#allocation26 + $0x398] ss:$28 sps:$4 sm:$0xff]  }
 0x63d   :  { %6412 = vmatpush1.bf16.msra.mxu0 %v8416_v0  ;;  %6576 = vmatpush1.bf16.msra.mxu1 %v8419_v39  ;;  %v8481_v0 = vld [vmem:[#allocation26 + $0xd9c] ss:$28 sps:$4 sm:$0xff]   ;;  %v3393_v39 = vadd.f32 %v3374_v62, %v3344_v60  ;;  %v8528_v60 = vld [vmem:[#allocation26 + $0x1d0] ss:$28 sps:$4 sm:$0xff]  }
 0x63e   :  { %6413 = vmatprep.subr.bf16.mxu0 %v8424_v9  ;;  %6577 = vmatprep.subr.bf16.mxu1 %v8427_v1  ;;  %v8479_v9 = vld [vmem:[#allocation26 + $0xd98] ss:$28 sps:$4 sm:$0xff]   ;;  %v8484_v1 = vld [vmem:[#allocation26 + $0xdcc] ss:$28 sps:$4 sm:$0xff]  }
 0x63f   :  { %vm3401_vm15 = vcmp.gt.f32.partialorder %v3393_v39, 0.0  ;;  %v8535_v62 = vld [vmem:[#allocation26 + $0x20c] ss:$28 sps:$4 sm:$0xff]  }
 0x641   :  { %6414 = vmatpush1.bf16.msra.mxu0 %v8422_v2  ;;  %6578 = vmatpush1.bf16.msra.mxu1 %v8425_v55  ;;  %v8487_v2 = vld [vmem:[#allocation26 + $0xdd4] ss:$28 sps:$4 sm:$0xff]   ;;  %v3409_v55 = vmul.f32 0.2, %v3393_v39 }
 0x642   :  { %6415 = vmatprep.subr.bf16.mxu0 %v8430_v11  ;;  %6579 = vmatprep.subr.bf16.mxu1 %v8433_v53  ;;  %v8485_v11 = vld [vmem:[#allocation26 + $0xdd0] ss:$28 sps:$4 sm:$0xff]  }
 0x643   :  { %v8490_v53 = vld [vmem:[#allocation26 + $0x14] ss:$28 sps:$4 sm:$0xff]  }
 0x645   :  { %6416 = vmatpush1.bf16.msra.mxu0 %v8428_v14  ;;  %6580 = vmatpush1.bf16.msra.mxu1 %v8431_v17  ;;  %v8491_v14 = vld [vmem:[#allocation26 + $0x1d8] ss:$28 sps:$4 sm:$0xff]   ;;  %v3417_v17 = vsel %vm3401_vm15, %v3393_v39, %v3409_v55  ;;  %v8541_v39 = vld [vmem:[#allocation26 + $0x5c8] ss:$28 sps:$4 sm:$0xff]  }
 0x646   :  { %6417 = vmatprep.subr.bf16.mxu0 %v8436_v31  ;;  %6581 = vmatprep.subr.bf16.mxu1 %v8439_v19  ;;  %v9805_v31 = vpack.c.bf16 %v3417_v17, %v3417_v17  ;;  %v8492_v19 = vld [vmem:[#allocation26 + $0x18] ss:$28 sps:$4 sm:$0xff]  }
 0x647   :  { %v8543_v55 = vld [vmem:[#allocation26 + $0x278] ss:$28 sps:$4 sm:$0xff]  }
 0x648   :  { %v8552_v17 = vld [vmem:[#allocation26 + $0x478] ss:$28 sps:$4 sm:$0xff]  }
 0x649   :  { %6418 = vmatpush1.bf16.msra.mxu0 %v8434_v20  ;;  %6582 = vmatpush1.bf16.msra.mxu1 %v8437_v21  ;;  %v8495_v20 = vld [vmem:[#allocation26 + $0x4c] ss:$28 sps:$4 sm:$0xff]  }
 0x64a   :  { %6419 = vmatprep.subr.bf16.mxu0 %v8442_v22  ;;  %6583 = vmatprep.subr.bf16.mxu1 %v8445_v13  ;;  %v8496_v21 = vld [vmem:[#allocation26 + $0x210] ss:$28 sps:$4 sm:$0xff]   ;;  %v8500_v13 = vld [vmem:[#allocation26 + $0x84] ss:$28 sps:$4 sm:$0xff]  }
 0x64b   :  { %v8497_v22 = vld [vmem:[#allocation26 + $0x50] ss:$28 sps:$4 sm:$0xff]  }
 0x64d   :  { %6420 = vmatpush1.bf16.msra.mxu0 %v8440_v40  ;;  %6584 = vmatpush1.bf16.msra.mxu1 %v8443_v23  ;;  %v8501_v40 = vld [vmem:[#allocation26 + $0x248] ss:$28 sps:$4 sm:$0xff]   ;;  %v8498_v23 = vld [vmem:[#allocation26 + $0x80] ss:$28 sps:$4 sm:$0xff]  }
 0x64e   :  { %6421 = vmatprep.subr.bf16.mxu0 %v8448_v26  ;;  %6585 = vmatprep.subr.bf16.mxu1 %v8451_v35  ;;  %v8502_v26 = vld [vmem:[#allocation26 + $0x88] ss:$28 sps:$4 sm:$0xff]   ;;  %v8505_v35 = vld [vmem:[#allocation26 + $0xbc] ss:$28 sps:$4 sm:$0xff]  }
 0x651   :  { %6422 = vmatpush1.bf16.msra.mxu0 %v8446_v27  ;;  %6586 = vmatpush1.bf16.msra.mxu1 %v8449_v7  ;;  %v8506_v27 = vld [vmem:[#allocation26 + $0x280] ss:$28 sps:$4 sm:$0xff]   ;;  %v8503_v7 = vld [vmem:[#allocation26 + $0xb8] ss:$28 sps:$4 sm:$0xff]  }
 0x652   :  { %6423 = vmatprep.subr.bf16.mxu0 %v8454_v50  ;;  %6587 = vmatprep.subr.bf16.mxu1 %v8457_v49  ;;  %v8507_v50 = vld [vmem:[#allocation26 + $0xc0] ss:$28 sps:$4 sm:$0xff]   ;;  %v8510_v49 = vld [vmem:[#allocation26 + $0xf4] ss:$28 sps:$4 sm:$0xff]  }
 0x655   :  { %6424 = vmatpush1.bf16.msra.mxu0 %v8452_v58  ;;  %6588 = vmatpush1.bf16.msra.mxu1 %v8455_v30  ;;  %v8508_v58 = vld [vmem:[#allocation26 + $0xf0] ss:$28 sps:$4 sm:$0xff]   ;;  %v8512_v30 = vld [vmem:[#allocation26 + $0xf8] ss:$28 sps:$4 sm:$0xff]  }
 0x656   :  { %6425 = vmatprep.subr.bf16.mxu0 %v8460_v28  ;;  %6589 = vmatprep.subr.bf16.mxu1 %v8463_v32  ;;  %v8515_v28 = vld [vmem:[#allocation26 + $0x12c] ss:$28 sps:$4 sm:$0xff]  }
 0x657   :  { %v8516_v32 = vld [vmem:[#allocation26 + $0x2f0] ss:$28 sps:$4 sm:$0xff]  }
 0x659   :  { %6426 = vmatpush1.bf16.msra.mxu0 %v8458_v41  ;;  %6590 = vmatpush1.bf16.msra.mxu1 %v8461_v43  ;;  %v8517_v41 = vld [vmem:[#allocation26 + $0x130] ss:$28 sps:$4 sm:$0xff]   ;;  %v8520_v43 = vld [vmem:[#allocation26 + $0x164] ss:$28 sps:$4 sm:$0xff]  }
 0x65a   :  { %6427 = vmatprep.subr.bf16.mxu0 %v8466_v44  ;;  %6591 = vmatprep.subr.bf16.mxu1 %v8469_v46  ;;  %v8521_v44 = vld [vmem:[#allocation26 + $0x328] ss:$28 sps:$4 sm:$0xff]   ;;  %v8518_v46 = vld [vmem:[#allocation26 + $0x160] ss:$28 sps:$4 sm:$0xff]  }
 0x65d   :  { %6428 = vmatpush1.bf16.msra.mxu0 %v8464_v5  ;;  %6592 = vmatpush1.bf16.msra.mxu1 %v8467_v52  ;;  %v8523_v5 = vld [vmem:[#allocation26 + $0x198] ss:$28 sps:$4 sm:$0xff]   ;;  %v8527_v52 = vld [vmem:[#allocation26 + $0x1a0] ss:$28 sps:$4 sm:$0xff]  }
 0x65e   :  { %6429 = vmatprep.subr.bf16.mxu0 %v8472_v56  ;;  %6593 = vmatprep.subr.bf16.mxu1 %v8475_v59  ;;  %v8530_v56 = vld [vmem:[#allocation26 + $0x1d4] ss:$28 sps:$4 sm:$0xff]  }
 0x65f   :  { %v8531_v59 = vld [vmem:[#allocation26 + $0x558] ss:$28 sps:$4 sm:$0xff]  }
 0x661   :  { %6430 = vmatpush1.bf16.msra.mxu0 %v8470_v51  ;;  %6594 = vmatpush1.bf16.msra.mxu1 %v8473_v63  ;;  %v8536_v51 = vld [vmem:[#allocation26 + $0x590] ss:$28 sps:$4 sm:$0xff]   ;;  %v8533_v63 = vld [vmem:[#allocation26 + $0x208] ss:$28 sps:$4 sm:$0xff]  }
 0x662   :  { %6431 = vmatprep.subr.bf16.mxu0 %v8478_v25  ;;  %6595 = vmatprep.subr.bf16.mxu1 %v8481_v0  ;;  %v8537_v25 = vld [vmem:[#allocation26 + $0x3d0] ss:$28 sps:$4 sm:$0xff]   ;;  %v8540_v0 = vld [vmem:[#allocation26 + $0x244] ss:$28 sps:$4 sm:$0xff]  }
 0x665   :  { %6432 = vmatpush1.bf16.msra.mxu0 %v8476_v57  ;;  %6596 = vmatpush1.bf16.msra.mxu1 %v8479_v9  ;;  %v8538_v57 = vld [vmem:[#allocation26 + $0x240] ss:$28 sps:$4 sm:$0xff]   ;;  %v8542_v9 = vld [vmem:[#allocation26 + $0x408] ss:$28 sps:$4 sm:$0xff]  }
 0x666   :  { %6433 = vmatprep.subr.bf16.mxu0 %v8484_v1  ;;  %6597 = vmatprep.subr.bf16.mxu1 %v8487_v2  ;;  %v8545_v1 = vld [vmem:[#allocation26 + $0x27c] ss:$28 sps:$4 sm:$0xff]  }
 0x667   :  { %v8546_v2 = vld [vmem:[#allocation26 + $0x600] ss:$28 sps:$4 sm:$0xff]  }
 0x669   :  { %6434 = vmatpush1.bf16.msra.mxu0 %v8482_v3  ;;  %6598 = vmatpush1.bf16.msra.mxu1 %v8485_v11  ;;  %v8547_v3 = vld [vmem:[#allocation26 + $0x440] ss:$28 sps:$4 sm:$0xff]   ;;  %v8550_v11 = vld [vmem:[#allocation26 + $0x2b4] ss:$28 sps:$4 sm:$0xff]  }
 0x66a   :  { %6608 = vmatprep.subr.bf16.mxu0 %v8490_v53  ;;  %7771 = vmatprep.subr.bf16.mxu1 %v8491_v14  ;;  %v8551_v53 = vld [vmem:[#allocation26 + $0x638] ss:$28 sps:$4 sm:$0xff]   ;;  %v8548_v14 = vld [vmem:[#allocation26 + $0x2b0] ss:$28 sps:$4 sm:$0xff]  }
 0x66c   :  { %6436 = vmatmul.mubr.bf16.vlgmr.msra.gmra.mrb[12].mxu0 %v9805_v31  ;;  %6600 = vmatmul.mubr.bf16.vlgmr.msra.gmra.mrb[20].mxu1 %v9805_v31 }
 0x66d   :  { %6609 = vmatpush1.bf16.msra.mxu0 %v8488_v12  ;;  %6640 = vmatprep.mubr.bf16.mxu0 %v9700_v36  ;;  %v8555_v12 = vld [vmem:[#allocation26 + $0x2ec] ss:$28 sps:$4 sm:$0xff]  }
 0x66e   :  { %7772 = vmatpush3.bf16.msra.mxu1 %v8492_v19  ;;  %6804 = vmatprep.mubr.bf16.mxu1 %v9700_v36  ;;  %v8511_v36 = vld [vmem:[#allocation26 + $0x2b8] ss:$28 sps:$4 sm:$0xff]   ;;  %v8556_v19 = vld [vmem:[#allocation26 + $0x670] ss:$28 sps:$4 sm:$0xff]  }
 0x66f   :  { %6610 = vmatprep.subr.bf16.mxu0 %v8495_v20  ;;  %7773 = vmatprep.subr.bf16.mxu1 %v8496_v21  ;;  %v8553_v20 = vld [vmem:[#allocation26 + $0x2e8] ss:$28 sps:$4 sm:$0xff]   ;;  %v8557_v21 = vld [vmem:[#allocation26 + $0x4b0] ss:$28 sps:$4 sm:$0xff]  }
 0x671   :  { %6611 = vmatpush1.bf16.msra.mxu0 %v8493_v34  ;;  %v8560_v34 = vld [vmem:[#allocation26 + $0x324] ss:$28 sps:$4 sm:$0xff]  }
 0x672   :  { %7774 = vmatpush3.bf16.msra.mxu1 %v8497_v22  ;;  %6612 = vmatprep.subr.bf16.mxu0 %v8500_v13  ;;  %v8561_v22 = vld [vmem:[#allocation26 + $0x6a8] ss:$28 sps:$4 sm:$0xff]   ;;  %v8558_v13 = vld [vmem:[#allocation26 + $0x320] ss:$28 sps:$4 sm:$0xff]  }
 0x673   :  { %7775 = vmatprep.subr.bf16.mxu1 %v8501_v40  ;;  %v8562_v40 = vld [vmem:[#allocation26 + $0x4e8] ss:$28 sps:$4 sm:$0xff]  }
 0x675   :  { %6613 = vmatpush1.bf16.msra.mxu0 %v8498_v23  ;;  %v8565_v23 = vld [vmem:[#allocation26 + $0x35c] ss:$28 sps:$4 sm:$0xff]  }
 0x676   :  { %7776 = vmatpush3.bf16.msra.mxu1 %v8502_v26  ;;  %6614 = vmatprep.subr.bf16.mxu0 %v8505_v35  ;;  %v8566_v26 = vld [vmem:[#allocation26 + $0x6e0] ss:$28 sps:$4 sm:$0xff]   ;;  %v8563_v35 = vld [vmem:[#allocation26 + $0x358] ss:$28 sps:$4 sm:$0xff]  }
 0x677   :  { %7777 = vmatprep.subr.bf16.mxu1 %v8506_v27  ;;  %v8567_v27 = vld [vmem:[#allocation26 + $0x520] ss:$28 sps:$4 sm:$0xff]  }
 0x679   :  { %6615 = vmatpush1.bf16.msra.mxu0 %v8503_v7  ;;  %v8570_v7 = vld [vmem:[#allocation26 + $0x394] ss:$28 sps:$4 sm:$0xff]  }
 0x67a   :  { %7778 = vmatpush3.bf16.msra.mxu1 %v8507_v50  ;;  %6616 = vmatprep.subr.bf16.mxu0 %v8510_v49  ;;  %v8571_v50 = vld [vmem:[#allocation26 + $0x8d8] ss:$28 sps:$4 sm:$0xff]   ;;  %v8568_v49 = vld [vmem:[#allocation26 + $0x390] ss:$28 sps:$4 sm:$0xff]  }
 0x67b   :  { %7779 = vmatprep.subr.bf16.mxu1 %v8511_v36  ;;  %v8572_v36 = vld [vmem:[#allocation26 + $0x718] ss:$28 sps:$4 sm:$0xff]  }
 0x67d   :  { %6617 = vmatpush1.bf16.msra.mxu0 %v8508_v58  ;;  %v8575_v58 = vld [vmem:[#allocation26 + $0x3cc] ss:$28 sps:$4 sm:$0xff]  }
 0x67e   :  { %7780 = vmatpush3.bf16.msra.mxu1 %v8512_v30  ;;  %6618 = vmatprep.subr.bf16.mxu0 %v8515_v28  ;;  %v8576_v30 = vld [vmem:[#allocation26 + $0x910] ss:$28 sps:$4 sm:$0xff]   ;;  %v8573_v28 = vld [vmem:[#allocation26 + $0x3c8] ss:$28 sps:$4 sm:$0xff]  }
 0x67f   :  { %7781 = vmatprep.subr.bf16.mxu1 %v8516_v32  ;;  %v8577_v32 = vld [vmem:[#allocation26 + $0x750] ss:$28 sps:$4 sm:$0xff]  }
 0x681   :  { %6619 = vmatpush1.bf16.msra.mxu0 %v8513_v38  ;;  %v8580_v38 = vld [vmem:[#allocation26 + $0x404] ss:$28 sps:$4 sm:$0xff]  }
 0x682   :  { %7782 = vmatpush3.bf16.msra.mxu1 %v8517_v41  ;;  %6620 = vmatprep.subr.bf16.mxu0 %v8520_v43  ;;  %v8581_v41 = vld [vmem:[#allocation26 + $0x948] ss:$28 sps:$4 sm:$0xff]   ;;  %v8578_v43 = vld [vmem:[#allocation26 + $0x400] ss:$28 sps:$4 sm:$0xff]  }
 0x683   :  { %7783 = vmatprep.subr.bf16.mxu1 %v8521_v44  ;;  %v8585_v44 = vld [vmem:[#allocation26 + $0x43c] ss:$28 sps:$4 sm:$0xff]  }
 0x685   :  { %6621 = vmatpush1.bf16.msra.mxu0 %v8518_v46  ;;  %v8586_v46 = vld [vmem:[#allocation26 + $0x980] ss:$28 sps:$4 sm:$0xff]  }
 0x686   :  { %7784 = vmatpush3.bf16.msra.mxu1 %v8522_v47  ;;  %6622 = vmatprep.subr.bf16.mxu0 %v8525_v29  ;;  %v8583_v47 = vld [vmem:[#allocation26 + $0x438] ss:$28 sps:$4 sm:$0xff]  }
 0x687   :  { %7785 = vmatprep.subr.bf16.mxu1 %v8526_v48  ;;  %v8590_v29 = vld [vmem:[#allocation26 + $0x474] ss:$28 sps:$4 sm:$0xff]  }
 0x688   :  { %v8591_v48 = vld [vmem:[#allocation26 + $0x9b8] ss:$28 sps:$4 sm:$0xff]  }
 0x689   :  { %6623 = vmatpush1.bf16.msra.mxu0 %v8523_v5  ;;  %v8588_v5 = vld [vmem:[#allocation26 + $0x470] ss:$28 sps:$4 sm:$0xff]  }
 0x68a   :  { %7786 = vmatpush3.bf16.msra.mxu1 %v8527_v52  ;;  %6624 = vmatprep.subr.bf16.mxu0 %v8530_v56  ;;  %v8592_v52 = vld [vmem:[#allocation26 + $0x7f8] ss:$28 sps:$4 sm:$0xff]   ;;  %v8595_v56 = vld [vmem:[#allocation26 + $0x4ac] ss:$28 sps:$4 sm:$0xff]  }
 0x68b   :  { %7793 = vmatprep.subr.bf16.mxu1 %v8531_v59  ;;  %v8596_v59 = vld [vmem:[#allocation26 + $0x9f0] ss:$28 sps:$4 sm:$0xff]  }
 0x68d   :  { %6805 = vmatmul.mubr.bf16.vlgmr.msra.gmra.mrb[24].mxu1 %v9702_v42  ;;  %6625 = vmatpush1.bf16.msra.mxu0 %v8528_v60  ;;  %v8593_v60 = vld [vmem:[#allocation26 + $0x4a8] ss:$28 sps:$4 sm:$0xff]  }
 0x68e   :  { %7794 = vmatpush3.bf16.msra.mxu1 %v8532_v61  ;;  %6844 = vmatprep.mubr.bf16.mxu1 %v9708_v45  ;;  %v8597_v61 = vld [vmem:[#allocation26 + $0x830] ss:$28 sps:$4 sm:$0xff]  }
 0x68f   :  { %6626 = vmatprep.subr.bf16.mxu0 %v8535_v62  ;;  %7795 = vmatprep.subr.bf16.mxu1 %v8536_v51  ;;  %v8600_v62 = vld [vmem:[#allocation26 + $0x4e4] ss:$28 sps:$4 sm:$0xff]  }
 0x690   :  { %v8601_v51 = vld [vmem:[#allocation26 + $0xa28] ss:$28 sps:$4 sm:$0xff]  }
 0x691   :  { %6627 = vmatpush1.bf16.msra.mxu0 %v8533_v63  ;;  %v8598_v63 = vld [vmem:[#allocation26 + $0x4e0] ss:$28 sps:$4 sm:$0xff]  }
 0x692   :  { %7796 = vmatpush3.bf16.msra.mxu1 %v8537_v25  ;;  %6628 = vmatprep.subr.bf16.mxu0 %v8540_v0  ;;  %v8602_v25 = vld [vmem:[#allocation26 + $0x868] ss:$28 sps:$4 sm:$0xff]   ;;  %v8605_v0 = vld [vmem:[#allocation26 + $0x51c] ss:$28 sps:$4 sm:$0xff]  }
 0x693   :  { %7797 = vmatprep.subr.bf16.mxu1 %v8541_v39  ;;  %v8606_v39 = vld [vmem:[#allocation26 + $0xa60] ss:$28 sps:$4 sm:$0xff]  }
 0x695   :  { %6629 = vmatpush1.bf16.msra.mxu0 %v8538_v57  ;;  %v8603_v57 = vld [vmem:[#allocation26 + $0x518] ss:$28 sps:$4 sm:$0xff]  }
 0x696   :  { %7798 = vmatpush3.bf16.msra.mxu1 %v8542_v9  ;;  %6630 = vmatprep.subr.bf16.mxu0 %v8545_v1  ;;  %v8607_v9 = vld [vmem:[#allocation26 + $0x8a0] ss:$28 sps:$4 sm:$0xff]   ;;  %v8610_v1 = vld [vmem:[#allocation26 + $0x554] ss:$28 sps:$4 sm:$0xff]  }
 0x697   :  { %7799 = vmatprep.subr.bf16.mxu1 %v8546_v2  ;;  %v8611_v2 = vld [vmem:[#allocation26 + $0xc58] ss:$28 sps:$4 sm:$0xff]  }
 0x699   :  { %6631 = vmatpush1.bf16.msra.mxu0 %v8543_v55  ;;  %v8608_v55 = vld [vmem:[#allocation26 + $0x550] ss:$28 sps:$4 sm:$0xff]  }
 0x69a   :  { %7800 = vmatpush3.bf16.msra.mxu1 %v8547_v3  ;;  %6632 = vmatprep.subr.bf16.mxu0 %v8550_v11  ;;  %v8612_v3 = vld [vmem:[#allocation26 + $0xa98] ss:$28 sps:$4 sm:$0xff]   ;;  %v8615_v11 = vld [vmem:[#allocation26 + $0x58c] ss:$28 sps:$4 sm:$0xff]  }
 0x69b   :  { %7801 = vmatprep.subr.bf16.mxu1 %v8551_v53  ;;  %v8616_v53 = vld [vmem:[#allocation26 + $0xc90] ss:$28 sps:$4 sm:$0xff]  }
 0x69d   :  { %6633 = vmatpush1.bf16.msra.mxu0 %v8548_v14  ;;  %v8613_v14 = vld [vmem:[#allocation26 + $0x588] ss:$28 sps:$4 sm:$0xff]  }
 0x69e   :  { %7802 = vmatpush3.bf16.msra.mxu1 %v8552_v17  ;;  %6634 = vmatprep.subr.bf16.mxu0 %v8555_v12  ;;  %v8617_v17 = vld [vmem:[#allocation26 + $0xad0] ss:$28 sps:$4 sm:$0xff]   ;;  %v8620_v12 = vld [vmem:[#allocation26 + $0x5c4] ss:$28 sps:$4 sm:$0xff]  }
 0x69f   :  { %7803 = vmatprep.subr.bf16.mxu1 %v8556_v19  ;;  %v8621_v19 = vld [vmem:[#allocation26 + $0xcc8] ss:$28 sps:$4 sm:$0xff]  }
 0x6a1   :  { %6635 = vmatpush1.bf16.msra.mxu0 %v8553_v20  ;;  %v8618_v20 = vld [vmem:[#allocation26 + $0x5c0] ss:$28 sps:$4 sm:$0xff]  }
 0x6a2   :  { %7804 = vmatpush3.bf16.msra.mxu1 %v8557_v21  ;;  %6636 = vmatprep.subr.bf16.mxu0 %v8560_v34  ;;  %v8622_v21 = vld [vmem:[#allocation26 + $0xb08] ss:$28 sps:$4 sm:$0xff]   ;;  %v8625_v34 = vld [vmem:[#allocation26 + $0x5fc] ss:$28 sps:$4 sm:$0xff]  }
 0x6a3   :  { %7805 = vmatprep.subr.bf16.mxu1 %v8561_v22  ;;  %v8626_v22 = vld [vmem:[#allocation26 + $0xd00] ss:$28 sps:$4 sm:$0xff]  }
 0x6a5   :  { %6637 = vmatpush1.bf16.msra.mxu0 %v8558_v13  ;;  %v8623_v13 = vld [vmem:[#allocation26 + $0x5f8] ss:$28 sps:$4 sm:$0xff]  }
 0x6a6   :  { %7806 = vmatpush3.bf16.msra.mxu1 %v8562_v40  ;;  %6638 = vmatprep.subr.bf16.mxu0 %v8565_v23  ;;  %v8627_v40 = vld [vmem:[#allocation26 + $0xb40] ss:$28 sps:$4 sm:$0xff]   ;;  %v8630_v23 = vld [vmem:[#allocation26 + $0x634] ss:$28 sps:$4 sm:$0xff]  }
 0x6a7   :  { %7807 = vmatprep.subr.bf16.mxu1 %v8566_v26  ;;  %v8631_v26 = vld [vmem:[#allocation26 + $0xd38] ss:$28 sps:$4 sm:$0xff]  }
 0x6a9   :  { %6639 = vmatpush1.bf16.msra.mxu0 %v8563_v35  ;;  %v8628_v35 = vld [vmem:[#allocation26 + $0x630] ss:$28 sps:$4 sm:$0xff]  }
 0x6aa   :  { %7808 = vmatpush3.bf16.msra.mxu1 %v8567_v27  ;;  %6649 = vmatprep.subr.bf16.mxu0 %v8570_v7  ;;  %v8632_v27 = vld [vmem:[#allocation26 + $0xb78] ss:$28 sps:$4 sm:$0xff]   ;;  %v8635_v7 = vld [vmem:[#allocation26 + $0x66c] ss:$28 sps:$4 sm:$0xff]  }
 0x6ab   :  { %7815 = vmatprep.subr.bf16.mxu1 %v8571_v50  ;;  %v8636_v50 = vld [vmem:[#allocation26 + $0xd70] ss:$28 sps:$4 sm:$0xff]  }
 0x6ac   :  { %6641 = vmatmul.mubr.bf16.vlgmr.msra.gmra.mrb[16].mxu0 %v9702_v42  ;;  %v8582_v42 = vld [vmem:[#allocation26 + $0x788] ss:$28 sps:$4 sm:$0xff]  }
 0x6ad   :  { %6845 = vmatmul.mubr.bf16.vlgmr.msra.gmra.mrb[28].mxu1 %v9726_v18  ;;  %6650 = vmatpush1.bf16.msra.mxu0 %v8568_v49  ;;  %v8633_v49 = vld [vmem:[#allocation26 + $0x668] ss:$28 sps:$4 sm:$0xff]  }
 0x6ae   :  { %6681 = vmatprep.mubr.bf16.mxu0 %v9708_v45  ;;  %7816 = vmatpush3.bf16.msra.mxu1 %v8572_v36  ;;  %v8587_v45 = vld [vmem:[#allocation26 + $0x7c0] ss:$28 sps:$4 sm:$0xff]   ;;  %v8637_v36 = vld [vmem:[#allocation26 + $0xbb0] ss:$28 sps:$4 sm:$0xff]  }
 0x6af   :  { %6884 = vmatprep.mubr.bf16.mxu1 %v9790_v54  ;;  %6651 = vmatprep.subr.bf16.mxu0 %v8575_v58  ;;  %v8640_v58 = vld [vmem:[#allocation26 + $0x6a4] ss:$28 sps:$4 sm:$0xff]  }
 0x6b0   :  { %7817 = vmatprep.subr.bf16.mxu1 %v8576_v30  ;;  %v8641_v30 = vld [vmem:[#allocation26 + $0xda8] ss:$28 sps:$4 sm:$0xff]  }
 0x6b1   :  { %6652 = vmatpush1.bf16.msra.mxu0 %v8573_v28  ;;  %v8638_v28 = vld [vmem:[#allocation26 + $0x6a0] ss:$28 sps:$4 sm:$0xff]  }
 0x6b2   :  { %7818 = vmatpush3.bf16.msra.mxu1 %v8577_v32  ;;  %6653 = vmatprep.subr.bf16.mxu0 %v8580_v38  ;;  %v8642_v32 = vld [vmem:[#allocation26 + $0xbe8] ss:$28 sps:$4 sm:$0xff]   ;;  %v8645_v38 = vld [vmem:[#allocation26 + $0x6dc] ss:$28 sps:$4 sm:$0xff]  }
 0x6b3   :  { %7819 = vmatprep.subr.bf16.mxu1 %v8581_v41  ;;  %v8646_v41 = vld [vmem:[#allocation26 + $0xde0] ss:$28 sps:$4 sm:$0xff]  }
 0x6b5   :  { %6654 = vmatpush1.bf16.msra.mxu0 %v8578_v43  ;;  %v8643_v43 = vld [vmem:[#allocation26 + $0x6d8] ss:$28 sps:$4 sm:$0xff]  }
 0x6b6   :  { %7820 = vmatpush3.bf16.msra.mxu1 %v8582_v42  ;;  %6655 = vmatprep.subr.bf16.mxu0 %v8585_v44  ;;  %v8647_v42 = vld [vmem:[#allocation26 + $0xc20] ss:$28 sps:$4 sm:$0xff]   ;;  %v8650_v44 = vld [vmem:[#allocation26 + $0x714] ss:$28 sps:$4 sm:$0xff]  }
 0x6b7   :  { %7821 = vmatprep.subr.bf16.mxu1 %v8586_v46  ;;  %v8648_v46 = vld [vmem:[#allocation26 + $0x710] ss:$28 sps:$4 sm:$0xff]  }
 0x6b9   :  { %6656 = vmatpush1.bf16.msra.mxu0 %v8583_v47  ;;  %v8653_v47 = vld [vmem:[#allocation26 + $0x74c] ss:$28 sps:$4 sm:$0xff]  }
 0x6ba   :  { %7822 = vmatpush3.bf16.msra.mxu1 %v8587_v45  ;;  %6657 = vmatprep.subr.bf16.mxu0 %v8590_v29  ;;  %v8651_v45 = vld [vmem:[#allocation26 + $0x748] ss:$28 sps:$4 sm:$0xff]  }
 0x6bb   :  { %7823 = vmatprep.subr.bf16.mxu1 %v8591_v48  ;;  %v8656_v29 = vld [vmem:[#allocation26 + $0x784] ss:$28 sps:$4 sm:$0xff]  }
 0x6bc   :  { %v8654_v48 = vld [vmem:[#allocation26 + $0x780] ss:$28 sps:$4 sm:$0xff]  }
 0x6bd   :  { %6658 = vmatpush1.bf16.msra.mxu0 %v8588_v5  ;;  %v8659_v5 = vld [vmem:[#allocation26 + $0x7bc] ss:$28 sps:$4 sm:$0xff]  }
 0x6be   :  { %7824 = vmatpush3.bf16.msra.mxu1 %v8592_v52  ;;  %6659 = vmatprep.subr.bf16.mxu0 %v8595_v56  ;;  %v8657_v52 = vld [vmem:[#allocation26 + $0x7b8] ss:$28 sps:$4 sm:$0xff]  }
 0x6bf   :  { %7825 = vmatprep.subr.bf16.mxu1 %v8596_v59  ;;  %v8662_v56 = vld [vmem:[#allocation26 + $0x7f4] ss:$28 sps:$4 sm:$0xff]  }
 0x6c0   :  { %v8660_v59 = vld [vmem:[#allocation26 + $0x7f0] ss:$28 sps:$4 sm:$0xff]  }
 0x6c1   :  { %6660 = vmatpush1.bf16.msra.mxu0 %v8593_v60  ;;  %v8663_v60 = vld [vmem:[#allocation26 + $0x828] ss:$28 sps:$4 sm:$0xff]  }
 0x6c2   :  { %7826 = vmatpush3.bf16.msra.mxu1 %v8597_v61  ;;  %6661 = vmatprep.subr.bf16.mxu0 %v8600_v62  ;;  %v8668_v61 = vld [vmem:[#allocation26 + $0x864] ss:$28 sps:$4 sm:$0xff]   ;;  %v8671_v62 = vld [vmem:[#allocation26 + $0x89c] ss:$28 sps:$4 sm:$0xff]  }
 0x6c3   :  { %7827 = vmatprep.subr.bf16.mxu1 %v8601_v51  ;;  %v8669_v51 = vld [vmem:[#allocation26 + $0x898] ss:$28 sps:$4 sm:$0xff]  }
 0x6c5   :  { %6662 = vmatpush1.bf16.msra.mxu0 %v8598_v63  ;;  %v8674_v63 = vld [vmem:[#allocation26 + $0x8d4] ss:$28 sps:$4 sm:$0xff]  }
 0x6c6   :  { %7828 = vmatpush3.bf16.msra.mxu1 %v8602_v25  ;;  %6663 = vmatprep.subr.bf16.mxu0 %v8605_v0  ;;  %v8672_v25 = vld [vmem:[#allocation26 + $0x8d0] ss:$28 sps:$4 sm:$0xff]  }
 0x6c7   :  { %7829 = vmatprep.subr.bf16.mxu1 %v8606_v39  ;;  %v8677_v0 = vld [vmem:[#allocation26 + $0x90c] ss:$28 sps:$4 sm:$0xff]  }
 0x6c8   :  { %v8675_v39 = vld [vmem:[#allocation26 + $0x908] ss:$28 sps:$4 sm:$0xff]  }
 0x6c9   :  { %6664 = vmatpush1.bf16.msra.mxu0 %v8603_v57  ;;  %v8680_v57 = vld [vmem:[#allocation26 + $0x944] ss:$28 sps:$4 sm:$0xff]  }
 0x6ca   :  { %7830 = vmatpush3.bf16.msra.mxu1 %v8607_v9  ;;  %6665 = vmatprep.subr.bf16.mxu0 %v8610_v1  ;;  %v8678_v9 = vld [vmem:[#allocation26 + $0x940] ss:$28 sps:$4 sm:$0xff]  }
 0x6cb   :  { %7837 = vmatprep.subr.bf16.mxu1 %v8611_v2  ;;  %v8683_v1 = vld [vmem:[#allocation26 + $0x97c] ss:$28 sps:$4 sm:$0xff]  }
 0x6cc   :  { %v8681_v2 = vld [vmem:[#allocation26 + $0x978] ss:$28 sps:$4 sm:$0xff]  }
 0x6cd   :  { %6885 = vmatmul.mubr.bf16.vlgmr.msra.gmra.mrb[32].mxu1 %v9792_v33  ;;  %6666 = vmatpush1.bf16.msra.mxu0 %v8608_v55  ;;  %v8686_v55 = vld [vmem:[#allocation26 + $0x9b4] ss:$28 sps:$4 sm:$0xff]  }
 0x6ce   :  { %7838 = vmatpush3.bf16.msra.mxu1 %v8612_v3  ;;  %6924 = vmatprep.mubr.bf16.mxu1 %v9798_v37  ;;  %v8684_v3 = vld [vmem:[#allocation26 + $0x9b0] ss:$28 sps:$4 sm:$0xff]  }
 0x6cf   :  { %6667 = vmatprep.subr.bf16.mxu0 %v8615_v11  ;;  %7839 = vmatprep.subr.bf16.mxu1 %v8616_v53  ;;  %v8689_v11 = vld [vmem:[#allocation26 + $0x9ec] ss:$28 sps:$4 sm:$0xff]  }
 0x6d0   :  { %v8687_v53 = vld [vmem:[#allocation26 + $0x9e8] ss:$28 sps:$4 sm:$0xff]  }
 0x6d1   :  { %6668 = vmatpush1.bf16.msra.mxu0 %v8613_v14  ;;  %v8692_v14 = vld [vmem:[#allocation26 + $0xa24] ss:$28 sps:$4 sm:$0xff]  }
 0x6d2   :  { %7840 = vmatpush3.bf16.msra.mxu1 %v8617_v17  ;;  %6669 = vmatprep.subr.bf16.mxu0 %v8620_v12  ;;  %v8690_v17 = vld [vmem:[#allocation26 + $0xa20] ss:$28 sps:$4 sm:$0xff]  }
 0x6d3   :  { %7841 = vmatprep.subr.bf16.mxu1 %v8621_v19  ;;  %v8695_v12 = vld [vmem:[#allocation26 + $0xa5c] ss:$28 sps:$4 sm:$0xff]  }
 0x6d4   :  { %v8693_v19 = vld [vmem:[#allocation26 + $0xa58] ss:$28 sps:$4 sm:$0xff]  }
 0x6d5   :  { %6670 = vmatpush1.bf16.msra.mxu0 %v8618_v20  ;;  %v8698_v20 = vld [vmem:[#allocation26 + $0xa94] ss:$28 sps:$4 sm:$0xff]  }
 0x6d6   :  { %7842 = vmatpush3.bf16.msra.mxu1 %v8622_v21  ;;  %6671 = vmatprep.subr.bf16.mxu0 %v8625_v34  ;;  %v8696_v21 = vld [vmem:[#allocation26 + $0xa90] ss:$28 sps:$4 sm:$0xff]  }
 0x6d7   :  { %7843 = vmatprep.subr.bf16.mxu1 %v8626_v22  ;;  %v8701_v34 = vld [vmem:[#allocation26 + $0xacc] ss:$28 sps:$4 sm:$0xff]  }
 0x6d8   :  { %v8699_v22 = vld [vmem:[#allocation26 + $0xac8] ss:$28 sps:$4 sm:$0xff]  }
 0x6d9   :  { %6672 = vmatpush1.bf16.msra.mxu0 %v8623_v13  ;;  %v8704_v13 = vld [vmem:[#allocation26 + $0xb04] ss:$28 sps:$4 sm:$0xff]  }
 0x6da   :  { %7844 = vmatpush3.bf16.msra.mxu1 %v8627_v40  ;;  %6673 = vmatprep.subr.bf16.mxu0 %v8630_v23  ;;  %v8702_v40 = vld [vmem:[#allocation26 + $0xb00] ss:$28 sps:$4 sm:$0xff]  }
 0x6db   :  { %7845 = vmatprep.subr.bf16.mxu1 %v8631_v26  ;;  %v8707_v23 = vld [vmem:[#allocation26 + $0xb3c] ss:$28 sps:$4 sm:$0xff]  }
 0x6dc   :  { %v8705_v26 = vld [vmem:[#allocation26 + $0xb38] ss:$28 sps:$4 sm:$0xff]  }
 0x6dd   :  { %6674 = vmatpush1.bf16.msra.mxu0 %v8628_v35  ;;  %v8710_v35 = vld [vmem:[#allocation26 + $0xb74] ss:$28 sps:$4 sm:$0xff]  }
 0x6de   :  { %7846 = vmatpush3.bf16.msra.mxu1 %v8632_v27  ;;  %6675 = vmatprep.subr.bf16.mxu0 %v8635_v7  ;;  %v8708_v27 = vld [vmem:[#allocation26 + $0xb70] ss:$28 sps:$4 sm:$0xff]   ;;  %v9824_v7 = vld [vmem:[#allocation28] sm:$0xff] }
 0x6df   :  { %7847 = vmatprep.subr.bf16.mxu1 %v8636_v50  ;;  %v3952_v50 = vrot.slane %v9824_v7, %v9603_v4 }
 0x6e1   :  { %6676 = vmatpush1.bf16.msra.mxu0 %v8633_v49  ;;  %v3948_v49 = vrot.slane %v9824_v7, %v9556_v10 }
 0x6e2   :  { %7848 = vmatpush3.bf16.msra.mxu1 %v8637_v36  ;;  %6677 = vmatprep.subr.bf16.mxu0 %v8640_v58  ;;  %v3956_v36 = vrot.slane %v9824_v7, %v9608_v6  ;;  %v8711_v58 = vld [vmem:[#allocation26 + $0xba8] ss:$28 sps:$4 sm:$0xff]   ;;  %v8719_v6 = vld [vmem:[#allocation26 + $0xc1c] ss:$28 sps:$4 sm:$0xff]  }
 0x6e3   :  { %7849 = vmatprep.subr.bf16.mxu1 %v8641_v30  ;;  %v8716_v30 = vld [vmem:[#allocation26 + $0xbe4] ss:$28 sps:$4 sm:$0xff]  }
 0x6e5   :  { %6678 = vmatpush1.bf16.msra.mxu0 %v8638_v28 }
 0x6e6   :  { %7850 = vmatpush3.bf16.msra.mxu1 %v8642_v32  ;;  %6679 = vmatprep.subr.bf16.mxu0 %v8645_v38 }
 0x6e7   :  { %7851 = vmatprep.subr.bf16.mxu1 %v8646_v41 }
 0x6e9   :  { %6680 = vmatpush1.bf16.msra.mxu0 %v8643_v43 }
 0x6ea   :  { %7852 = vmatpush3.bf16.msra.mxu1 %v8647_v42  ;;  %6690 = vmatprep.subr.bf16.mxu0 %v8650_v44 }
 0x6ec   :  { %6682 = vmatmul.mubr.bf16.vlgmr.msra.gmra.mrb[16].mxu0 %v9726_v18  ;;  %v8665_v18 = vld [vmem:[#allocation26 + $0x82c] ss:$28 sps:$4 sm:$0xff]  }
 0x6ed   :  { %6925 = vmatmul.mubr.bf16.vlgmr.msra.gmra.mrb[36].mxu1 %v9805_v31  ;;  %6691 = vmatpush1.bf16.msra.mxu0 %v8648_v46 }
 0x6ee   :  { %6722 = vmatprep.mubr.bf16.mxu0 %v9790_v54  ;;  %6692 = vmatprep.subr.bf16.mxu0 %v8653_v47  ;;  %v8666_v54 = vld [vmem:[#allocation26 + $0x860] ss:$28 sps:$4 sm:$0xff]  }
 0x6ef   :  { %v8714_v47 = vld [vmem:[#allocation26 + $0xbe0] ss:$28 sps:$4 sm:$0xff]  }
 0x6f1   :  { %6693 = vmatpush1.bf16.msra.mxu0 %v8651_v45 }
 0x6f2   :  { %6694 = vmatprep.subr.bf16.mxu0 %v8656_v29  ;;  %v8717_v29 = vld [vmem:[#allocation26 + $0xc18] ss:$28 sps:$4 sm:$0xff]  }
 0x6f5   :  { %6695 = vmatpush1.bf16.msra.mxu0 %v8654_v48  ;;  %v8722_v48 = vld [vmem:[#allocation26 + $0xc54] ss:$28 sps:$4 sm:$0xff]  }
 0x6f6   :  { %6696 = vmatprep.subr.bf16.mxu0 %v8659_v5  ;;  %v8720_v5 = vld [vmem:[#allocation26 + $0xc50] ss:$28 sps:$4 sm:$0xff]  }
 0x6f9   :  { %6697 = vmatpush1.bf16.msra.mxu0 %v8657_v52  ;;  %v8725_v52 = vld [vmem:[#allocation26 + $0xc8c] ss:$28 sps:$4 sm:$0xff]  }
 0x6fa   :  { %6698 = vmatprep.subr.bf16.mxu0 %v8662_v56 }
 0x6fd   :  { %6699 = vmatpush1.bf16.msra.mxu0 %v8660_v59 }
 0x6fe   :  { %6700 = vmatprep.subr.bf16.mxu0 %v8665_v18  ;;  %v8723_v18 = vld [vmem:[#allocation26 + $0xc88] ss:$28 sps:$4 sm:$0xff]  }
 0x701   :  { %6701 = vmatpush1.bf16.msra.mxu0 %v8663_v60 }
 0x702   :  { %6702 = vmatprep.subr.bf16.mxu0 %v8668_v61  ;;  %v8728_v61 = vld [vmem:[#allocation26 + $0xcc4] ss:$28 sps:$4 sm:$0xff]  }
 0x705   :  { %6703 = vmatpush1.bf16.msra.mxu0 %v8666_v54 }
 0x706   :  { %6704 = vmatprep.subr.bf16.mxu0 %v8671_v62  ;;  %v8726_v62 = vld [vmem:[#allocation26 + $0xcc0] ss:$28 sps:$4 sm:$0xff]  }
 0x709   :  { %6705 = vmatpush1.bf16.msra.mxu0 %v8669_v51  ;;  %v8731_v51 = vld [vmem:[#allocation26 + $0xcfc] ss:$28 sps:$4 sm:$0xff]  }
 0x70a   :  { %6706 = vmatprep.subr.bf16.mxu0 %v8674_v63  ;;  %v8729_v63 = vld [vmem:[#allocation26 + $0xcf8] ss:$28 sps:$4 sm:$0xff]  }
 0x70d   :  { %6707 = vmatpush1.bf16.msra.mxu0 %v8672_v25  ;;  %v8734_v25 = vld [vmem:[#allocation26 + $0xd34] ss:$28 sps:$4 sm:$0xff]  }
 0x70e   :  { %6708 = vmatprep.subr.bf16.mxu0 %v8677_v0  ;;  %v8732_v0 = vld [vmem:[#allocation26 + $0xd30] ss:$28 sps:$4 sm:$0xff]  }
 0x711   :  { %6709 = vmatpush1.bf16.msra.mxu0 %v8675_v39  ;;  %v8737_v39 = vld [vmem:[#allocation26 + $0xd6c] ss:$28 sps:$4 sm:$0xff]  }
 0x712   :  { %6710 = vmatprep.subr.bf16.mxu0 %v8680_v57  ;;  %v8735_v57 = vld [vmem:[#allocation26 + $0xd68] ss:$28 sps:$4 sm:$0xff]  }
 0x715   :  { %6711 = vmatpush1.bf16.msra.mxu0 %v8678_v9  ;;  %v8740_v9 = vld [vmem:[#allocation26 + $0xda4] ss:$28 sps:$4 sm:$0xff]  }
 0x716   :  { %6712 = vmatprep.subr.bf16.mxu0 %v8683_v1 }
 0x719   :  { %6713 = vmatpush1.bf16.msra.mxu0 %v8681_v2 }
 0x71a   :  { %6714 = vmatprep.subr.bf16.mxu0 %v8686_v55  ;;  %v8738_v55 = vld [vmem:[#allocation26 + $0xda0] ss:$28 sps:$4 sm:$0xff]  }
 0x71d   :  { %6715 = vmatpush1.bf16.msra.mxu0 %v8684_v3 }
 0x71e   :  { %6716 = vmatprep.subr.bf16.mxu0 %v8689_v11 }
 0x721   :  { %6717 = vmatpush1.bf16.msra.mxu0 %v8687_v53  ;;  %v8743_v53 = vld [vmem:[#allocation26 + $0xddc] ss:$28 sps:$4 sm:$0xff]  }
 0x722   :  { %6718 = vmatprep.subr.bf16.mxu0 %v8692_v14 }
 0x725   :  { %6719 = vmatpush1.bf16.msra.mxu0 %v8690_v17  ;;  %v8741_v17 = vld [vmem:[#allocation26 + $0xdd8] ss:$28 sps:$4 sm:$0xff]  }
 0x726   :  { %6720 = vmatprep.subr.bf16.mxu0 %v8695_v12  ;;  %v3968_v12 = vrot.slane %v9824_v7, %v9747_v24 }
 0x729   :  { %6721 = vmatpush1.bf16.msra.mxu0 %v8693_v19 }
 0x72a   :  { %6731 = vmatprep.subr.bf16.mxu0 %v8698_v20 }
 0x72c   :  { %6723 = vmatmul.mubr.bf16.vlgmr.msra.gmra.mrb[16].mxu0 %v9792_v33  ;;  %v8713_v33 = vld [vmem:[#allocation26 + $0xbac] ss:$28 sps:$4 sm:$0xff]  }
 0x72d   :  { %6732 = vmatpush1.bf16.msra.mxu0 %v8696_v21  ;;  %6763 = vmatprep.mubr.bf16.mxu0 %v9798_v37  ;;  %v3944_v37 = vrot.slane %v9824_v7, %v9553_v8 }
 0x72e   :  { %6733 = vmatprep.subr.bf16.mxu0 %v8701_v34 }
 0x731   :  { %6734 = vmatpush1.bf16.msra.mxu0 %v8699_v22 }
 0x732   :  { %6735 = vmatprep.subr.bf16.mxu0 %v8704_v13 }
 0x735   :  { %6736 = vmatpush1.bf16.msra.mxu0 %v8702_v40 }
 0x736   :  { %6737 = vmatprep.subr.bf16.mxu0 %v8707_v23 }
 0x739   :  { %6738 = vmatpush1.bf16.msra.mxu0 %v8705_v26 }
 0x73a   :  { %6739 = vmatprep.subr.bf16.mxu0 %v8710_v35 }
 0x73d   :  { %6740 = vmatpush1.bf16.msra.mxu0 %v8708_v27 }
 0x73e   :  { %6741 = vmatprep.subr.bf16.mxu0 %v8713_v33 }
 0x73f   :  { %v6437_v28 = vpop.f32.mrb[12].mxu0  ;;  %v6601_v32 = vpop.f32.mrb[20].mxu1 }
 0x740   :  { %v7887_v38 = vadd.f32 %v6437_v28, %v3944_v37  ;;  %v7889_v41 = vadd.f32 %v6601_v32, %v3952_v50  ;;  %v6439_v43 = vpop.f32.mrb[13].mxu0  ;;  %v6603_v42 = vpop.f32.mrb[21].mxu1  ;;  %v3960_v28 = vrot.slane %v9824_v7, %v9718_v15  ;;  %v3964_v32 = vrot.slane %v9824_v7, %v9721_v16 }
 0x741   :  { %v7888_v8 = vadd.f32 %v6439_v43, %v3948_v49  ;;  %v7890_v44 = vadd.f32 %v6603_v42, %v3956_v36  ;;  %v6441_v46 = vpop.f32.mrb[14].mxu0  ;;  %v6605_v4 = vpop.f32.mrb[22].mxu1  ;;  %6742 = vmatpush1.bf16.msra.mxu0 %v8711_v58 }
 0x742   :  { %8772 = vtanh.f32 %v7887_v38  ;;  %v6442_v10 = vpop.f32.mrb[15].mxu0  ;;  %v6606_v45 = vpop.f32.mrb[23].mxu1  ;;  %6743 = vmatprep.subr.bf16.mxu0 %v8716_v30 }
 0x743   :  { %8774 = vtanh.f32 %v7889_v41 }
 0x744   :  { %8776 = vtanh.f32 %v7888_v8 }
 0x745   :  { %8778 = vtanh.f32 %v7890_v44  ;;  %6744 = vmatpush1.bf16.msra.mxu0 %v8714_v47 }
 0x746   :  { %6745 = vmatprep.subr.bf16.mxu0 %v8719_v6 }
 0x749   :  { %6746 = vmatpush1.bf16.msra.mxu0 %v8717_v29 }
 0x74a   :  { %6747 = vmatprep.subr.bf16.mxu0 %v8722_v48 }
 0x74c   :  { %v8773_v56 = vpop.eup %8772 }
 0x74d   :  { %v8775_v59 = vpop.eup %8774  ;;  %6939 = vst [vmem:[#allocation29] sm:$0xff] %v8773_v56  ;;  %6748 = vmatpush1.bf16.msra.mxu0 %v8720_v5 }
 0x74e   :  { %v8777_v60 = vpop.eup %8776  ;;  %6941 = vst [vmem:[#allocation29 + $0x10] sm:$0xff] %v8775_v59  ;;  %6749 = vmatprep.subr.bf16.mxu0 %v8725_v52 }
 0x74f   :  { %v8779_v54 = vpop.eup %8778  ;;  %6940 = vst [vmem:[#allocation29 + $0x8] sm:$0xff] %v8777_v60 }
 0x750   :  { %6942 = vst [vmem:[#allocation29 + $0x18] sm:$0xff] %v8779_v54 }
 0x751   :  { %6750 = vmatpush1.bf16.msra.mxu0 %v8723_v18 }
 0x752   :  { %6751 = vmatprep.subr.bf16.mxu0 %v8728_v61 }
 0x755   :  { %6752 = vmatpush1.bf16.msra.mxu0 %v8726_v62 }
 0x756   :  { %6753 = vmatprep.subr.bf16.mxu0 %v8731_v51 }
 0x759   :  { %6754 = vmatpush1.bf16.msra.mxu0 %v8729_v63 }
 0x75a   :  { %6755 = vmatprep.subr.bf16.mxu0 %v8734_v25 }
 0x75d   :  { %6756 = vmatpush1.bf16.msra.mxu0 %v8732_v0 }
 0x75e   :  { %6757 = vmatprep.subr.bf16.mxu0 %v8737_v39 }
 0x760   :  { %v7787_v1 = vpop.f32.mrb[24].mxu1 }
 0x761   :  { %v7788_v2 = vpop.f32.mrb[25].mxu1  ;;  %6758 = vmatpush1.bf16.msra.mxu0 %v8735_v57 }
 0x762   :  { %v7789_v3 = vadd.f32 %v7788_v2, %v7787_v1  ;;  %v7790_v11 = vpop.f32.mrb[26].mxu1  ;;  %6759 = vmatprep.subr.bf16.mxu0 %v8740_v9 }
 0x763   :  { %v7791_v14 = vpop.f32.mrb[27].mxu1 }
 0x764   :  { %v6807_v21 = vadd.f32 %v7789_v3, %v3968_v12 }
 0x765   :  { %6760 = vmatpush1.bf16.msra.mxu0 %v8738_v55 }
 0x766   :  { %6761 = vmatprep.subr.bf16.mxu0 %v8743_v53 }
 0x769   :  { %6762 = vmatpush1.bf16.msra.mxu0 %v8741_v17 }
 0x76c   :  { %6764 = vmatmul.mubr.bf16.vlgmr.msra.gmra.mrb[16].mxu0 %v9805_v31 }
 0x780   :  { %v7809_v19 = vpop.f32.mrb[28].mxu1 }
 0x781   :  { %v7810_v20 = vpop.f32.mrb[29].mxu1 }
 0x782   :  { %v7811_v34 = vadd.f32 %v7810_v20, %v7809_v19  ;;  %v7812_v22 = vpop.f32.mrb[30].mxu1 }
 0x783   :  { %v7813_v13 = vpop.f32.mrb[31].mxu1 }
 0x784   :  { %v6847_v40 = vadd.f32 %v7811_v34, %v6807_v21 }
 0x7a0   :  { %v7831_v23 = vpop.f32.mrb[32].mxu1 }
 0x7a1   :  { %v7832_v26 = vpop.f32.mrb[33].mxu1 }
 0x7a2   :  { %v7833_v35 = vadd.f32 %v7832_v26, %v7831_v23  ;;  %v7834_v27 = vpop.f32.mrb[34].mxu1 }
 0x7a3   :  { %v7835_v33 = vpop.f32.mrb[35].mxu1 }
 0x7a4   :  { %v6887_v37 = vadd.f32 %v7833_v35, %v6847_v40 }
 0x7c0   :  { %v7853_v50 = vpop.f32.mrb[36].mxu1 }
 0x7c1   :  { %v7854_v49 = vpop.f32.mrb[37].mxu1 }
 0x7c2   :  { %v7855_v36 = vadd.f32 %v7854_v49, %v7853_v50  ;;  %v7856_v31 = vpop.f32.mrb[38].mxu1 }
 0x7c3   :  { %v7857_v58 = vpop.f32.mrb[39].mxu1 }
 0x7c4   :  { %v6927_v30 = vadd.f32 %v7855_v36, %v6887_v37 }
 0x7c6   :  { %8780 = vtanh.f32 %v6927_v30 }
 0x7d0   :  { %v8781_v24 = vpop.eup %8780 }
 0x7d1   :  { %6945 = vst [vmem:[#allocation29 + $0x30] sm:$0xff] %v8781_v24 }
 0x83f   :  { %v6765_v38 = vpop.f32.mrb[16].mxu0 }
 0x840   :  { %v7891_v41 = vadd.f32 %v6765_v38, %v3960_v28  ;;  %v6767_v43 = vpop.f32.mrb[17].mxu0 }
 0x841   :  { %v7892_v42 = vadd.f32 %v6767_v43, %v3964_v32  ;;  %v6769_v8 = vpop.f32.mrb[18].mxu0 }
 0x842   :  { %8782 = vtanh.f32 %v7891_v41  ;;  %v6770_v44 = vpop.f32.mrb[19].mxu0 }
 0x843   :  { %8784 = vtanh.f32 %v7892_v42 }
 0x84c   :  { %v8783_v46 = vpop.eup %8782 }
 0x84d   :  { %v8785_v4 = vpop.eup %8784  ;;  %6943 = vst [vmem:[#allocation29 + $0x20] sm:$0xff] %v8783_v46 }
 0x84e   :  { %6944 = vst [vmem:[#allocation29 + $0x28] sm:$0xff] %v8785_v4 }
 0x84f   :  { %9173 = shalt.err (!%p9170_p0)
}
 0x850   :  { %s9879_s10 = sld [smem:[#allocation42_spill]] }
 0x856   :  { %s9174_s11 = scalar_lea.hbm %s9879_s10, 896 }
 0x857   :  { %p9175_p1 = scmp.ne.s32.totalorder %s9879_s10, %s9174_s11  ;;  %p9178_p2 = scmp.lt.u32.totalorder %s9174_s11, %s9879_s10 }
 0x859   :  { %p9180_p3 = pnand %p9178_p2, %p9175_p1 }
 0x85b   :  { %9183 = shalt.err (!%p9180_p3)
}
 0x85c   :  { %6955 = dma.vmem_to_hbm [thread:$0]  %s6953_s19, 896, %s9879_s10, [#allocation4]  }
 0x85d   :  { %9202 = dma.done.wait [#allocation4], 896  }
 0x85e   :  { %9203 = vsyncadd [#allocation4], 4294966400 }
 0x85f   :  { %6959 = vsyncpa [#allocation3], 1 }
 0x860   :  { %6960 = vsyncpa [#allocation6], 1 }
 0x861   :  { %6961 = vsyncpa [#allocation9], 1 }
 0x862   :  { %6962 = vsyncpa [#allocation12], 1 }
 0x863   :  { %6963 = vsyncpa [#allocation15], 1 }
 0x864   :  { %6964 = vsyncpa [#allocation18], 1 }
 0x865   :  { %6965 = vsyncpa [#allocation21], 1 }
 0x866   :  { %6966 = vsyncpa [#allocation24], 1 }
 0x867   :  { %6967 = vsyncpa [#allocation27], 1 }
 0x868   :  { %6968 = vsyncpa [#allocation4], 1 }

</bundles_post_ra>
